<compile_context>
chip_gen: v7x
topology: tpu7x:2x2x1
jax: 0.10.0
libtpu: 0.0.40
codegen_flags: <defaults>
</compile_context>

<pallas_src>
import jax
import jax.numpy as jnp
from jax.experimental import pallas as pl
from jax.experimental.pallas import tpu as pltpu


def _leaky_relu(x, slope=0.01):
    return jnp.where(x >= 0, x, slope * x)


def _mf_topic_kernel(img_ref, topic_ref, qmask_ref,
                     w_img_gt_ref, b_img_gt_ref,
                     w_top_gt_ref, b_top_gt_ref,
                     w1_img_ref, w1_att_ref, b1_ref,
                     w2_ref, b2_ref,
                     out_ref):
    cd = img_ref.dtype                               # matmul operand dtype
    num_p = img_ref.shape[1]
    num_r, sl_q, ta = topic_ref.shape[1], topic_ref.shape[2], topic_ref.shape[3]
    hidden = b_img_gt_ref.shape[-1] // 2

    img = img_ref[0]                                  # (num_p, F)       compute dtype
    topic3 = topic_ref[0]                             # (num_r, sl_q, 2W) compute dtype
    topic_flat = topic3.reshape(num_r * sl_q, ta)     # merge leading dims (safe)
    qm = qmask_ref[0]                                 # (num_r, 1, sl_q) f32

    # ---- image branch: once per batch (round axis lives inside this step) ----
    yg = jnp.dot(img, w_img_gt_ref[...],
                 preferred_element_type=jnp.float32) + b_img_gt_ref[...]
    v_feat = jnp.tanh(yg[:, :hidden]) * _leaky_relu(yg[:, hidden:])   # (p, H) f32
    # image contribution to MLP layer 1, with b1 folded in (added once)
    img_h = jnp.dot(img, w1_img_ref[...],
                    preferred_element_type=jnp.float32) + b1_ref[...]  # (p, X) f32

    # ---- topic GatedTrans over all rounds * tokens in one matmul ----
    tyg = jnp.dot(topic_flat, w_top_gt_ref[...],
                  preferred_element_type=jnp.float32) + b_top_gt_ref[...]
    t_feat = jnp.tanh(tyg[:, :hidden]) * _leaky_relu(tyg[:, hidden:])  # (r*q, H) f32
    t_feat3 = t_feat.astype(cd).reshape(num_r, sl_q, hidden)           # (r, q, H)

    # ---- attention of proposals over question tokens (per round) ----
    v_b = jnp.broadcast_to(v_feat.astype(cd)[None], (num_r, num_p, hidden))
    score = jnp.einsum("rph,rqh->rpq", v_b, t_feat3,
                       preferred_element_type=jnp.float32)             # (r, p, q) f32
    score = score * qm + (qm - 1.0) * 10000.0
    m = jnp.max(score, axis=-1, keepdims=True)
    e = jnp.exp(score - m)
    l = jnp.sum(e, axis=-1, keepdims=True)
    w = e * pl.reciprocal(l, approx=True)                              # (r, p, q) f32

    # attended topic features per (round, proposal)
    vt_att = jnp.einsum("rpq,rqd->rpd", w.astype(cd), topic3,
                        preferred_element_type=jnp.float32)            # (r, p, 2W) f32
    vt_flat = vt_att.reshape(num_r * num_p, ta)

    # ---- MLP: relu(concat(img, vt_att) @ W1 + b1) @ W2 + b2, relu ----
    x_dim = img_h.shape[-1]
    h = jnp.dot(vt_flat.astype(cd), w1_att_ref[...],
                preferred_element_type=jnp.float32)                    # (r*p, X) f32
    h = h.reshape(num_r, num_p, x_dim) + img_h[None]                   # broadcast img part
    h = jnp.maximum(h, 0.0).reshape(num_r * num_p, x_dim)

    out = jnp.dot(h.astype(cd), w2_ref[...],
                  preferred_element_type=jnp.float32) + b2_ref[...]    # (r*p, F) f32
    out_ref[0] = jnp.maximum(out, 0.0).astype(out_ref.dtype)


def modality_fusion_topic(img, topic_agg, ques_not_pad, params,
                          compute_dtype=jnp.bfloat16):
    """img: (bs, num_p, F); topic_agg: (bs, num_r, sl_q, 2W);
    ques_not_pad: (bs, num_r, sl_q)  ->  (bs, num_r, num_p, F).

    compute_dtype: dtype of the MXU matmul operands (bf16 recommended on
    v6e/v7x); all accumulation / elementwise / softmax math stays in f32.
    """
    bs, num_p, feat = img.shape
    _, num_r, sl_q, ta = topic_agg.shape
    cd = compute_dtype

    img_c = img.astype(cd)
    topic_c = topic_agg.astype(cd)
    qmask = ques_not_pad.astype(jnp.float32).reshape(bs, num_r, 1, sl_q)

    # split the first MLP weight so the concat never materializes in-kernel
    w_img_gt = params["w_img_gt"].astype(cd)
    w_top_gt = params["w_top_gt"].astype(cd)
    w1_img = params["w1"][:feat].astype(cd)      # (F,  F+2W)
    w1_att = params["w1"][feat:].astype(cd)      # (2W, F+2W)
    w2 = params["w2"].astype(cd)
    b_img_gt = params["b_img_gt"].astype(jnp.float32)
    b_top_gt = params["b_top_gt"].astype(jnp.float32)
    b1 = params["b1"].astype(jnp.float32)
    b2 = params["b2"].astype(jnp.float32)

    def full(a):
        nd = a.ndim
        return pl.BlockSpec(a.shape, lambda b, _nd=nd: (0,) * _nd)

    out = pl.pallas_call(
        _mf_topic_kernel,
        out_shape=jax.ShapeDtypeStruct((bs, num_r * num_p, feat), jnp.float32),
        grid_spec=pltpu.PrefetchScalarGridSpec(
            num_scalar_prefetch=0,
            grid=(bs,),                                   # one step per batch
            in_specs=[
                pl.BlockSpec((1, num_p, feat), lambda b: (b, 0, 0)),
                pl.BlockSpec((1, num_r, sl_q, ta), lambda b: (b, 0, 0, 0)),
                pl.BlockSpec((1, num_r, 1, sl_q), lambda b: (b, 0, 0, 0)),
                full(w_img_gt), full(b_img_gt),
                full(w_top_gt), full(b_top_gt),
                full(w1_img), full(w1_att), full(b1),
                full(w2), full(b2),
            ],
            out_specs=pl.BlockSpec((1, num_r * num_p, feat),
                                   lambda b: (b, 0, 0)),
        ),
        compiler_params=pltpu.CompilerParams(
            dimension_semantics=("parallel",),            # batch splits across TCs
            vmem_limit_bytes=32 * 1024 * 1024),
    )(img_c, topic_c, qmask,
      w_img_gt, b_img_gt, w_top_gt, b_top_gt,
      w1_img, w1_att, b1, w2, b2)

    return out.reshape(bs, num_r, num_p, feat)


# ---------------------------------------------------------------------------
# Parameter construction (matches nn.Linear / kaiming_uniform_ of GatedTrans)
# ---------------------------------------------------------------------------
def _kaiming_uniform(key, out_dim, in_dim):
    bound = jnp.sqrt(6.0 / in_dim)  # kaiming_uniform_ default (a=0, fan_in)
    w = jax.random.uniform(key, (out_dim, in_dim), jnp.float32, -bound, bound)
    return w.T  # stored as (in, out) for x @ W


def _default_linear(key, out_dim, in_dim):
    bound = 1.0 / jnp.sqrt(in_dim)  # default nn.Linear init
    kw, kb = jax.random.split(key)
    w = jax.random.uniform(kw, (out_dim, in_dim), jnp.float32, -bound, bound)
    b = jax.random.uniform(kb, (1, out_dim), jnp.float32, -bound, bound)
    return w.T, b


def make_params(key, img_feat, word_emb, hidden):
    ta = 2 * word_emb
    mlp_in = img_feat + ta
    ks = jax.random.split(key, 6)
    # fused GatedTrans weights: columns [0:H] -> tanh branch, [H:2H] -> gate
    w_img_gt = jnp.concatenate([_kaiming_uniform(ks[0], hidden, img_feat),
                                _kaiming_uniform(ks[1], hidden, img_feat)], axis=1)
    w_top_gt = jnp.concatenate([_kaiming_uniform(ks[2], hidden, ta),
                                _kaiming_uniform(ks[3], hidden, ta)], axis=1)
    w1, b1 = _default_linear(ks[4], mlp_in, mlp_in)
    w2, b2 = _default_linear(ks[5], img_feat, mlp_in)
    return {
        "w_img_gt": w_img_gt, "b_img_gt": jnp.zeros((1, 2 * hidden), jnp.float32),
        "w_top_gt": w_top_gt, "b_top_gt": jnp.zeros((1, 2 * hidden), jnp.float32),
        "w1": w1, "b1": b1,
        "w2": w2, "b2": b2,
    }


# ---------------------------------------------------------------------------
# Pure-JAX reference.  With compute_dtype=float32 it mirrors the PyTorch
# forward exactly (dropout = identity).  With bf16 it applies the same cast
# points as the kernel so only op-ordering / approx-reciprocal effects differ.
# ---------------------------------------------------------------------------
def reference(img, topic_agg, ques_not_pad, p, compute_dtype=jnp.float32):
    cd = compute_dtype
    pef = dict(preferred_element_type=jnp.float32)
    bs, num_p, feat = img.shape
    hidden = p["b_img_gt"].shape[-1] // 2

    img_c = img.astype(cd)
    topic_c = topic_agg.astype(cd)
    w_img_gt = p["w_img_gt"].astype(cd)
    w_top_gt = p["w_top_gt"].astype(cd)
    w1_img = p["w1"][:feat].astype(cd)
    w1_att = p["w1"][feat:].astype(cd)
    w2 = p["w2"].astype(cd)

    yg = jnp.einsum("bpf,fh->bph", img_c, w_img_gt, **pef) + p["b_img_gt"][0]
    v_feat = jnp.tanh(yg[..., :hidden]) * _leaky_relu(yg[..., hidden:])

    tyg = jnp.einsum("brqd,dh->brqh", topic_c, w_top_gt, **pef) + p["b_top_gt"][0]
    t_feat = jnp.tanh(tyg[..., :hidden]) * _leaky_relu(tyg[..., hidden:])

    score = jnp.einsum("bph,brqh->brpq", v_feat.astype(cd), t_feat.astype(cd), **pef)
    q = ques_not_pad.astype(jnp.float32)[:, :, None, :]
    score = score * q + (q - 1.0) * 10000.0
    w = jax.nn.softmax(score, axis=-1)

    vt_att = jnp.einsum("brpq,brqd->brpd", w.astype(cd), topic_c, **pef)

    img_h = jnp.einsum("bpf,fx->bpx", img_c, w1_img, **pef) + p["b1"][0]
    h = img_h[:, None] + jnp.einsum("brpd,dx->brpx", vt_att.astype(cd), w1_att, **pef)
    h = jnp.maximum(h, 0.0)
    out = jnp.einsum("brpx,xf->brpf", h.astype(cd), w2, **pef) + p["b2"][0]
    return jnp.maximum(out, 0.0)


if __name__ == "__main__":
    # keep the f32 reference matmuls at full precision so it matches the MXU path
    jax.config.update("jax_default_matmul_precision", "highest")

    bs, num_p, num_r, sl_q = 2, 16, 10, 8
    img_feature_size, word_embedding_size, lstm_hidden_size = 64, 32, 32
    topic_agg_size = 2 * word_embedding_size

    key = jax.random.PRNGKey(0)
    k_img, k_topic, k_p = jax.random.split(key, 3)

    img = jax.random.normal(k_img, (bs, num_p, img_feature_size), jnp.float32)
    topic_agg = jax.random.normal(
        k_topic, (bs, num_r, sl_q, topic_agg_size), jnp.float32)

    # deterministic padding mask: round-dependent question lengths (>= 1 token)
    lens = (jnp.arange(bs)[:, None] * num_r + jnp.arange(num_r)[None, :]) % sl_q + 1
    ques_not_pad = (jnp.arange(sl_q)[None, None, :] < lens[:, :, None]).astype(
        jnp.float32)

    params = make_params(k_p, img_feature_size, word_embedding_size,
                         lstm_hidden_size)

    # --- f32 path: exact-semantics check against the PyTorch-equivalent ref ---
    out_f32 = modality_fusion_topic(img, topic_agg, ques_not_pad, params,
                                    compute_dtype=jnp.float32)
    out_f32 = jax.block_until_ready(out_f32)
    ref_f32 = reference(img, topic_agg, ques_not_pad, params, jnp.float32)
    assert out_f32.shape == (bs, num_r, num_p, img_feature_size)
    err32 = float(jnp.max(jnp.abs(out_f32 - ref_f32)))
    assert jnp.allclose(out_f32, ref_f32, atol=2e-2, rtol=2e-2), err32

    # --- bf16 MXU path (production dtype on v6e/v7x) vs bf16-cast reference ---
    out_bf16 = modality_fusion_topic(img, topic_agg, ques_not_pad, params,
                                     compute_dtype=jnp.bfloat16)
    out_bf16 = jax.block_until_ready(out_bf16)
    ref_bf16 = reference(img, topic_agg, ques_not_pad, params, jnp.bfloat16)
    err16 = float(jnp.max(jnp.abs(out_bf16 - ref_bf16)))
    assert jnp.allclose(out_bf16, ref_bf16, atol=5e-2, rtol=5e-2), err16

    print("KERNEL_OK")
</pallas_src>

<mosaic_0001>
module attributes {stable_mosaic.version = 11 : i64} {
  func.func @_mf_topic_kernel(%arg0: i32, %arg1: memref<1x16x64xf32, #tpu.memory_space<vmem>>, %arg2: memref<1x10x8x64xf32, #tpu.memory_space<vmem>>, %arg3: memref<1x10x1x8xf32, #tpu.memory_space<vmem>>, %arg4: memref<64x64xf32, #tpu.memory_space<vmem>>, %arg5: memref<1x64xf32, #tpu.memory_space<vmem>>, %arg6: memref<64x64xf32, #tpu.memory_space<vmem>>, %arg7: memref<1x64xf32, #tpu.memory_space<vmem>>, %arg8: memref<64x128xf32, #tpu.memory_space<vmem>>, %arg9: memref<64x128xf32, #tpu.memory_space<vmem>>, %arg10: memref<1x128xf32, #tpu.memory_space<vmem>>, %arg11: memref<128x64xf32, #tpu.memory_space<vmem>>, %arg12: memref<1x64xf32, #tpu.memory_space<vmem>>, %arg13: memref<1x160x64xf32, #tpu.memory_space<vmem>>) attributes {dimension_semantics = [#tpu.dimension_semantics<parallel>], iteration_bounds = array<i64: 2>, scalar_prefetch = 0 : i64, scratch_operands = 0 : i64, tpu.core_type = #tpu.core_type<tc>, window_params = [{transform_indices = @transform_0, window_bounds = array<i64: 1, 16, 64>}, {transform_indices = @transform_1, window_bounds = array<i64: 1, 10, 8, 64>}, {transform_indices = @transform_2, window_bounds = array<i64: 1, 10, 1, 8>}, {pipeline_mode = #tpu.pipeline_mode<synchronous>, transform_indices = @transform_3, window_bounds = array<i64: 64, 64>}, {pipeline_mode = #tpu.pipeline_mode<synchronous>, transform_indices = @transform_4, window_bounds = array<i64: 1, 64>}, {pipeline_mode = #tpu.pipeline_mode<synchronous>, transform_indices = @transform_5, window_bounds = array<i64: 64, 64>}, {pipeline_mode = #tpu.pipeline_mode<synchronous>, transform_indices = @transform_6, window_bounds = array<i64: 1, 64>}, {pipeline_mode = #tpu.pipeline_mode<synchronous>, transform_indices = @transform_7, window_bounds = array<i64: 64, 128>}, {pipeline_mode = #tpu.pipeline_mode<synchronous>, transform_indices = @transform_8, window_bounds = array<i64: 64, 128>}, {pipeline_mode = #tpu.pipeline_mode<synchronous>, transform_indices = @transform_9, window_bounds = array<i64: 1, 128>}, {pipeline_mode = #tpu.pipeline_mode<synchronous>, transform_indices = @transform_10, window_bounds = array<i64: 128, 64>}, {pipeline_mode = #tpu.pipeline_mode<synchronous>, transform_indices = @transform_11, window_bounds = array<i64: 1, 64>}, {transform_indices = @transform_12, window_bounds = array<i64: 1, 160, 64>}]} {
    %c0 = arith.constant 0 : index
    %c0_0 = arith.constant 0 : index
    %c0_1 = arith.constant 0 : index
    %0 = vector.load %arg1[%c0, %c0_0, %c0_1] : memref<1x16x64xf32, #tpu.memory_space<vmem>>, vector<1x16x64xf32>
    %1 = vector.shape_cast %0 : vector<1x16x64xf32> to vector<16x64xf32>
    %c0_2 = arith.constant 0 : index
    %c0_3 = arith.constant 0 : index
    %c0_4 = arith.constant 0 : index
    %c0_5 = arith.constant 0 : index
    %2 = vector.load %arg2[%c0_2, %c0_3, %c0_4, %c0_5] : memref<1x10x8x64xf32, #tpu.memory_space<vmem>>, vector<1x10x8x64xf32>
    %3 = vector.shape_cast %2 : vector<1x10x8x64xf32> to vector<10x8x64xf32>
    %4 = vector.shape_cast %3 : vector<10x8x64xf32> to vector<80x64xf32>
    %c0_6 = arith.constant 0 : index
    %c0_7 = arith.constant 0 : index
    %c0_8 = arith.constant 0 : index
    %c0_9 = arith.constant 0 : index
    %5 = vector.load %arg3[%c0_6, %c0_7, %c0_8, %c0_9] : memref<1x10x1x8xf32, #tpu.memory_space<vmem>>, vector<1x10x1x8xf32>
    %6 = vector.shape_cast %5 : vector<1x10x1x8xf32> to vector<10x1x8xf32>
    %c0_10 = arith.constant 0 : index
    %c0_11 = arith.constant 0 : index
    %7 = vector.load %arg4[%c0_10, %c0_11] : memref<64x64xf32, #tpu.memory_space<vmem>>, vector<64x64xf32>
    %cst = arith.constant dense<0.000000e+00> : vector<16x64xf32>
    %8 = tpu.matmul %1, %7, %cst {dimension_numbers = #tpu.dot_dimension_numbers<[1], [0], [0], [1], [0, 0, 1, 1], [], []>, precision = #tpu.contract_precision<fp32>} : vector<16x64xf32>, vector<64x64xf32>, vector<16x64xf32> -> vector<16x64xf32>
    %c0_12 = arith.constant 0 : index
    %c0_13 = arith.constant 0 : index
    %9 = vector.load %arg5[%c0_12, %c0_13] : memref<1x64xf32, #tpu.memory_space<vmem>>, vector<1x64xf32>
    %10 = vector.broadcast %9 : vector<1x64xf32> to vector<16x64xf32>
    %11 = arith.addf %8, %10 : vector<16x64xf32>
    %12 = vector.extract_strided_slice %11 {offsets = [0, 0], sizes = [16, 32], strides = [1, 1]} : vector<16x64xf32> to vector<16x32xf32>
    %13 = math.tanh %12 : vector<16x32xf32>
    %14 = vector.extract_strided_slice %11 {offsets = [0, 32], sizes = [16, 32], strides = [1, 1]} : vector<16x64xf32> to vector<16x32xf32>
    %cst_14 = arith.constant 0.000000e+00 : f32
    %15 = vector.broadcast %cst_14 : f32 to vector<16x32xf32>
    %16 = arith.cmpf oge, %14, %15 : vector<16x32xf32>
    %cst_15 = arith.constant 0.00999999977 : f32
    %17 = vector.broadcast %cst_15 : f32 to vector<16x32xf32>
    %18 = arith.mulf %17, %14 : vector<16x32xf32>
    %19 = arith.select %16, %14, %18 : vector<16x32xi1>, vector<16x32xf32>
    %20 = arith.mulf %13, %19 : vector<16x32xf32>
    %c0_16 = arith.constant 0 : index
    %c0_17 = arith.constant 0 : index
    %21 = vector.load %arg8[%c0_16, %c0_17] : memref<64x128xf32, #tpu.memory_space<vmem>>, vector<64x128xf32>
    %cst_18 = arith.constant dense<0.000000e+00> : vector<16x128xf32>
    %22 = tpu.matmul %1, %21, %cst_18 {dimension_numbers = #tpu.dot_dimension_numbers<[1], [0], [0], [1], [0, 0, 1, 1], [], []>, precision = #tpu.contract_precision<fp32>} : vector<16x64xf32>, vector<64x128xf32>, vector<16x128xf32> -> vector<16x128xf32>
    %c0_19 = arith.constant 0 : index
    %c0_20 = arith.constant 0 : index
    %23 = vector.load %arg10[%c0_19, %c0_20] : memref<1x128xf32, #tpu.memory_space<vmem>>, vector<1x128xf32>
    %24 = vector.broadcast %23 : vector<1x128xf32> to vector<16x128xf32>
    %25 = arith.addf %22, %24 : vector<16x128xf32>
    %c0_21 = arith.constant 0 : index
    %c0_22 = arith.constant 0 : index
    %26 = vector.load %arg6[%c0_21, %c0_22] : memref<64x64xf32, #tpu.memory_space<vmem>>, vector<64x64xf32>
    %cst_23 = arith.constant dense<0.000000e+00> : vector<80x64xf32>
    %27 = tpu.matmul %4, %26, %cst_23 {dimension_numbers = #tpu.dot_dimension_numbers<[1], [0], [0], [1], [0, 0, 1, 1], [], []>, precision = #tpu.contract_precision<fp32>} : vector<80x64xf32>, vector<64x64xf32>, vector<80x64xf32> -> vector<80x64xf32>
    %c0_24 = arith.constant 0 : index
    %c0_25 = arith.constant 0 : index
    %28 = vector.load %arg7[%c0_24, %c0_25] : memref<1x64xf32, #tpu.memory_space<vmem>>, vector<1x64xf32>
    %29 = vector.broadcast %28 : vector<1x64xf32> to vector<80x64xf32>
    %30 = arith.addf %27, %29 : vector<80x64xf32>
    %31 = vector.extract_strided_slice %30 {offsets = [0, 0], sizes = [80, 32], strides = [1, 1]} : vector<80x64xf32> to vector<80x32xf32>
    %32 = math.tanh %31 : vector<80x32xf32>
    %33 = vector.extract_strided_slice %30 {offsets = [0, 32], sizes = [80, 32], strides = [1, 1]} : vector<80x64xf32> to vector<80x32xf32>
    %cst_26 = arith.constant 0.000000e+00 : f32
    %34 = vector.broadcast %cst_26 : f32 to vector<80x32xf32>
    %35 = arith.cmpf oge, %33, %34 : vector<80x32xf32>
    %cst_27 = arith.constant 0.00999999977 : f32
    %36 = vector.broadcast %cst_27 : f32 to vector<80x32xf32>
    %37 = arith.mulf %36, %33 : vector<80x32xf32>
    %38 = arith.select %35, %33, %37 : vector<80x32xi1>, vector<80x32xf32>
    %39 = arith.mulf %32, %38 : vector<80x32xf32>
    %40 = vector.shape_cast %39 : vector<80x32xf32> to vector<10x8x32xf32>
    %41 = vector.shape_cast %20 : vector<16x32xf32> to vector<1x16x32xf32>
    %42 = vector.shape_cast %41 : vector<1x16x32xf32> to vector<1x16x32xf32>
    %43 = vector.broadcast %42 : vector<1x16x32xf32> to vector<10x16x32xf32>
    "tpu.trace_start"() <{level = 10 : i32, message = "rph,rqh->rpq"}> : () -> ()
    %cst_28 = arith.constant dense<0.000000e+00> : vector<10x16x8xf32>
    %44 = tpu.matmul %43, %40, %cst_28 {dimension_numbers = #tpu.dot_dimension_numbers<[2], [2], [1], [1], [0, 0, 0, 1, 1, 1], [0], [0]>, precision = #tpu.contract_precision<fp32>} : vector<10x16x32xf32>, vector<10x8x32xf32>, vector<10x16x8xf32> -> vector<10x16x8xf32>
    "tpu.trace_stop"() : () -> ()
    %45 = vector.broadcast %6 : vector<10x1x8xf32> to vector<10x16x8xf32>
    %46 = arith.mulf %44, %45 : vector<10x16x8xf32>
    %cst_29 = arith.constant 1.000000e+00 : f32
    %47 = vector.broadcast %cst_29 : f32 to vector<10x1x8xf32>
    %48 = arith.subf %6, %47 : vector<10x1x8xf32>
    %cst_30 = arith.constant 1.000000e+04 : f32
    %49 = vector.broadcast %cst_30 : f32 to vector<10x1x8xf32>
    %50 = arith.mulf %48, %49 : vector<10x1x8xf32>
    %51 = vector.broadcast %50 : vector<10x1x8xf32> to vector<10x16x8xf32>
    %52 = arith.addf %46, %51 : vector<10x16x8xf32>
    %cst_31 = arith.constant dense<0xFF800000> : vector<10x16xf32>
    %53 = vector.multi_reduction <maximumf>, %52, %cst_31 [2] : vector<10x16x8xf32> to vector<10x16xf32>
    %54 = vector.shape_cast %53 : vector<10x16xf32> to vector<10x16x1xf32>
    %55 = vector.broadcast %54 : vector<10x16x1xf32> to vector<10x16x8xf32>
    %56 = arith.subf %52, %55 : vector<10x16x8xf32>
    %57 = math.exp %56 : vector<10x16x8xf32>
    %cst_32 = arith.constant dense<0.000000e+00> : vector<10x16xf32>
    %58 = vector.multi_reduction <add>, %57, %cst_32 [2] : vector<10x16x8xf32> to vector<10x16xf32>
    %59 = vector.shape_cast %58 : vector<10x16xf32> to vector<10x16x1xf32>
    %60 = tpu.reciprocal %59 {approx = true} : vector<10x16x1xf32> -> vector<10x16x1xf32>
    %61 = vector.broadcast %60 : vector<10x16x1xf32> to vector<10x16x8xf32>
    %62 = arith.mulf %57, %61 : vector<10x16x8xf32>
    "tpu.trace_start"() <{level = 10 : i32, message = "rpq,rqd->rpd"}> : () -> ()
    %cst_33 = arith.constant dense<0.000000e+00> : vector<10x16x64xf32>
    %63 = tpu.matmul %62, %3, %cst_33 {dimension_numbers = #tpu.dot_dimension_numbers<[2], [1], [1], [2], [0, 0, 0, 1, 1, 2], [0], [0]>, precision = #tpu.contract_precision<fp32>} : vector<10x16x8xf32>, vector<10x8x64xf32>, vector<10x16x64xf32> -> vector<10x16x64xf32>
    "tpu.trace_stop"() : () -> ()
    %64 = vector.shape_cast %63 : vector<10x16x64xf32> to vector<160x64xf32>
    %c0_34 = arith.constant 0 : index
    %c0_35 = arith.constant 0 : index
    %65 = vector.load %arg9[%c0_34, %c0_35] : memref<64x128xf32, #tpu.memory_space<vmem>>, vector<64x128xf32>
    %cst_36 = arith.constant dense<0.000000e+00> : vector<160x128xf32>
    %66 = tpu.matmul %64, %65, %cst_36 {dimension_numbers = #tpu.dot_dimension_numbers<[1], [0], [0], [1], [0, 0, 1, 1], [], []>, precision = #tpu.contract_precision<fp32>} : vector<160x64xf32>, vector<64x128xf32>, vector<160x128xf32> -> vector<160x128xf32>
    %67 = vector.shape_cast %66 : vector<160x128xf32> to vector<10x16x128xf32>
    %68 = vector.shape_cast %25 : vector<16x128xf32> to vector<1x16x128xf32>
    %69 = vector.broadcast %68 : vector<1x16x128xf32> to vector<10x16x128xf32>
    %70 = arith.addf %67, %69 : vector<10x16x128xf32>
    %cst_37 = arith.constant 0.000000e+00 : f32
    %71 = vector.broadcast %cst_37 : f32 to vector<10x16x128xf32>
    %72 = arith.maximumf %70, %71 : vector<10x16x128xf32>
    %73 = vector.shape_cast %72 : vector<10x16x128xf32> to vector<160x128xf32>
    %c0_38 = arith.constant 0 : index
    %c0_39 = arith.constant 0 : index
    %74 = vector.load %arg11[%c0_38, %c0_39] : memref<128x64xf32, #tpu.memory_space<vmem>>, vector<128x64xf32>
    %cst_40 = arith.constant dense<0.000000e+00> : vector<160x64xf32>
    %75 = tpu.matmul %73, %74, %cst_40 {dimension_numbers = #tpu.dot_dimension_numbers<[1], [0], [0], [1], [0, 0, 1, 1], [], []>, precision = #tpu.contract_precision<fp32>} : vector<160x128xf32>, vector<128x64xf32>, vector<160x64xf32> -> vector<160x64xf32>
    %c0_41 = arith.constant 0 : index
    %c0_42 = arith.constant 0 : index
    %76 = vector.load %arg12[%c0_41, %c0_42] : memref<1x64xf32, #tpu.memory_space<vmem>>, vector<1x64xf32>
    %77 = vector.broadcast %76 : vector<1x64xf32> to vector<160x64xf32>
    %78 = arith.addf %75, %77 : vector<160x64xf32>
    %cst_43 = arith.constant 0.000000e+00 : f32
    %79 = vector.broadcast %cst_43 : f32 to vector<160x64xf32>
    %80 = arith.maximumf %78, %79 : vector<160x64xf32>
    %c0_44 = arith.constant 0 : index
    %c0_45 = arith.constant 0 : index
    %c0_46 = arith.constant 0 : index
    %81 = vector.load %arg13[%c0_44, %c0_45, %c0_46] : memref<1x160x64xf32, #tpu.memory_space<vmem>>, vector<1x160x64xf32>
    %82 = vector.shape_cast %81 : vector<1x160x64xf32> to vector<160x64xf32>
    %83 = vector.shape_cast %80 : vector<160x64xf32> to vector<1x160x64xf32>
    tpu.vector_store %arg13[%c0_44, %c0_45, %c0_46], %83 {strides = array<i32>} : memref<1x160x64xf32, #tpu.memory_space<vmem>>, vector<1x160x64xf32>,
    return
  }
  func.func @transform_0(%arg0: i32) -> (i32, i32, i32) {
    %c0_i32 = arith.constant 0 : i32
    %c0_i32_0 = arith.constant 0 : i32
    %c0_i32_1 = arith.constant 0 : i32
    return %arg0, %c0_i32, %c0_i32_0 : i32, i32, i32
  }
  func.func @transform_1(%arg0: i32) -> (i32, i32, i32, i32) {
    %c0_i32 = arith.constant 0 : i32
    %c0_i32_0 = arith.constant 0 : i32
    %c0_i32_1 = arith.constant 0 : i32
    %c0_i32_2 = arith.constant 0 : i32
    return %arg0, %c0_i32, %c0_i32_0, %c0_i32_1 : i32, i32, i32, i32
  }
  func.func @transform_2(%arg0: i32) -> (i32, i32, i32, i32) {
    %c0_i32 = arith.constant 0 : i32
    %c0_i32_0 = arith.constant 0 : i32
    %c0_i32_1 = arith.constant 0 : i32
    %c0_i32_2 = arith.constant 0 : i32
    return %arg0, %c0_i32, %c0_i32_0, %c0_i32_1 : i32, i32, i32, i32
  }
  func.func @transform_3(%arg0: i32) -> (i32, i32) {
    %c0_i32 = arith.constant 0 : i32
    %c0_i32_0 = arith.constant 0 : i32
    %c0_i32_1 = arith.constant 0 : i32
    return %c0_i32, %c0_i32_0 : i32, i32
  }
  func.func @transform_4(%arg0: i32) -> (i32, i32) {
    %c0_i32 = arith.constant 0 : i32
    %c0_i32_0 = arith.constant 0 : i32
    %c0_i32_1 = arith.constant 0 : i32
    return %c0_i32, %c0_i32_0 : i32, i32
  }
  func.func @transform_5(%arg0: i32) -> (i32, i32) {
    %c0_i32 = arith.constant 0 : i32
    %c0_i32_0 = arith.constant 0 : i32
    %c0_i32_1 = arith.constant 0 : i32
    return %c0_i32, %c0_i32_0 : i32, i32
  }
  func.func @transform_6(%arg0: i32) -> (i32, i32) {
    %c0_i32 = arith.constant 0 : i32
    %c0_i32_0 = arith.constant 0 : i32
    %c0_i32_1 = arith.constant 0 : i32
    return %c0_i32, %c0_i32_0 : i32, i32
  }
  func.func @transform_7(%arg0: i32) -> (i32, i32) {
    %c0_i32 = arith.constant 0 : i32
    %c0_i32_0 = arith.constant 0 : i32
    %c0_i32_1 = arith.constant 0 : i32
    return %c0_i32, %c0_i32_0 : i32, i32
  }
  func.func @transform_8(%arg0: i32) -> (i32, i32) {
    %c0_i32 = arith.constant 0 : i32
    %c0_i32_0 = arith.constant 0 : i32
    %c0_i32_1 = arith.constant 0 : i32
    return %c0_i32, %c0_i32_0 : i32, i32
  }
  func.func @transform_9(%arg0: i32) -> (i32, i32) {
    %c0_i32 = arith.constant 0 : i32
    %c0_i32_0 = arith.constant 0 : i32
    %c0_i32_1 = arith.constant 0 : i32
    return %c0_i32, %c0_i32_0 : i32, i32
  }
  func.func @transform_10(%arg0: i32) -> (i32, i32) {
    %c0_i32 = arith.constant 0 : i32
    %c0_i32_0 = arith.constant 0 : i32
    %c0_i32_1 = arith.constant 0 : i32
    return %c0_i32, %c0_i32_0 : i32, i32
  }
  func.func @transform_11(%arg0: i32) -> (i32, i32) {
    %c0_i32 = arith.constant 0 : i32
    %c0_i32_0 = arith.constant 0 : i32
    %c0_i32_1 = arith.constant 0 : i32
    return %c0_i32, %c0_i32_0 : i32, i32
  }
  func.func @transform_12(%arg0: i32) -> (i32, i32, i32) {
    %c0_i32 = arith.constant 0 : i32
    %c0_i32_0 = arith.constant 0 : i32
    %c0_i32_1 = arith.constant 0 : i32
    return %arg0, %c0_i32, %c0_i32_0 : i32, i32, i32
  }
}

</mosaic_0001>

<bundles_post_ra>
// kernel: tpu_custom_call.1
= control target key start
LH: loop header
LB: loop body
LE: loop exit
PB: predicated region body
PF: predicated region fallthrough
CT: control target
= control target key end

     0   :  { %s23450_s0 = inlined_call_operand.hbm [shape: f32[2,16,64], index: 0, kind: input, shape index: {}]   ;;  %s23451_s1 = inlined_call_operand.vmem [shape: f32[2,10,8,64], index: 1, kind: input, shape index: {}]   ;;  %s23452_s2 = inlined_call_operand.vmem [shape: f32[2,10,1,8], index: 2, kind: input, shape index: {}]   ;;  %s23453_s3 = inlined_call_operand.vmem [shape: f32[64,64], index: 3, kind: input, shape index: {}]   ;;  %s23454_s4 = inlined_call_operand.vmem [shape: f32[1,64], index: 4, kind: input, shape index: {}]   ;;  %s23455_s5 = inlined_call_operand.hbm [shape: f32[64,64], index: 5, kind: input, shape index: {}]   ;;  %s23456_s6 = inlined_call_operand.vmem [shape: f32[1,64], index: 6, kind: input, shape index: {}]   ;;  %s23457_s7 = inlined_call_operand.hbm [shape: f32[64,128], index: 7, kind: input, shape index: {}]   ;;  %s23458_s8 = inlined_call_operand.hbm [shape: f32[64,128], index: 8, kind: input, shape index: {}]   ;;  %s23459_s9 = inlined_call_operand.vmem [shape: f32[1,128], index: 9, kind: input, shape index: {}]   ;;  %s23460_s10 = inlined_call_operand.vmem [shape: f32[128,64], index: 10, kind: input, shape index: {}]   ;;  %s23461_s11 = inlined_call_operand.vmem [shape: f32[1,64], index: 11, kind: input, shape index: {}]   ;;  %s23462_s12 = inlined_call_operand.vmem [shape: f32[2,160,64], index: 12, kind: output, shape index: {}]  }
   0x1   :  { %23587 = sst [smem:[#allocation31_spill]] %s23452_s2 }
   0x2   :  { %23588 = sst [smem:[#allocation32_spill]] %s23460_s10 }
   0x3   :  { %23589 = sst [smem:[#allocation33_spill]] %s23461_s11 }
   0x4   :  { %23590 = sst [smem:[#allocation34_spill]] %s23462_s12 }
   0x5   :  { %17 = vsyncpa [#allocation3], 0 }
   0x6   :  { %19 = vsyncpa [#allocation3 + $0x1], 0 }
   0x7   :  { %20 = vsyncpa [#allocation5], 0 }
   0x8   :  { %21 = vsyncpa [#allocation8], 0  ;;  %s20359_s21 = smov 0   ;;  %s20361_s22 = smov 0  }
   0x9   :  { %s20363_s23 = smov 0   ;;  %s20365_s24 = smov 0  }
   0xa LB: > { %s20378_s25 = sadd.s32 4294967295, %s20285_s24   ;;  %p47_p0 = scmp.ne.s32.totalorder %s20277_s22, %s20273_s21  ;;  %s20285_s24 = sphi %s20365_s24, %s23742_s24   ;;  %s20281_s23 = sphi %s20363_s23, %s23741_s23   ;;  %s20277_s22 = sphi %s20361_s22, %s23740_s22   ;;  %s20273_s21 = sphi %s20359_s21, %s23739_s21  }
   0xb   : > { %p23463_p1 = scmp.eq.s32.totalorder %s20378_s25, 0  ;;  %p16193_p2 = scmp.ge.s32.totalorder %s20285_s24, 1 }
   0xc   : > { %p325_p3 = scmp.lt.s32.totalorder %s20285_s24, 3  ;;  %s20287_s28 = smov [#allocation4]  }
   0xd   : > { %p20386_p4 = por %p23463_p1, %p47_p0  ;;  %s343_s29 = sshll.u32 %s20287_s28, 4  ;;  %s20394_s29 = int_to_ptr.vmem [resolvable:$true] %s343_s29 }
   0xe   : > { %p20390_p5 = pnand %p16193_p2, %p325_p3  ;;  %s20288_s13 = smov [#allocation6]  }
   0xf   : > { %s23591_s26 = scalar_select %p20386_p4, 1, 0 }
  0x10   : > { %s23592_s27 = scalar_select %p20390_p5, 1, 0 }
  0x11   : > { %p19956_p6 = pneg %p20390_p5  ;;  %s359_s14 = sshll.u32 %s20288_s13, 4  ;;  %s20404_s14 = int_to_ptr.vmem [resolvable:$true] %s359_s14 }
  0x12   : > { %s20289_s15 = smov [#allocation7]   ;;  %s20129_s19 = scalar_lea.hbm %s23455_s5, 1024 }
  0x13   : > { %p20400_p7 = pnand %p19956_p6, %p23463_p1  ;;  %s20406_s16 = sshll.u32 %s20289_s15, 4  ;;  %s373_s16 = int_to_ptr.vmem [resolvable:$true] %s20406_s16 }
  0x14   : > { %p20130_p8 = scmp.ne.s32.totalorder %s23455_s5, %s20129_s19  ;;  %p20136_p12 = scmp.lt.u32.totalorder %s20129_s19, %s23455_s5 }
  0x15   : > { %p20416_p9 = pneg %p20400_p7 }
  0x17   : > { %p20132_p10 = pnand %p20416_p9, %p20130_p8 }
  0x19   : > { %p20133_p11 = pneg %p20132_p10 }
  0x1b   : > { %p20138_p13 = pnand %p20136_p12, %p20133_p11 }
  0x1d   : > { %20141 = shalt.err (!%p20138_p13)
}
  0x1e   : > { %s20142_s17 = scalar_lea.vmem %s20394_s29, 1024  ;;  %p20150_p6 = scmp.lt.s32.totalorder %s20394_s29, %s20394_s29 }
  0x1f   : > { %p20143_p0 = scmp.ne.s32.totalorder %s20394_s29, %s20142_s17  ;;  %p20151_p1 = scmp.lt.s32.totalorder %s20142_s17, %s20142_s17 }
  0x21   : > { %p20145_p2 = pnand %p20143_p0, %p20416_p9  ;;  %p20152_p8 = por %p20151_p1, %p20150_p6 }
  0x23   : > { %p20146_p3 = pneg %p20145_p2 }
  0x25   : > { %p20153_p10 = pnand %p20152_p8, %p20146_p3 }
  0x27   : > { %20156 = shalt.err (!%p20153_p10)
}
  0x28   : > { %s20290_s18 = smov 128   ;;  %s20291_s19 = smov 8  }
  0x29   : > { %19959 = dma.hbm_to_vmem [thread:$0]  (!%p20400_p7), %s23455_s5, 1024, %s20394_s29, [#allocation5], %s20290_s18, %s20290_s18, %s20291_s19  }
  0x2a   : > { %s20157_s17 = scalar_lea.hbm %s23457_s7, 1024 }
  0x2b   : > { %p20158_p1 = scmp.ne.s32.totalorder %s23457_s7, %s20157_s17  ;;  %p20164_p13 = scmp.lt.u32.totalorder %s20157_s17, %s23457_s7 }
  0x2d   : > { %p20160_p11 = pnand %p20158_p1, %p20416_p9 }
  0x2f   : > { %p20161_p12 = pneg %p20160_p11 }
  0x31   : > { %p20166_p0 = pnand %p20164_p13, %p20161_p12 }
  0x33   : > { %20169 = shalt.err (!%p20166_p0)
}
  0x34   : > { %s20170_s29 = scalar_lea.vmem %s20404_s14, 1024  ;;  %p20178_p8 = scmp.lt.s32.totalorder %s20404_s14, %s20404_s14 }
  0x35   : > { %p20171_p2 = scmp.ne.s32.totalorder %s20404_s14, %s20170_s29  ;;  %p20179_p10 = scmp.lt.s32.totalorder %s20170_s29, %s20170_s29 }
  0x37   : > { %p20173_p3 = pnand %p20171_p2, %p20416_p9  ;;  %p20180_p1 = por %p20179_p10, %p20178_p8 }
  0x39   : > { %p20174_p6 = pneg %p20173_p3 }
  0x3b   : > { %p20181_p11 = pnand %p20180_p1, %p20174_p6 }
  0x3d   : > { %20184 = shalt.err (!%p20181_p11)
}
  0x3e   : > { %19962 = dma.hbm_to_vmem [thread:$0]  (!%p20400_p7), %s23457_s7, 1024, %s20404_s14, [#allocation5], %s20290_s18, %s20290_s18, %s20291_s19  }
  0x3f   : > { %s20185_s20 = scalar_lea.hbm %s23458_s8, 1024 }
  0x40   : > { %p20186_p12 = scmp.ne.s32.totalorder %s23458_s8, %s20185_s20  ;;  %p20192_p2 = scmp.lt.u32.totalorder %s20185_s20, %s23458_s8 }
  0x42   : > { %p20188_p13 = pnand %p20186_p12, %p20416_p9 }
  0x44   : > { %p20189_p0 = pneg %p20188_p13 }
  0x46   : > { %p20194_p3 = pnand %p20192_p2, %p20189_p0 }
  0x48   : > { %20197 = shalt.err (!%p20194_p3)
}
  0x49   : > { %s20198_s29 = scalar_lea.vmem %s373_s16, 1024  ;;  %p20206_p1 = scmp.lt.s32.totalorder %s373_s16, %s373_s16 }
  0x4a   : > { %p20199_p6 = scmp.ne.s32.totalorder %s373_s16, %s20198_s29  ;;  %p20207_p11 = scmp.lt.s32.totalorder %s20198_s29, %s20198_s29 }
  0x4c   : > { %p20201_p8 = pnand %p20199_p6, %p20416_p9  ;;  %p20208_p4 = por %p20207_p11, %p20206_p1 }
  0x4e   : > { %p20202_p10 = pneg %p20201_p8 }
  0x50   : > { %p20209_p5 = pnand %p20208_p4, %p20202_p10 }
  0x52   : > { %20212 = shalt.err (!%p20209_p5)
}
  0x53   : > { %19965 = dma.hbm_to_vmem [thread:$0]  (!%p20400_p7), %s23458_s8, 1024, %s373_s16, [#allocation8], %s20290_s18, %s20290_s18, %s20291_s19  }
  0x54   : > { %s20489_s28 = sadd.s32 1, %s20285_s24   ;;  %s34_s10 = sadd.s32 1, %s20281_s23 }
  0x55   : > { %s31_s30 = ssub.s32 %s20285_s24, %s20489_s28  ;;  %p41_p5 = scmp.ne.s32.totalorder %s20281_s23, %s20277_s22 }
  0x56   : > { %p32_p4 = scmp.eq.s32.totalorder %s31_s30, 0  ;;  %p42_p9 = scmp.eq.s32.totalorder %s20285_s24, 0 }
  0x57   : > { %p19973_p12 = scmp.lt.s32.totalorder %s20285_s24, 2  ;;  %s395_s12 = sand.u32 1, %s20281_s23  }
  0x58   : > { %s20499_s11 = scalar_select %p32_p4, %s20281_s23, %s34_s10  }
  0x59   : > { %p43_p13 = por %p42_p9, %p41_p5  ;;  %s16198_s20 = sshll.u32 %s395_s12, 4 }
  0x5a   : > { %s16224_s21 = sshll.u32 %s20285_s24, 8  ;;  %s399_s16 = scalar_lea.vmem [#allocation2], %s16198_s20 }
  0x5b   : > { %s20506_s17 = scalar_lea.hbm %s23450_s0, %s16224_s21  ;;  %s406_s29 = sshll.u32 %s399_s16, 4  ;;  %s20508_s29 = int_to_ptr.vmem [resolvable:$true] %s406_s29 }
  0x5c   : > { %p20510_p7 = pnand %p19973_p12, %p43_p13  ;;  %s20514_s24 = scalar_lea.sflag [#allocation3], %s395_s12 }
  0x5d   : > { %s20213_s2 = scalar_lea.hbm %s20506_s17, 256  ;;  %s20218_s20 = scalar_lea.hbm %s23450_s0, 512 }
  0x5e   : > { %p20214_p0 = scmp.ne.s32.totalorder %s20506_s17, %s20213_s2  ;;  %p20215_p2 = pneg %p20510_p7 }
  0x5f   : > { %p20219_p8 = scmp.lt.u32.totalorder %s20506_s17, %s23450_s0  ;;  %p20220_p10 = scmp.lt.u32.totalorder %s20218_s20, %s20213_s2 }
  0x60   : > { %p20216_p3 = pnand %p20215_p2, %p20214_p0  ;;  %p20222_p11 = scmp.lt.u32.totalorder %s20213_s2, %s20506_s17 }
  0x61   : > { %p20221_p1 = por %p20220_p10, %p20219_p8 }
  0x62   : > { %p20217_p6 = pneg %p20216_p3 }
  0x63   : > { %p20223_p4 = por %p20222_p11, %p20221_p1 }
  0x65   : > { %p20224_p5 = pnand %p20223_p4, %p20217_p6 }
  0x67   : > { %20227 = shalt.err (!%p20224_p5)
}
  0x68   : > { %s20228_s12 = scalar_lea.vmem %s20508_s29, 256  ;;  %s20292_s15 = smov [#allocation2]  }
  0x69   : > { %p20229_p9 = scmp.ne.s32.totalorder %s20508_s29, %s20228_s12  ;;  %s20233_s16 = sshll.u32 %s20292_s15, 4  ;;  %s20234_s16 = int_to_ptr.vmem [resolvable:$false] %s20233_s16 }
  0x6a   : > { %s20235_s30 = scalar_lea.vmem %s20234_s16, 512  ;;  %p20236_p0 = scmp.lt.s32.totalorder %s20508_s29, %s20234_s16 }
  0x6b   : > { %p20231_p12 = pnand %p20229_p9, %p20215_p2  ;;  %p20237_p3 = scmp.lt.s32.totalorder %s20235_s30, %s20228_s12 }
  0x6d   : > { %p20232_p13 = pneg %p20231_p12  ;;  %p20238_p8 = por %p20237_p3, %p20236_p0 }
  0x6f   : > { %p20239_p10 = pnand %p20238_p8, %p20232_p13 }
  0x71   : > { %20242 = shalt.err (!%p20239_p10)
}
  0x72   : > { %19969 = dma.hbm_to_vmem [thread:$0]  (!%p20510_p7), %s20506_s17, 256, %s20508_s29, %s20514_s24, %s20290_s18, %s20290_s18, %s20291_s19  }
  0x73   : > { %p23596_p2 = scmp.ne.s32.totalorder %s23592_s27, 0 }
  0x75   : > { %433 = sbr.rel (%p23596_p2) target bundleno = 2714 (0xa9a), region = 68 }
  0x7c   : > { %s435_s2 = sand.u32 1, %s20277_s22   ;;  %p23597_p6 = scmp.ne.s32.totalorder %s23591_s26, 0 }
  0x7d   : > { %s16202_s10 = sshll.u32 %s435_s2, 4  ;;  %s436_s20 = scalar_lea.sflag [#allocation3], %s435_s2 }
  0x7e   : > { %s439_s21 = scalar_lea.vmem [#allocation2], %s16202_s10 }
  0x7f   : > { %20260 = dma.done.wait (%p23597_p6), %s436_s20, 256  }
  0x80   : > { %20262 = vsyncadd (%p23597_p6), %s436_s20, 4294967040  ;;  %p23598_p1 = scmp.eq.s32.totalorder %s20378_s25, 0 }
  0x82   : > { %20264 = dma.done.wait (%p23598_p1), [#allocation5], 2048   ;;  %p23599_p11 = pmov %p23598_p1 }
  0x83   : > { %p23600_p7 = pmov %p23598_p1 }
  0x84   : > { %20266 = vsyncadd (%p23599_p11), [#allocation5], 4294965248 }
  0x85   : > { %20268 = dma.done.wait (%p23600_p7), [#allocation8], 1024   ;;  %p23601_p4 = pmov %p23598_p1 }
  0x86   : > { %v537_v0 = vld [vmem:[%s23453_s3] sm:$0xff]  ;;  %v538_v1 = vld [vmem:[%s23453_s3 + $0x8] sm:$0xff]  ;;  %v539_v2 = vld [vmem:[%s23453_s3 + $0x10] sm:$0xff]  ;;  %vm552_vm0 = vcmask 523264   ;;  %p501_p5 = scmp.lt.s32.totalorder %s20378_s25, 1  ;;  %s20293_s29 = smov 96  }
  0x87   : > { %20270 = vsyncadd (%p23601_p4), [#allocation8], 4294966272  ;;  %v560_v3 = vand.u32 4294901760, %v537_v0  ;;  %v563_v4 = vand.u32 4294901760, %v538_v1  ;;  %v540_v5 = vld [vmem:[%s23453_s3 + $0x18] sm:$0xff]  ;;  %v566_v6 = vand.u32 4294901760, %v539_v2 }
  0x88   : > { %v541_v7 = vld [vmem:[%s23453_s3 + $0x20] sm:$0xff]  ;;  %v542_v8 = vld [vmem:[%s23453_s3 + $0x28] sm:$0xff]  ;;  %v569_v9 = vand.u32 4294901760, %v540_v5  ;;  %v543_v12 = vld [vmem:[%s23453_s3 + $0x30] sm:$0xff]  ;;  %s23744_s25 = smov (!%p501_p5, %s20378_s25), 1  ;;  %vm2811_vm3 = vcmask 261120  }
  0x89   : > { %v572_v10 = vand.u32 4294901760, %v541_v7  ;;  %v575_v11 = vand.u32 4294901760, %v542_v8  ;;  %v544_v13 = vld [vmem:[%s23453_s3 + $0x38] sm:$0xff]  ;;  %v515_v14 = vld [vmem:[%s439_s21] sm:$0xff]  ;;  %v20584_v15 = vpack.c.bf16 %v563_v4, %v560_v3  ;;  %v578_v16 = vand.u32 4294901760, %v543_v12  ;;  %v20660_v54 = vld [vmem:[#allocation6 + $0x8] sm:$0xff] }
  0x8a   : > { %v554_v17 = vsel %vm552_vm0, %v515_v14, 0  ;;  %v516_v18 = vld [vmem:[%s439_s21 + $0x8] sm:$0xff]  ;;  %v20587_v19 = vpack.c.bf16 %v569_v9, %v566_v6  ;;  %v581_v20 = vand.u32 4294901760, %v544_v13  ;;  %v20591_v22 = vsub.f32 %v537_v0, %v560_v3  ;;  %v20658_v53 = vld [vmem:[#allocation6] sm:$0xff]  ;;  %v20666_v57 = vld [vmem:[#allocation6 + $0x10] sm:$0xff]  ;;  %s19939_s21 = smul.u32 80, %s23744_s25 }
  0x8b   : > { %v20589_v21 = vand.u32 4294901760, %v554_v17  ;;  %18860 = vmatprep.subr.bf16.mxu0 %v20584_v15  ;;  %v20594_v23 = vpack.c.bf16 %v575_v11, %v572_v10  ;;  %v20596_v24 = vsub.f32 %v538_v1, %v563_v4  ;;  %v557_v25 = vsel %vm552_vm0, %v516_v18, 0  ;;  %v20668_v58 = vld [vmem:[#allocation6 + $0x18] sm:$0xff]  ;;  %s19940_s15 = smul.u32 10, %s23744_s25  ;;  %s23615_s2 = sld [smem:[#allocation31_spill]] }
  0x8c   : > { %v20599_v26 = vsub.f32 %v539_v2, %v566_v6  ;;  %18862 = vmatpush3.bf16.msra.mxu0 %v20584_v15  ;;  %v655_v28 = vand.u32 4294901760, %v20591_v22  ;;  %v20606_v29 = vand.u32 4294901760, %v557_v25  ;;  %v20608_v30 = vsub.f32 %v540_v5, %v569_v9  ;;  %s20960_s19 = scalar_lea.vmem %s23451_s1, %s19939_s21  ;;  %s23619_s27 = sld [smem:[#allocation32_spill]] }
  0x8d   : > { %v20603_v27 = vsub.f32 %v554_v17, %v20589_v21  ;;  %17346 = vmatprep.mubr.f32.mxu1 %v20589_v21  ;;  %18864 = vmatprep.subr.bf16.mxu0 %v20587_v19  ;;  %v662_v31 = vand.u32 4294901760, %v20596_v24  ;;  %v20614_v33 = vsub.f32 %v541_v7, %v572_v10  ;;  %v20616_v34 = vsub.f32 %v542_v8, %v575_v11  ;;  %v20694_v10 = vld [vmem:[#allocation6 + $0x20] sm:$0xff]  ;;  %v20696_v11 = vld [vmem:[#allocation6 + $0x28] sm:$0xff]  ;;  %s19941_s20 = smul.u32 160, %s23744_s25 }
  0x8e   : > { %v669_v32 = vand.u32 4294901760, %v20599_v26  ;;  %v656_v36 = vsub.f32 %v20591_v22, %v655_v28  ;;  %v20625_v37 = vsub.f32 %v557_v25, %v20606_v29  ;;  %v676_v38 = vand.u32 4294901760, %v20608_v30 }
  0x8f   : > { %v20619_v35 = vand.u32 4294901760, %v20603_v27  ;;  %v663_v39 = vsub.f32 %v20596_v24, %v662_v31  ;;  %v23472_v40 = vand.u32 4294901760, %v20614_v33  ;;  %v23471_v41 = vand.u32 4294901760, %v20616_v34 }
  0x90   : > { %18866 = vmatpush3.bf16.msra.mxu0 %v20587_v19  ;;  %v20637_v43 = vand.u32 4294901760, %v20625_v37  ;;  %v670_v44 = vsub.f32 %v20599_v26, %v669_v32  ;;  %v677_v45 = vsub.f32 %v20608_v30, %v676_v38  ;;  %v20646_v46 = vpack.c.bf16 %v581_v20, %v578_v16 }
  0x91   : > { %v635_v42 = vsub.f32 %v20603_v27, %v20619_v35  ;;  %18868 = vmatprep.subr.bf16.mxu0 %v20594_v23  ;;  %v657_v47 = vand.u32 4294901760, %v656_v36  ;;  %v664_v48 = vand.u32 4294901760, %v663_v39  ;;  %v684_v50 = vsub.f32 %v20614_v33, %v23472_v40  ;;  %s21500_s10 = scalar_lea.vmem %s23615_s2, %s19940_s15 }
  0x92   : > { %v691_v51 = vsub.f32 %v20616_v34, %v23471_v41  ;;  %v20656_v52 = vsub.f32 %v543_v12, %v578_v16  ;;  %v645_v55 = vsub.f32 %v20625_v37, %v20637_v43  ;;  %v20664_v56 = vsub.f32 %v544_v13, %v581_v20  ;;  %v20714_v20 = vld [vmem:[#allocation6 + $0x30] sm:$0xff] }
  0x93   : > { %v20648_v49 = vand.u32 4294901760, %v635_v42  ;;  %v671_v59 = vand.u32 4294901760, %v670_v44  ;;  %v678_v60 = vand.u32 4294901760, %v677_v45  ;;  %v18875_v62 = vpack.c.bf16 %v664_v48, %v657_v47 }
  0x94   : > { %18870 = vmatpush3.bf16.msra.mxu0 %v20594_v23  ;;  %v23468_v61 = vand.u32 4294901760, %v20656_v52  ;;  %v23467_v63 = vand.u32 4294901760, %v20664_v56  ;;  %v1173_v0 = vand.u32 4294901760, %v20658_v53  ;;  %v1176_v1 = vand.u32 4294901760, %v20660_v54 }
  0x95   : > { %17213 = vmatprep.mubr.f32.mxu0 %v20648_v49  ;;  %18872 = vmatprep.subr.bf16.mxu0 %v20646_v46  ;;  %v685_v2 = vand.u32 4294901760, %v684_v50  ;;  %v692_v3 = vand.u32 4294901760, %v691_v51  ;;  %v1179_v4 = vand.u32 4294901760, %v20666_v57  ;;  %v1182_v5 = vand.u32 4294901760, %v20668_v58  ;;  %v20727_v50 = vld [vmem:[#allocation6 + $0x38] sm:$0xff] }
  0x96   : > { %v20679_v6 = vand.u32 4294901760, %v645_v55  ;;  %v698_v7 = vsub.f32 %v20656_v52, %v23468_v61  ;;  %v20687_v8 = vsub.f32 %v20658_v53, %v1173_v0  ;;  %v20692_v9 = vsub.f32 %v20660_v54, %v1176_v1  ;;  %v20817_v53 = vld [vmem:[#allocation4 + $0x10] sm:$0xff]  ;;  %v20819_v54 = vld [vmem:[#allocation4 + $0x18] sm:$0xff] }
  0x97   : > { %v705_v12 = vsub.f32 %v20664_v56, %v23467_v63  ;;  %v20705_v13 = vsub.f32 %v20666_v57, %v1179_v4  ;;  %v20710_v14 = vsub.f32 %v20668_v58, %v1182_v5  ;;  %v18879_v16 = vpack.c.bf16 %v678_v60, %v671_v59 }
  0x98   : > { %18874 = vmatpush3.bf16.msra.mxu0 %v20646_v46  ;;  %v1268_v17 = vand.u32 4294901760, %v20687_v8  ;;  %v23473_v18 = vand.u32 4294901760, %v20692_v9  ;;  %v1185_v39 = vand.u32 4294901760, %v20694_v10  ;;  %v1188_v42 = vand.u32 4294901760, %v20696_v11 }
  0x99   : > { %18876 = vmatprep.subr.bf16.mxu0 %v18875_v62  ;;  %v23470_v25 = vand.u32 4294901760, %v20705_v13  ;;  %v23469_v36 = vand.u32 4294901760, %v20710_v14  ;;  %v18883_v44 = vpack.c.bf16 %v692_v3, %v685_v2  ;;  %v699_v45 = vand.u32 4294901760, %v698_v7 }
  0x9a   : > { %v1269_v47 = vsub.f32 %v20687_v8, %v1268_v17  ;;  %v1276_v48 = vsub.f32 %v20692_v9, %v23473_v18  ;;  %v706_v51 = vand.u32 4294901760, %v705_v12  ;;  %v1191_v60 = vand.u32 4294901760, %v20714_v20 }
  0x9b   : > { %17214 = vmatmul.mubr.f32.vlgmr.msra.gmra.mrb[0].mxu0 %v20679_v6  ;;  %v1283_v55 = vsub.f32 %v20705_v13, %v23470_v25  ;;  %v1290_v59 = vsub.f32 %v20710_v14, %v23469_v36  ;;  %v20745_v7 = vsub.f32 %v20696_v11, %v1188_v42  ;;  %v1194_v61 = vand.u32 4294901760, %v20727_v50  ;;  %v20870_v11 = vld [vmem:[#allocation4 + $0x30] sm:$0xff] }
  0x9c   : > { %18878 = vmatpush3.bf16.msra.mxu0 %v18875_v62  ;;  %17232 = vmatprep.mubr.f32.mxu0 %v20589_v21  ;;  %v1270_v2 = vand.u32 4294901760, %v1269_v47  ;;  %v1277_v3 = vand.u32 4294901760, %v1276_v48  ;;  %v20740_v62 = vsub.f32 %v20694_v10, %v1185_v39  ;;  %v20751_v36 = vsub.f32 %v20714_v20, %v1191_v60  ;;  %v20872_v20 = vld [vmem:[#allocation4 + $0x38] sm:$0xff] }
  0x9d   : > { %18880 = vmatprep.subr.bf16.mxu0 %v18879_v16  ;;  %v1284_v12 = vand.u32 4294901760, %v1283_v55  ;;  %v1291_v63 = vand.u32 4294901760, %v1290_v59  ;;  %v23474_v25 = vand.u32 4294901760, %v20745_v7  ;;  %v20759_v55 = vsub.f32 %v20727_v50, %v1194_v61 }
  0x9e   : > { %v18971_v47 = vpack.c.bf16 %v1277_v3, %v1270_v2  ;;  %v23475_v48 = vand.u32 4294901760, %v20740_v62  ;;  %v23476_v40 = vand.u32 4294901760, %v20751_v36  ;;  %v18887_v59 = vpack.c.bf16 %v706_v51, %v699_v45 }
  0x9f   : > { %v18975_v41 = vpack.c.bf16 %v1291_v63, %v1284_v12  ;;  %v1304_v3 = vsub.f32 %v20745_v7, %v23474_v25  ;;  %v18891_v25 = vpack.c.bf16 %v20596_v24, %v20591_v22  ;;  %v20825_v57 = vpack.c.bf16 %v1188_v42, %v1185_v39 }
  0xa0   : > { %18882 = vmatpush3.bf16.msra.mxu0 %v18879_v16  ;;  %18972 = vmatprep.subr.bf16.mxu1 %v18971_v47  ;;  %v1297_v2 = vsub.f32 %v20740_v62, %v23475_v48  ;;  %v1311_v63 = vsub.f32 %v20751_v36, %v23476_v40  ;;  %v1317_v16 = vand.u32 4294901760, %v20759_v55  ;;  %v1807_v58 = vand.u32 4294901760, %v20819_v54 }
  0xa1   : > { %18884 = vmatprep.subr.bf16.mxu0 %v18883_v44  ;;  %18974 = vmatpush3.bf16.msra.mxu1 %v18971_v47  ;;  %v1305_v18 = vand.u32 4294901760, %v1304_v3  ;;  %v1816_v39 = vand.u32 4294901760, %v20870_v11  ;;  %v1819_v42 = vand.u32 4294901760, %v20872_v20  ;;  %v23606_v3 = vand.u32 4294901760, %v20710_v14 }
  0xa2   : > { %18976 = vmatprep.subr.bf16.mxu1 %v18975_v41  ;;  %v1298_v12 = vand.u32 4294901760, %v1297_v2  ;;  %v1312_v45 = vand.u32 4294901760, %v1311_v63  ;;  %v1318_v51 = vsub.f32 %v20759_v55, %v1317_v16  ;;  %v18895_v2 = vpack.c.bf16 %v20608_v30, %v20599_v26 }
  0xa3   : > { %v20856_v24 = vsub.f32 %v20819_v54, %v1807_v58  ;;  %vm7918_vm14 = vcmask 64512  }
  0xa4   : > { %18886 = vmatpush3.bf16.msra.mxu0 %v18883_v44  ;;  %v18979_v47 = vpack.c.bf16 %v1305_v18, %v1298_v12  ;;  %v1319_v48 = vand.u32 4294901760, %v1318_v51  ;;  %v18987_v44 = vpack.c.bf16 %v20692_v9, %v20687_v8  ;;  %v18991_v18 = vpack.c.bf16 %v20710_v14, %v20705_v13 }
  0xa5   : > { %18888 = vmatprep.subr.bf16.mxu0 %v18887_v59  ;;  %18978 = vmatpush3.bf16.msra.mxu1 %v18975_v41  ;;  %v18899_v41 = vpack.c.bf16 %v20616_v34, %v20614_v33  ;;  %v1994_v30 = vand.u32 4294901760, %v20856_v24  ;;  %v23603_v8 = vand.u32 4294901760, %v20614_v33  ;;  %v20911_v12 = vsub.f32 %v20870_v11, %v1816_v39 }
  0xa6   : > { %18980 = vmatprep.subr.bf16.mxu1 %v18979_v47  ;;  %v18983_v40 = vpack.c.bf16 %v1319_v48, %v1312_v45  ;;  %v18903_v48 = vpack.c.bf16 %v20664_v56, %v20656_v52  ;;  %v20916_v45 = vsub.f32 %v20872_v20, %v1819_v42  ;;  %v23608_v14 = vand.u32 4294901760, %v20664_v56 }
  0xa7   : > { %v2015_v56 = vand.u32 4294901760, %v20911_v12 }
  0xa8   : > { %18890 = vmatpush3.bf16.msra.mxu0 %v18887_v59  ;;  %v20809_v59 = vpack.c.bf16 %v1182_v5, %v1179_v4  ;;  %v20845_v4 = vpack.c.bf16 %v1194_v61, %v1191_v60  ;;  %v23602_v5 = vand.u32 4294901760, %v20692_v9  ;;  %v23604_v9 = vand.u32 4294901760, %v20616_v34 }
  0xa9   : > { %18892 = vmatprep.subr.bf16.mxu0 %v18891_v25  ;;  %18982 = vmatpush3.bf16.msra.mxu1 %v18979_v47  ;;  %v23605_v60 = vand.u32 4294901760, %v20705_v13  ;;  %v23607_v13 = vand.u32 4294901760, %v20656_v52  ;;  %v23610_v52 = vand.u32 4294901760, %v20745_v7 }
  0xaa   : > { %18984 = vmatprep.subr.bf16.mxu1 %v18983_v40  ;;  %v19019_v10 = vpack.c.bf16 %v23602_v5, %v1268_v17  ;;  %v18931_v17 = vpack.c.bf16 %v23604_v9, %v23603_v8  ;;  %v521_v5 = vld [vmem:[%s20960_s19 + $0x20] sm:$0xff] }
  0xab   : > { %17233 = vmatmul.mubr.f32.vlgmr.msra.gmra.mrb[0].mxu0 %v20606_v29  ;;  %v19023_v33 = vpack.c.bf16 %v23606_v3, %v23605_v60  ;;  %v18935_v51 = vpack.c.bf16 %v23608_v14, %v23607_v13  ;;  %v522_v13 = vld [vmem:[%s20960_s19 + $0x28] sm:$0xff]  ;;  %v523_v14 = vld [vmem:[%s20960_s19 + $0x30] sm:$0xff] }
  0xac   : > { %18894 = vmatpush3.bf16.msra.mxu0 %v18891_v25  ;;  %17251 = vmatprep.mubr.f32.mxu0 %v20603_v27  ;;  %v18995_v25 = vpack.c.bf16 %v20745_v7, %v20740_v62  ;;  %v1783_v54 = vsel %vm552_vm0, %v522_v13, 0 }
  0xad   : > { %18896 = vmatprep.subr.bf16.mxu0 %v18895_v2  ;;  %18986 = vmatpush3.bf16.msra.mxu1 %v18983_v40  ;;  %v18999_v40 = vpack.c.bf16 %v20759_v55, %v20751_v36 }
  0xae   : > { %18988 = vmatprep.subr.bf16.mxu1 %v18987_v44 }
  0xb0   : > { %18898 = vmatpush3.bf16.msra.mxu0 %v18895_v2  ;;  %17347 = vmatmul.mubr.f32.vlgmr.msra.gmra.mrb[0].mxu1 %v20606_v29  ;;  %v23609_v2 = vand.u32 4294901760, %v20740_v62  ;;  %v23611_v62 = vand.u32 4294901760, %v20751_v36 }
  0xb1   : > { %18900 = vmatprep.subr.bf16.mxu0 %v18899_v41  ;;  %18990 = vmatpush3.bf16.msra.mxu1 %v18987_v44 }
  0xb2   : > { %17365 = vmatprep.mubr.f32.mxu1 %v20603_v27  ;;  %18992 = vmatprep.subr.bf16.mxu1 %v18991_v18  ;;  %v20799_v27 = vpack.c.bf16 %v1176_v1, %v1173_v0  ;;  %v20837_v0 = vld [vmem:[#allocation4 + $0x20] sm:$0xff]  ;;  %v20839_v1 = vld [vmem:[#allocation4 + $0x28] sm:$0xff]  ;;  %v19027_v44 = vpack.c.bf16 %v23610_v52, %v23609_v2  ;;  %v19031_v7 = vpack.c.bf16 %v1317_v16, %v23611_v62 }
  0xb3   : > { %v1813_v61 = vand.u32 4294901760, %v20839_v1  ;;  %v518_v16 = vld [vmem:[%s20960_s19 + $0x8] sm:$0xff] }
  0xb4   : > { %18902 = vmatpush3.bf16.msra.mxu0 %v18899_v41 }
  0xb5   : > { %18904 = vmatprep.subr.bf16.mxu0 %v18903_v48  ;;  %18994 = vmatpush3.bf16.msra.mxu1 %v18991_v18  ;;  %v519_v18 = vld [vmem:[%s20960_s19 + $0x10] sm:$0xff] }
  0xb6   : > { %18996 = vmatprep.subr.bf16.mxu1 %v18995_v25 }
  0xb8   : > { %18906 = vmatpush3.bf16.msra.mxu0 %v18903_v48 }
  0xb9   : > { %18908 = vmatprep.subr.bf16.mxu0 %v20584_v15  ;;  %18998 = vmatpush3.bf16.msra.mxu1 %v18995_v25  ;;  %v1771_v25 = vsel %vm552_vm0, %v518_v16, 0 }
  0xba   : > { %19000 = vmatprep.subr.bf16.mxu1 %v18999_v40 }
  0xbb   : > { %17252 = vmatmul.mubr.f32.vlgmr.msra.gmra.mrb[0].mxu0 %v20625_v37 }
  0xbc   : > { %18910 = vmatpush3.bf16.msra.mxu0 %v20584_v15  ;;  %17270 = vmatprep.mubr.f32.mxu0 %v20619_v35 }
  0xbd   : > { %18912 = vmatprep.subr.bf16.mxu0 %v20587_v19  ;;  %19002 = vmatpush3.bf16.msra.mxu1 %v18999_v40  ;;  %v1774_v40 = vsel %vm552_vm0, %v519_v18, 0  ;;  %v21084_v18 = vpack.c.bf16 %v1819_v42, %v1816_v39 }
  0xbe   : > { %19004 = vmatprep.subr.bf16.mxu1 %v20799_v27  ;;  %v21014_v8 = vand.u32 4294901760, %v1774_v40 }
  0xc0   : > { %18914 = vmatpush3.bf16.msra.mxu0 %v20587_v19  ;;  %17366 = vmatmul.mubr.f32.vlgmr.msra.gmra.mrb[0].mxu1 %v20625_v37  ;;  %v1804_v37 = vand.u32 4294901760, %v20817_v53 }
  0xc1   : > { %18916 = vmatprep.subr.bf16.mxu0 %v20594_v23  ;;  %19006 = vmatpush3.bf16.msra.mxu1 %v20799_v27 }
  0xc2   : > { %17384 = vmatprep.mubr.f32.mxu1 %v20619_v35  ;;  %19008 = vmatprep.subr.bf16.mxu1 %v20809_v59  ;;  %v18923_v35 = vpack.c.bf16 %v662_v31, %v655_v28  ;;  %v20851_v22 = vsub.f32 %v20817_v53, %v1804_v37  ;;  %v18927_v28 = vpack.c.bf16 %v676_v38, %v669_v32  ;;  %v1810_v31 = vand.u32 4294901760, %v20837_v0 }
  0xc3   : > { %v20886_v38 = vsub.f32 %v20839_v1, %v1813_v61  ;;  %v21024_v60 = vpack.c.bf16 %v1807_v58, %v1804_v37  ;;  %v1786_v37 = vsel %vm552_vm0, %v523_v14, 0  ;;  %v525_v1 = vld [vmem:[%s20960_s19 + $0x40] sm:$0xff] }
  0xc4   : > { %18918 = vmatpush3.bf16.msra.mxu0 %v20594_v23  ;;  %v1987_v26 = vand.u32 4294901760, %v20851_v22  ;;  %v20881_v32 = vsub.f32 %v20837_v0, %v1810_v31  ;;  %v21049_v58 = vpack.c.bf16 %v1813_v61, %v1810_v31  ;;  %v21067_v61 = vand.u32 4294901760, %v1783_v54 }
  0xc5   : > { %18920 = vmatprep.subr.bf16.mxu0 %v20646_v46  ;;  %19010 = vmatpush3.bf16.msra.mxu1 %v20809_v59  ;;  %v2008_v63 = vand.u32 4294901760, %v20886_v38 }
  0xc6   : > { %19012 = vmatprep.subr.bf16.mxu1 %v20825_v57  ;;  %v20899_v50 = vpack.c.bf16 %v1994_v30, %v1987_v26  ;;  %v2001_v34 = vand.u32 4294901760, %v20881_v32  ;;  %v21097_v20 = vsub.f32 %v1783_v54, %v21067_v61 }
  0xc7   : > { %v2009_v14 = vsub.f32 %v20886_v38, %v2008_v63 }
  0xc8   : > { %18922 = vmatpush3.bf16.msra.mxu0 %v20646_v46  ;;  %v20927_v47 = vpack.c.bf16 %v2008_v63, %v2001_v34  ;;  %v2002_v13 = vsub.f32 %v20881_v32, %v2001_v34 }
  0xc9   : > { %18924 = vmatprep.subr.bf16.mxu0 %v18923_v35  ;;  %19014 = vmatpush3.bf16.msra.mxu1 %v20825_v57 }
  0xca   : > { %19016 = vmatprep.subr.bf16.mxu1 %v20845_v4 }
  0xcb   : > { %17271 = vmatmul.mubr.f32.vlgmr.msra.gmra.mrb[0].mxu0 %v20637_v43 }
  0xcc   : > { %18926 = vmatpush3.bf16.msra.mxu0 %v18923_v35  ;;  %17289 = vmatprep.mubr.f32.mxu0 %v20589_v21 }
  0xcd   : > { %18928 = vmatprep.subr.bf16.mxu0 %v18927_v28  ;;  %19018 = vmatpush3.bf16.msra.mxu1 %v20845_v4 }
  0xce   : > { %19020 = vmatprep.subr.bf16.mxu1 %v19019_v10 }
  0xd0   : > { %18930 = vmatpush3.bf16.msra.mxu0 %v18927_v28  ;;  %17385 = vmatmul.mubr.f32.vlgmr.msra.gmra.mrb[0].mxu1 %v20637_v43  ;;  %v2022_v43 = vand.u32 4294901760, %v20916_v45 }
  0xd1   : > { %18932 = vmatprep.subr.bf16.mxu0 %v18931_v17  ;;  %19022 = vmatpush3.bf16.msra.mxu1 %v19019_v10  ;;  %v21012_v10 = vand.u32 4294901760, %v1771_v25 }
  0xd2   : > { %17403 = vmatprep.mubr.f32.mxu1 %v20589_v21  ;;  %19024 = vmatprep.subr.bf16.mxu1 %v19023_v33  ;;  %v20941_v41 = vpack.c.bf16 %v2022_v43, %v2015_v56 }
  0xd4   : > { %18934 = vmatpush3.bf16.msra.mxu0 %v18931_v17  ;;  %v1780_v17 = vsel %vm552_vm0, %v521_v5, 0 }
  0xd5   : > { %18936 = vmatprep.subr.bf16.mxu0 %v18935_v51  ;;  %19026 = vmatpush3.bf16.msra.mxu1 %v19023_v33  ;;  %v21039_v53 = vand.u32 4294901760, %v1780_v17 }
  0xd6   : > { %19028 = vmatprep.subr.bf16.mxu1 %v19027_v44 }
  0xd7   : > { %v21065_v31 = vsub.f32 %v1780_v17, %v21039_v53 }
  0xd8   : > { %18938 = vmatpush3.bf16.msra.mxu0 %v18935_v51  ;;  %v21034_v51 = vsub.f32 %v1774_v40, %v21014_v8  ;;  %v526_v40 = vld [vmem:[%s20960_s19 + $0x48] sm:$0xff] }
  0xd9   : > { %18940 = vmatprep.subr.bf16.mxu0 %v20584_v15  ;;  %19030 = vmatpush3.bf16.msra.mxu1 %v19027_v44  ;;  %v524_v44 = vld [vmem:[%s20960_s19 + $0x38] sm:$0xff]  ;;  %v1912_v11 = vand.u32 4294901760, %v21065_v31 }
  0xda   : > { %19032 = vmatprep.subr.bf16.mxu1 %v19031_v7  ;;  %v1789_v16 = vsel %vm552_vm0, %v524_v44, 0 }
  0xdb   : > { %17290 = vmatmul.mubr.f32.vlgmr.msra.gmra.mrb[0].mxu0 %v20606_v29  ;;  %v21102_v42 = vand.u32 4294901760, %v1789_v16  ;;  %v1913_v34 = vsub.f32 %v21065_v31, %v1912_v11 }
  0xdc   : > { %18942 = vmatpush3.bf16.msra.mxu0 %v20584_v15  ;;  %17308 = vmatprep.mubr.f32.mxu0 %v20589_v21  ;;  %v20968_v15 = vld [vmem:[%s20960_s19] sm:$0xff] }
  0xdd   : > { %18944 = vmatprep.subr.bf16.mxu0 %v20587_v19  ;;  %19034 = vmatpush3.bf16.msra.mxu1 %v19031_v7  ;;  %v1768_v36 = vsel %vm552_vm0, %v20968_v15, 0  ;;  %v1892_v7 = vand.u32 4294901760, %v21034_v51  ;;  %v21120_v44 = vsub.f32 %v1789_v16, %v21102_v42  ;;  %v2016_v16 = vsub.f32 %v20911_v12, %v2015_v56 }
  0xde   : > { %19036 = vmatprep.subr.bf16.mxu1 %v20799_v27 }
  0xe0   : > { %18946 = vmatpush3.bf16.msra.mxu0 %v20587_v19  ;;  %17404 = vmatmul.mubr.f32.vlgmr.msra.gmra.mrb[0].mxu1 %v20606_v29  ;;  %v20978_v19 = vand.u32 4294901760, %v1768_v36 }
  0xe1   : > { %18948 = vmatprep.subr.bf16.mxu0 %v20594_v23  ;;  %19038 = vmatpush3.bf16.msra.mxu1 %v20799_v27 }
  0xe2   : > { %17422 = vmatprep.mubr.f32.mxu1 %v20589_v21  ;;  %19040 = vmatprep.subr.bf16.mxu1 %v20809_v59  ;;  %v20987_v21 = vsub.f32 %v1768_v36, %v20978_v19  ;;  %v21069_v36 = vand.u32 4294901760, %v1786_v37 }
  0xe4   : > { %18950 = vmatpush3.bf16.msra.mxu0 %v20594_v23  ;;  %v1752_v23 = vld [vmem:[#allocation4] sm:$0xff]  ;;  %v1872_v55 = vand.u32 4294901760, %v20987_v21  ;;  %v21100_v39 = vsub.f32 %v1786_v37, %v21069_v36 }
  0xe5   : > { %18952 = vmatprep.subr.bf16.mxu0 %v20646_v46  ;;  %19042 = vmatpush3.bf16.msra.mxu1 %v20809_v59 }
  0xe6   : > { %19044 = vmatprep.subr.bf16.mxu1 %v20825_v57 }
  0xe8   : > { %18954 = vmatpush3.bf16.msra.mxu0 %v20646_v46  ;;  %v1753_v46 = vld [vmem:[#allocation4 + $0x8] sm:$0xff] }
  0xe9   : > { %18956 = vmatprep.subr.bf16.mxu0 %v20799_v27  ;;  %19046 = vmatpush3.bf16.msra.mxu1 %v20825_v57  ;;  %v1801_v48 = vand.u32 4294901760, %v1753_v46 }
  0xea   : > { %19048 = vmatprep.subr.bf16.mxu1 %v20845_v4 }
  0xeb   : > { %17309 = vmatmul.mubr.f32.vlgmr.msra.gmra.mrb[0].mxu0 %v20606_v29 }
  0xec   : > { %18958 = vmatpush3.bf16.msra.mxu0 %v20799_v27  ;;  %17327 = vmatprep.mubr.f32.mxu0 %v20648_v49  ;;  %v1798_v49 = vand.u32 4294901760, %v1752_v23  ;;  %v1873_v27 = vsub.f32 %v20987_v21, %v1872_v55 }
  0xed   : > { %18960 = vmatprep.subr.bf16.mxu0 %v20809_v59  ;;  %19050 = vmatpush3.bf16.msra.mxu1 %v20845_v4 }
  0xee   : > { %v21005_v35 = vpack.c.bf16 %v1801_v48, %v1798_v49  ;;  %v21007_v28 = vsub.f32 %v1752_v23, %v1798_v49  ;;  %v1874_v9 = vand.u32 4294901760, %v1873_v27  ;;  %v1988_v23 = vsub.f32 %v20851_v22, %v1987_v26 }
  0xf0   : > { %18962 = vmatpush3.bf16.msra.mxu0 %v20809_v59  ;;  %17423 = vmatmul.mubr.f32.vlgmr.msra.gmra.mrb[0].mxu1 %v20606_v29  ;;  %v520_v59 = vld [vmem:[%s20960_s19 + $0x18] sm:$0xff]  ;;  %v21009_v29 = vsub.f32 %v1753_v46, %v1801_v48  ;;  %v1973_v3 = vand.u32 4294901760, %v21007_v28  ;;  %v1995_v46 = vsub.f32 %v20856_v24, %v1994_v30  ;;  %v1893_v30 = vsub.f32 %v21034_v51, %v1892_v7 }
  0xf1   : > { %18964 = vmatprep.subr.bf16.mxu0 %v20825_v57 }
  0xf2   : > { %v1980_v33 = vand.u32 4294901760, %v21009_v29  ;;  %v1996_v5 = vand.u32 4294901760, %v1995_v46  ;;  %v1894_v37 = vand.u32 4294901760, %v1893_v30 }
  0xf4   : > { %18966 = vmatpush3.bf16.msra.mxu0 %v20825_v57  ;;  %v1777_v57 = vsel %vm552_vm0, %v520_v59, 0  ;;  %v1981_v52 = vsub.f32 %v21009_v29, %v1980_v33  ;;  %v1989_v59 = vand.u32 4294901760, %v1988_v23  ;;  %v23477_v23 = vand.u32 4294901760, %v21100_v39 }
  0xf5   : > { %18968 = vmatprep.subr.bf16.mxu0 %v20845_v4  ;;  %v21036_v2 = vand.u32 4294901760, %v1777_v57 }
  0xf6   : > { %v1982_v48 = vand.u32 4294901760, %v1981_v52  ;;  %v1922_v52 = vand.u32 4294901760, %v21097_v20  ;;  %v19071_v63 = vpack.c.bf16 %v1996_v5, %v1989_v59  ;;  %v1914_v5 = vand.u32 4294901760, %v1913_v34 }
  0xf7   : > { %v21061_v0 = vsub.f32 %v1777_v57, %v21036_v2  ;;  %v1933_v56 = vsub.f32 %v21100_v39, %v23477_v23 }
  0xf8   : > { %18970 = vmatpush3.bf16.msra.mxu0 %v20845_v4  ;;  %v21031_v4 = vsub.f32 %v1771_v25, %v21012_v10  ;;  %v1792_v25 = vsel %vm552_vm0, %v525_v1, 0  ;;  %v1923_v30 = vsub.f32 %v21097_v20, %v1922_v52 }
  0xf9   : > { %19052 = vmatprep.subr.bf16.mxu0 %v21005_v35  ;;  %v1902_v27 = vand.u32 4294901760, %v21061_v0  ;;  %v21105_v57 = vand.u32 4294901760, %v1792_v25 }
  0xfa   : > { %v1882_v62 = vand.u32 4294901760, %v21031_v4 }
  0xfb   : > { %17328 = vmatmul.mubr.f32.vlgmr.msra.gmra.mrb[2].mxu0 %v20679_v6  ;;  %v1974_v6 = vsub.f32 %v21007_v28, %v1973_v3  ;;  %v21130_v46 = vsub.f32 %v1792_v25, %v21105_v57  ;;  %v1942_v25 = vand.u32 4294901760, %v21120_v44 }
  0xfc   : > { %19054 = vmatpush3.bf16.msra.mxu0 %v21005_v35  ;;  %17441 = vmatprep.mubr.f32.mxu0 %v1874_v9  ;;  %v1883_v26 = vsub.f32 %v21031_v4, %v1882_v62  ;;  %v1795_v9 = vsel %vm552_vm0, %v526_v40, 0  ;;  %v2023_v40 = vsub.f32 %v20916_v45, %v2022_v43 }
  0xfd   : > { %19056 = vmatprep.subr.bf16.mxu0 %v21024_v60  ;;  %v1975_v49 = vand.u32 4294901760, %v1974_v6  ;;  %v1903_v6 = vsub.f32 %v21061_v0, %v1902_v27  ;;  %v21122_v1 = vand.u32 4294901760, %v1795_v9  ;;  %v1952_v43 = vand.u32 4294901760, %v21130_v46 }
  0xfe   : > { %v1884_v54 = vand.u32 4294901760, %v1883_v26 }
  0xff   : > { %v19067_v17 = vpack.c.bf16 %v1982_v48, %v1975_v49  ;;  %v2003_v49 = vand.u32 4294901760, %v2002_v13  ;;  %v2010_v48 = vand.u32 4294901760, %v2009_v14  ;;  %v1904_v26 = vand.u32 4294901760, %v1903_v6 }
 0x100   : > { %19058 = vmatpush3.bf16.msra.mxu0 %v21024_v60  ;;  %v21143_v59 = vsub.f32 %v1795_v9, %v21122_v1  ;;  %v2017_v14 = vand.u32 4294901760, %v2016_v16  ;;  %v1924_v6 = vand.u32 4294901760, %v1923_v30  ;;  %v1943_v9 = vsub.f32 %v21120_v44, %v1942_v25 }
 0x101   : > { %19060 = vmatprep.subr.bf16.mxu0 %v21049_v58  ;;  %v19075_v13 = vpack.c.bf16 %v2010_v48, %v2003_v49  ;;  %v1953_v34 = vsub.f32 %v21130_v46, %v1952_v43  ;;  %v19091_v30 = vpack.c.bf16 %v20886_v38, %v20881_v32  ;;  %v16208_v32 = vld [vmem:[%s23454_s4] ss:$0 sm:$0xff] }
 0x102   : > { %v1944_v49 = vand.u32 4294901760, %v1943_v9 }
 0x103   : > { %v1954_v16 = vand.u32 4294901760, %v1953_v34 }
 0x104   : > { %19062 = vmatpush3.bf16.msra.mxu0 %v21049_v58 }
 0x105   : > { %19064 = vmatprep.subr.bf16.mxu0 %v21084_v18 }
 0x108   : > { %19066 = vmatpush3.bf16.msra.mxu0 %v21084_v18 }
 0x109   : > { %19068 = vmatprep.subr.bf16.mxu0 %v19067_v17 }
 0x10b   : > { %17442 = vmatmul.mubr.f32.vlgmr.msra.gmra.mrb[4].mxu0 %v1884_v54  ;;  %v2024_v54 = vand.u32 4294901760, %v2023_v40 }
 0x10c   : > { %17444 = vmatprep.mubr.f32.mxu0 %v1894_v37  ;;  %19070 = vmatpush3.bf16.msra.mxu0 %v19067_v17  ;;  %v1962_v37 = vand.u32 4294901760, %v21143_v59  ;;  %v1934_v17 = vand.u32 4294901760, %v1933_v56 }
 0x10d   : > { %19072 = vmatprep.subr.bf16.mxu0 %v19071_v63  ;;  %v19079_v23 = vpack.c.bf16 %v2024_v54, %v2017_v14 }
 0x10e   : > { %v1963_v48 = vsub.f32 %v21143_v59, %v1962_v37 }
 0x10f   : > { %17445 = vmatmul.mubr.f32.gmra.mrb[6].mxu0 %v1904_v26  ;;  %v19087_v26 = vpack.c.bf16 %v20856_v24, %v20851_v22  ;;  %v19115_v22 = vpack.c.bf16 %v1980_v33, %v1973_v3  ;;  %v23612_v24 = vand.u32 4294901760, %v21100_v39 }
 0x110   : > { %17447 = vmatprep.mubr.f32.mxu0 %v1914_v5  ;;  %19074 = vmatpush3.bf16.msra.mxu0 %v19071_v63  ;;  %v19083_v63 = vpack.c.bf16 %v21009_v29, %v21007_v28  ;;  %v1964_v40 = vand.u32 4294901760, %v1963_v48  ;;  %v16209_v28 = vld [vmem:[%s23459_s9] ss:$0 sm:$0xff] }
 0x111   : > { %19076 = vmatprep.subr.bf16.mxu0 %v19075_v13 }
 0x113   : > { %17448 = vmatmul.mubr.f32.gmra.mrb[8].mxu0 %v1924_v6 }
 0x114   : > { %17450 = vmatprep.mubr.f32.mxu0 %v1934_v17  ;;  %19078 = vmatpush3.bf16.msra.mxu0 %v19075_v13 }
 0x115   : > { %19080 = vmatprep.subr.bf16.mxu0 %v19079_v23 }
 0x117   : > { %17451 = vmatmul.mubr.f32.gmra.mrb[10].mxu0 %v1944_v49 }
 0x118   : > { %17453 = vmatprep.mubr.f32.mxu0 %v1954_v16  ;;  %19082 = vmatpush3.bf16.msra.mxu0 %v19079_v23  ;;  %v19095_v23 = vpack.c.bf16 %v20916_v45, %v20911_v12 }
 0x119   : > { %19084 = vmatprep.subr.bf16.mxu0 %v19083_v63 }
 0x11b   : > { %17454 = vmatmul.mubr.f32.gmra.mrb[12].mxu0 %v1964_v40 }
 0x11c   : > { %17472 = vmatprep.mubr.f32.mxu0 %v20978_v19 }
 0x11f   : > { %17473 = vmatmul.mubr.f32.vlgmr.msra.gmra.mrb[4].mxu0 %v21012_v10 }
 0x120   : > { %17475 = vmatprep.mubr.f32.mxu0 %v21014_v8  ;;  %19086 = vmatpush3.bf16.msra.mxu0 %v19083_v63 }
 0x121   : > { %19088 = vmatprep.subr.bf16.mxu0 %v19087_v26 }
 0x123   : > { %17476 = vmatmul.mubr.f32.gmra.mrb[6].mxu0 %v21036_v2 }
 0x124   : > { %17478 = vmatprep.mubr.f32.mxu0 %v21039_v53  ;;  %19090 = vmatpush3.bf16.msra.mxu0 %v19087_v26 }
 0x125   : > { %19092 = vmatprep.subr.bf16.mxu0 %v19091_v30 }
 0x127   : > { %17479 = vmatmul.mubr.f32.gmra.mrb[8].mxu0 %v21067_v61 }
 0x128   : > { %17481 = vmatprep.mubr.f32.mxu0 %v21069_v36  ;;  %19094 = vmatpush3.bf16.msra.mxu0 %v19091_v30 }
 0x129   : > { %19096 = vmatprep.subr.bf16.mxu0 %v19095_v23 }
 0x12b   : > { %17482 = vmatmul.mubr.f32.gmra.mrb[10].mxu0 %v21102_v42 }
 0x12c   : > { %17484 = vmatprep.mubr.f32.mxu0 %v21105_v57  ;;  %19098 = vmatpush3.bf16.msra.mxu0 %v19095_v23 }
 0x12d   : > { %19100 = vmatprep.subr.bf16.mxu0 %v21005_v35 }
 0x12f   : > { %17485 = vmatmul.mubr.f32.gmra.mrb[12].mxu0 %v21122_v1 }
 0x130   : > { %17503 = vmatprep.mubr.f32.mxu0 %v20987_v21 }
 0x133   : > { %17504 = vmatmul.mubr.f32.vlgmr.msra.gmra.mrb[4].mxu0 %v21031_v4 }
 0x134   : > { %17506 = vmatprep.mubr.f32.mxu0 %v21034_v51  ;;  %19102 = vmatpush3.bf16.msra.mxu0 %v21005_v35 }
 0x135   : > { %19104 = vmatprep.subr.bf16.mxu0 %v21024_v60 }
 0x137   : > { %17507 = vmatmul.mubr.f32.gmra.mrb[6].mxu0 %v21061_v0  ;;  %v16210_v0 = vld [vmem:[%s23456_s6] ss:$0 sm:$0xff] }
 0x138   : > { %17509 = vmatprep.mubr.f32.mxu0 %v21065_v31  ;;  %19106 = vmatpush3.bf16.msra.mxu0 %v21024_v60 }
 0x139   : > { %19108 = vmatprep.subr.bf16.mxu0 %v21049_v58 }
 0x13b   : > { %17510 = vmatmul.mubr.f32.gmra.mrb[8].mxu0 %v21097_v20 }
 0x13c   : > { %17512 = vmatprep.mubr.f32.mxu0 %v21100_v39  ;;  %19110 = vmatpush3.bf16.msra.mxu0 %v21049_v58 }
 0x13d   : > { %19112 = vmatprep.subr.bf16.mxu0 %v21084_v18 }
 0x13f   : > { %17513 = vmatmul.mubr.f32.gmra.mrb[10].mxu0 %v21120_v44 }
 0x140   : > { %17515 = vmatprep.mubr.f32.mxu0 %v21130_v46  ;;  %19114 = vmatpush3.bf16.msra.mxu0 %v21084_v18 }
 0x141   : > { %19116 = vmatprep.subr.bf16.mxu0 %v19115_v22 }
 0x143   : > { %17516 = vmatmul.mubr.f32.gmra.mrb[12].mxu0 %v21143_v59 }
 0x144   : > { %17534 = vmatprep.mubr.f32.mxu0 %v1872_v55 }
 0x147   : > { %17535 = vmatmul.mubr.f32.vlgmr.msra.gmra.mrb[4].mxu0 %v1882_v62 }
 0x148   : > { %17537 = vmatprep.mubr.f32.mxu0 %v1892_v7  ;;  %19118 = vmatpush3.bf16.msra.mxu0 %v19115_v22 }
 0x149   : > { %19120 = vmatprep.subr.bf16.mxu0 %v20899_v50 }
 0x14b   : > { %17538 = vmatmul.mubr.f32.gmra.mrb[6].mxu0 %v1902_v27 }
 0x14c   : > { %17540 = vmatprep.mubr.f32.mxu0 %v1912_v11  ;;  %19122 = vmatpush3.bf16.msra.mxu0 %v20899_v50 }
 0x14d   : > { %19124 = vmatprep.subr.bf16.mxu0 %v20927_v47 }
 0x14f   : > { %17541 = vmatmul.mubr.f32.gmra.mrb[8].mxu0 %v1922_v52 }
 0x150   : > { %17543 = vmatprep.mubr.f32.mxu0 %v23612_v24  ;;  %19126 = vmatpush3.bf16.msra.mxu0 %v20927_v47 }
 0x151   : > { %19128 = vmatprep.subr.bf16.mxu0 %v20941_v41 }
 0x153   : > { %17544 = vmatmul.mubr.f32.gmra.mrb[10].mxu0 %v1942_v25 }
 0x154   : > { %17546 = vmatprep.mubr.f32.mxu0 %v1952_v43  ;;  %19130 = vmatpush3.bf16.msra.mxu0 %v20941_v41 }
 0x155   : > { %19132 = vmatprep.subr.bf16.mxu0 %v21005_v35 }
 0x157   : > { %17547 = vmatmul.mubr.f32.gmra.mrb[12].mxu0 %v1962_v37 }
 0x158   : > { %17565 = vmatprep.mubr.f32.mxu0 %v20978_v19 }
 0x15b   : > { %17566 = vmatmul.mubr.f32.vlgmr.msra.gmra.mrb[4].mxu0 %v21012_v10 }
 0x15c   : > { %17568 = vmatprep.mubr.f32.mxu0 %v21014_v8  ;;  %19134 = vmatpush3.bf16.msra.mxu0 %v21005_v35 }
 0x15d   : > { %19136 = vmatprep.subr.bf16.mxu0 %v21024_v60 }
 0x15f   : > { %17569 = vmatmul.mubr.f32.gmra.mrb[6].mxu0 %v21036_v2 }
 0x160   : > { %17571 = vmatprep.mubr.f32.mxu0 %v21039_v53  ;;  %19138 = vmatpush3.bf16.msra.mxu0 %v21024_v60 }
 0x161   : > { %19140 = vmatprep.subr.bf16.mxu0 %v21049_v58 }
 0x163   : > { %17572 = vmatmul.mubr.f32.gmra.mrb[8].mxu0 %v21067_v61 }
 0x164   : > { %17574 = vmatprep.mubr.f32.mxu0 %v21069_v36  ;;  %19142 = vmatpush3.bf16.msra.mxu0 %v21049_v58 }
 0x165   : > { %19144 = vmatprep.subr.bf16.mxu0 %v21084_v18 }
 0x167   : > { %17575 = vmatmul.mubr.f32.gmra.mrb[10].mxu0 %v21102_v42 }
 0x168   : > { %17577 = vmatprep.mubr.f32.mxu0 %v21105_v57  ;;  %19146 = vmatpush3.bf16.msra.mxu0 %v21084_v18 }
 0x16b   : > { %17578 = vmatmul.mubr.f32.gmra.mrb[12].mxu0 %v21122_v1 }
 0x16c   : > { %17596 = vmatprep.mubr.f32.mxu0 %v20978_v19 }
 0x16f   : > { %17597 = vmatmul.mubr.f32.vlgmr.msra.gmra.mrb[4].mxu0 %v21012_v10 }
 0x170   : > { %17599 = vmatprep.mubr.f32.mxu0 %v21014_v8 }
 0x173   : > { %17600 = vmatmul.mubr.f32.gmra.mrb[6].mxu0 %v21036_v2 }
 0x174   : > { %17602 = vmatprep.mubr.f32.mxu0 %v21039_v53 }
 0x177   : > { %17603 = vmatmul.mubr.f32.gmra.mrb[8].mxu0 %v21067_v61 }
 0x178   : > { %17605 = vmatprep.mubr.f32.mxu0 %v21069_v36 }
 0x17b   : > { %17606 = vmatmul.mubr.f32.gmra.mrb[10].mxu0 %v21102_v42 }
 0x17c   : > { %17608 = vmatprep.mubr.f32.mxu0 %v21105_v57 }
 0x17f   : > { %17609 = vmatmul.mubr.f32.gmra.mrb[12].mxu0 %v21122_v1 }
 0x1be   : > { %v17310_v38 = vpop.f32.mrb[0].mxu0 }
 0x1bf   : > { %v1129_v50 = vpop.f32.mrb[1].mxu0  ;;  %v21256_v12 = vadd.f32 %v17310_v38, %v16208_v32 }
 0x1c0   : > { %v19436_v45 = vadd.f32 %v16208_v32, %v1129_v50 }
 0x1c1   : > { %v1144_v19 = vmul.f32 0.01, %v21256_v12  ;;  %vm1142_vm2 = vcmp.ge.f32.partialorder %v21256_v12, 0.0 }
 0x1c2   : > { %vm1141_vm1 = vcmp.ge.f32.partialorder %v19436_v45, 0.0  ;;  %v1143_v47 = vmul.f32 0.01, %v19436_v45  ;;  %20015 = vtanh.f32 %v19436_v45 }
 0x1c3   : > { %v17424_v21 = vpop.f32.mrb[0].mxu1  ;;  %v1146_v35 = vsel %vm1142_vm2, %v21256_v12, %v1144_v19  ;;  %20017 = vtanh.f32 %v21256_v12 }
 0x1c4   : > { %v1145_v41 = vsel %vm1141_vm1, %v19436_v45, %v1143_v47  ;;  %v1742_v55 = vpop.f32.mrb[1].mxu1 }
 0x1c5   : > { %1149 = vrot.lane.b32.xlu0 %v1145_v41, %s20293_s29 }
 0x1c9   : > { %1151 = vrot.lane.b32.xlu0 %v1146_v35, %s20293_s29 }
 0x1cc   : > { %v20016_v4 = vpop.eup %20015 }
 0x1cd   : > { %v20018_v19 = vpop.eup %20017 }
 0x1ce   : > { %v17329_v29 = vpop.f32.mrb[2].mxu0 }
 0x1cf   : > { %v1262_v10 = vadd.f32 %v17329_v29, %v16209_v28  ;;  %v1251_v8 = vpop.f32.mrb[3].mxu0 }
 0x1d0   : > { %v1252_v60 = vadd.f32 %v16209_v28, %v1251_v8 }
 0x1d1   : > { %v21266_v3 = vadd.f32 %v17424_v21, %v1262_v10 }
 0x1d2   : > { %v21268_v33 = vadd.f32 %v1742_v55, %v1252_v60 }
 0x1d3   : > { %23613 = vst [vmem:[#allocation12_spill] sm:$0xff] %v21266_v3 }
 0x1d4   : > { %23614 = vst [vmem:[#allocation13_spill] sm:$0xff] %v21268_v33 }
 0x237   : > { %v1150_v51 = vpop.permute.xlu0 %1149 }
 0x238   : > { %v1155_v2 = vmul.f32 %v20016_v4, %v1150_v51 }
 0x23a   : > { %v2813_v53 = vsel %vm2811_vm3, %v1155_v2, 0 }
 0x23b   : > { %v21271_v58 = vand.u32 4294901760, %v2813_v53  ;;  %v1152_v41 = vpop.permute.xlu0 %1151 }
 0x23c   : > { %v1156_v21 = vmul.f32 %v20018_v19, %v1152_v41 }
 0x23d   : > { %v21274_v62 = vsub.f32 %v2813_v53, %v21271_v58 }
 0x23e   : > { %v2816_v55 = vsel %vm2811_vm3, %v1156_v21, 0 }
 0x23f   : > { %v21277_v7 = vand.u32 4294901760, %v21274_v62  ;;  %v21336_v35 = vand.u32 4294901760, %v2816_v55 }
 0x241   : > { %v2890_v31 = vsub.f32 %v21274_v62, %v21277_v7  ;;  %v21339_v28 = vsub.f32 %v2816_v55, %v21336_v35 }
 0x242   : > { %v17598_v61 = vpop.f32.mrb[4].mxu0 }
 0x243   : > { %v2663_v36 = vpop.f32.mrb[5].mxu0  ;;  %v21284_v18 = vand.u32 4294901760, %v2890_v31  ;;  %v21286_v27 = vadd.f32 %v17598_v61, %v16210_v0  ;;  %v21342_v10 = vand.u32 4294901760, %v21339_v28 }
 0x244   : > { %v21288_v11 = vadd.f32 %v16210_v0, %v2663_v36 }
 0x245   : > { %17613 = vmatprep.mubr.f32.mxu1 %v21284_v18  ;;  %17793 = vmatprep.mubr.f32.mxu0 %v21284_v18  ;;  %v2742_v1 = vmul.f32 0.01, %v21286_v27  ;;  %vm2732_vm5 = vcmp.ge.f32.partialorder %v21286_v27, 0.0  ;;  %v2900_v53 = vsub.f32 %v21339_v28, %v21342_v10 }
 0x246   : > { %v17601_v20 = vpop.f32.mrb[6].mxu0  ;;  %vm2731_vm4 = vcmp.ge.f32.partialorder %v21288_v11, 0.0  ;;  %v2741_v39 = vmul.f32 0.01, %v21288_v11  ;;  %20019 = vtanh.f32 %v21288_v11 }
 0x247   : > { %v21294_v42 = vadd.f32 %v17601_v20, %v16210_v0  ;;  %v2675_v57 = vpop.f32.mrb[7].mxu0  ;;  %v2752_v13 = vsel %vm2732_vm5, %v21286_v27, %v2742_v1 }
 0x248   : > { %v19444_v52 = vadd.f32 %v16210_v0, %v2675_v57  ;;  %v2751_v44 = vsel %vm2731_vm4, %v21288_v11, %v2741_v39  ;;  %v21354_v11 = vand.u32 4294901760, %v2900_v53 }
 0x249   : > { %2771 = vrot.lane.b32.xlu1 %v2751_v44, %s20293_s29  ;;  %v2744_v56 = vmul.f32 0.01, %v21294_v42  ;;  %vm2734_vm7 = vcmp.ge.f32.partialorder %v21294_v42, 0.0 }
 0x24a   : > { %v17604_v46 = vpop.f32.mrb[8].mxu0  ;;  %vm2733_vm6 = vcmp.ge.f32.partialorder %v19444_v52, 0.0  ;;  %v2743_v25 = vmul.f32 0.01, %v19444_v52  ;;  %20021 = vtanh.f32 %v19444_v52 }
 0x24b   : > { %v21300_v59 = vadd.f32 %v17604_v46, %v16210_v0  ;;  %v2687_v5 = vpop.f32.mrb[9].mxu0  ;;  %v2754_v37 = vsel %vm2734_vm7, %v21294_v42, %v2744_v56 }
 0x24c   : > { %v19446_v43 = vadd.f32 %v16210_v0, %v2687_v5  ;;  %v2753_v14 = vsel %vm2733_vm6, %v19444_v52, %v2743_v25 }
 0x24d   : > { %2773 = vrot.lane.b32.xlu1 %v2752_v13, %s20293_s29  ;;  %2775 = vrot.lane.b32.xlu0 %v2753_v14, %s20293_s29  ;;  %v2746_v17 = vmul.f32 0.01, %v21300_v59  ;;  %vm2736_vm9 = vcmp.ge.f32.partialorder %v21300_v59, 0.0 }
 0x24e   : > { %v17607_v54 = vpop.f32.mrb[10].mxu0  ;;  %vm2735_vm8 = vcmp.ge.f32.partialorder %v19446_v43, 0.0  ;;  %v2745_v6 = vmul.f32 0.01, %v19446_v43  ;;  %20023 = vtanh.f32 %v19446_v43 }
 0x24f   : > { %v2699_v9 = vpop.f32.mrb[11].mxu0  ;;  %v21309_v34 = vadd.f32 %v17607_v54, %v16210_v0  ;;  %v2756_v26 = vsel %vm2736_vm9, %v21300_v59, %v2746_v17 }
 0x250   : > { %v19448_v49 = vadd.f32 %v16210_v0, %v2699_v9  ;;  %v2755_v48 = vsel %vm2735_vm8, %v19446_v43, %v2745_v6  ;;  %v20020_v29 = vpop.eup %20019 }
 0x251   : > { %2777 = vrot.lane.b32.xlu1 %v2754_v37, %s20293_s29  ;;  %2779 = vrot.lane.b32.xlu0 %v2755_v48, %s20293_s29  ;;  %v2748_v24 = vmul.f32 0.01, %v21309_v34  ;;  %vm2738_vm11 = vcmp.ge.f32.partialorder %v21309_v34, 0.0 }
 0x252   : > { %v17610_v16 = vpop.f32.mrb[12].mxu0  ;;  %vm2737_vm10 = vcmp.ge.f32.partialorder %v19448_v49, 0.0  ;;  %v2747_v63 = vmul.f32 0.01, %v19448_v49  ;;  %20025 = vtanh.f32 %v19448_v49 }
 0x253   : > { %v2711_v40 = vpop.f32.mrb[13].mxu0  ;;  %v21315_v30 = vadd.f32 %v17610_v16, %v16210_v0  ;;  %v2758_v38 = vsel %vm2738_vm11, %v21309_v34, %v2748_v24  ;;  %20027 = vtanh.f32 %v21286_v27 }
 0x254   : > { %v21317_v23 = vadd.f32 %v16210_v0, %v2711_v40  ;;  %v2757_v22 = vsel %vm2737_vm10, %v19448_v49, %v2747_v63  ;;  %v20022_v4 = vpop.eup %20021 }
 0x255   : > { %2781 = vrot.lane.b32.xlu1 %v2756_v26, %s20293_s29  ;;  %2783 = vrot.lane.b32.xlu0 %v2757_v22, %s20293_s29  ;;  %v2750_v45 = vmul.f32 0.01, %v21315_v30  ;;  %vm2740_vm13 = vcmp.ge.f32.partialorder %v21315_v30, 0.0 }
 0x256   : > { %vm2739_vm12 = vcmp.ge.f32.partialorder %v21317_v23, 0.0  ;;  %v2749_v32 = vmul.f32 0.01, %v21317_v23  ;;  %20029 = vtanh.f32 %v21317_v23 }
 0x257   : > { %v2760_v47 = vsel %vm2740_vm13, %v21315_v30, %v2750_v45  ;;  %20031 = vtanh.f32 %v21294_v42 }
 0x258   : > { %v2759_v50 = vsel %vm2739_vm12, %v21317_v23, %v2749_v32  ;;  %v20024_v61 = vpop.eup %20023  ;;  %20033 = vtanh.f32 %v21300_v59 }
 0x259   : > { %2785 = vrot.lane.b32.xlu1 %v2758_v38, %s20293_s29  ;;  %2787 = vrot.lane.b32.xlu0 %v2759_v50, %s20293_s29  ;;  %20035 = vtanh.f32 %v21309_v34  ;;  %v527_v34 = vld [vmem:[%s21500_s10] sm:$0x1] }
 0x25a   : > { %20037 = vtanh.f32 %v21315_v30 }
 0x25c   : > { %v20026_v52 = vpop.eup %20025 }
 0x25d   : > { %2789 = vrot.lane.b32.xlu1 %v2760_v47, %s20293_s29  ;;  %v20028_v54 = vpop.eup %20027  ;;  %s23738_s29 = sld [smem:[#allocation34_spill]] }
 0x260   : > { %v20030_v48 = vpop.eup %20029 }
 0x263   : > { %s23376_s14 = scalar_lea.vmem %s23738_s29, %s19941_s20 }
 0x2bb   : > { %v2772_v8 = vpop.permute.xlu1 %2771 }
 0x2bc   : > { %v2801_v12 = vmul.f32 %v20020_v29, %v2772_v8  ;;  %v21440_v29 = vand.u32 4294901760, %v20968_v15  ;;  %v20032_v8 = vpop.eup %20031 }
 0x2be   : > { %v2819_v60 = vsel %vm2811_vm3, %v2801_v12, 0 }
 0x2bf   : > { %v21345_v51 = vand.u32 4294901760, %v2819_v60  ;;  %v2776_v2 = vpop.permute.xlu0 %2775  ;;  %v2774_v27 = vpop.permute.xlu1 %2773 }
 0x2c0   : > { %v21349_v0 = vmul.f32 %v20022_v4, %v2776_v2  ;;  %v2802_v6 = vmul.f32 %v20028_v54, %v2774_v27  ;;  %v7748_v27 = vlaneseq }
 0x2c1   : > { %v2909_v31 = vsub.f32 %v2819_v60, %v21345_v51  ;;  %17611 = vmatprep.subr.mxu1 %v21345_v51 }
 0x2c2   : > { %17612 = vmatpush3.xpose.msra.mxu1 %v21345_v51  ;;  %v3311_v9 = vsel %vm2811_vm3, %v2802_v6, 0  ;;  %v3803_v45 = vsel %vm2811_vm3, %v21349_v0, 0  ;;  %v7749_v54 = vshrl.u32 %v7748_v27, 7 }
 0x2c3   : > { %v2780_v36 = vpop.permute.xlu0 %2779  ;;  %v2910_v20 = vand.u32 4294901760, %v2909_v31  ;;  %v21380_v37 = vand.u32 4294901760, %v3311_v9  ;;  %v3806_v47 = vand.u32 4294901760, %v3803_v45  ;;  %v2778_v15 = vpop.permute.xlu1 %2777 }
 0x2c4   : > { %v21356_v39 = vmul.f32 %v20024_v61, %v2780_v36  ;;  %v2804_v12 = vmul.f32 %v20032_v8, %v2778_v15 }
 0x2c5   : > { %17614 = vmatmul.mubr.f32.vlgmr.msra.gmra.mrb[2].mxu1 %v21354_v11  ;;  %v2911_v57 = vsub.f32 %v2909_v31, %v2910_v20  ;;  %v3401_v17 = vsub.f32 %v3311_v9, %v21380_v37  ;;  %v3893_v41 = vsub.f32 %v3803_v45, %v3806_v47  ;;  %v16211_v9 = vadd.f32 -1.0, %v527_v34 }
 0x2c6   : > { %17618 = vmatprep.mubr.f32.mxu1 %v21271_v58  ;;  %v4295_v42 = vsel %vm2811_vm3, %v2804_v12, 0  ;;  %v4787_v0 = vsel %vm2811_vm3, %v21356_v39, 0  ;;  %v528_v12 = vld [vmem:[%s21500_s10 + $0x1] sm:$0x1] }
 0x2c7   : > { %v2784_v44 = vpop.permute.xlu0 %2783  ;;  %v2912_v1 = vand.u32 4294901760, %v2911_v57  ;;  %v3402_v63 = vand.u32 4294901760, %v3401_v17  ;;  %v3894_v19 = vand.u32 4294901760, %v3893_v41  ;;  %v4298_v60 = vand.u32 4294901760, %v4295_v42  ;;  %v2782_v39 = vpop.permute.xlu1 %2781 }
 0x2c8   : > { %v2807_v46 = vmul.f32 %v20026_v52, %v2784_v44  ;;  %v20034_v52 = vpop.eup %20033 }
 0x2c9   : > { %17616 = vmatprep.subr.mxu1 %v2912_v1  ;;  %v3403_v26 = vsub.f32 %v3401_v17, %v3402_v63  ;;  %v3895_v21 = vsub.f32 %v3893_v41, %v3894_v19  ;;  %v4385_v4 = vsub.f32 %v4295_v42, %v4298_v60  ;;  %v2806_v44 = vmul.f32 %v20034_v52, %v2782_v39 }
 0x2ca   : > { %v5771_v25 = vsel %vm2811_vm3, %v2807_v46, 0  ;;  %17617 = vmatpush3.xpose.msra.mxu1 %v2912_v1  ;;  %v16212_v42 = vadd.f32 -1.0, %v528_v12 }
 0x2cb   : > { %v21362_v5 = vand.u32 4294901760, %v5771_v25  ;;  %17621 = vmatprep.subr.mxu1 %v2909_v31  ;;  %v2788_v49 = vpop.permute.xlu0 %2787  ;;  %v3404_v22 = vand.u32 4294901760, %v3403_v26  ;;  %v3896_v55 = vand.u32 4294901760, %v3895_v21  ;;  %v5279_v1 = vsel %vm2811_vm3, %v2806_v44, 0 }
 0x2cc   : > { %v2809_v16 = vmul.f32 %v20030_v48, %v2788_v49  ;;  %v5282_v46 = vand.u32 4294901760, %v5279_v1  ;;  %v7828_v49 = vmul.f32 10000.0, %v16211_v9  ;;  %v530_v9 = vld [vmem:[%s21500_s10 + $0x3] sm:$0x1] }
 0x2cd   : > { %v5861_v56 = vsub.f32 %v5771_v25, %v21362_v5  ;;  %17619 = vmatmul.mubr.f32.vlgmr.msra.gmra.mrb[2].mxu1 %v21336_v35  ;;  %17791 = vmatprep.subr.mxu0 %v21362_v5 }
 0x2ce   : > { %17622 = vmatpush3.xpose.msra.mxu1 %v2909_v31  ;;  %17623 = vmatprep.mubr.f32.mxu1 %v21274_v62  ;;  %v6755_v40 = vsel %vm2811_vm3, %v2809_v16, 0  ;;  %v4790_v31 = vand.u32 4294901760, %v4787_v0  ;;  %v5369_v59 = vsub.f32 %v5279_v1, %v5282_v46 }
 0x2cf   : > { %17792 = vmatpush3.xpose.msra.mxu0 %v21362_v5  ;;  %17626 = vmatprep.subr.mxu1 %v21345_v51  ;;  %v5862_v43 = vand.u32 4294901760, %v5861_v56  ;;  %v21395_v23 = vand.u32 4294901760, %v6755_v40 }
 0x2d0   : > { %v4877_v61 = vsub.f32 %v4787_v0, %v4790_v31  ;;  %v5370_v25 = vand.u32 4294901760, %v5369_v59 }
 0x2d1   : > { %v5863_v13 = vsub.f32 %v5861_v56, %v5862_v43  ;;  %v6845_v24 = vsub.f32 %v6755_v40, %v21395_v23 }
 0x2d2   : > { %17794 = vmatmul.mubr.f32.vlgmr.msra.gmra.mrb[14].mxu0 %v21354_v11  ;;  %v4878_v36 = vand.u32 4294901760, %v4877_v61 }
 0x2d3   : > { %17798 = vmatprep.mubr.f32.mxu0 %v21271_v58  ;;  %v5864_v14 = vand.u32 4294901760, %v5863_v13  ;;  %v6846_v32 = vand.u32 4294901760, %v6845_v24  ;;  %v20036_v13 = vpop.eup %20035 }
 0x2d4   : > { %v20038_v15 = vpop.eup %20037 }
 0x2d5   : > { %17624 = vmatmul.mubr.f32.vlgmr.msra.gmra.mrb[2].mxu1 %v21339_v28  ;;  %17796 = vmatprep.subr.mxu0 %v5864_v14  ;;  %v6847_v38 = vsub.f32 %v6845_v24, %v6846_v32 }
 0x2d6   : > { %17627 = vmatpush3.xpose.msra.mxu1 %v21345_v51  ;;  %17628 = vmatprep.mubr.f32.mxu1 %v21277_v7 }
 0x2d7   : > { %17631 = vmatprep.subr.mxu1 %v2910_v20  ;;  %17797 = vmatpush3.xpose.msra.mxu0 %v5864_v14  ;;  %v6848_v50 = vand.u32 4294901760, %v6847_v38 }
 0x2d8   : > { %17801 = vmatprep.subr.mxu0 %v5861_v56 }
 0x2da   : > { %17799 = vmatmul.mubr.f32.vlgmr.msra.gmra.mrb[14].mxu0 %v21336_v35 }
 0x2db   : > { %17802 = vmatpush3.xpose.msra.mxu0 %v5861_v56  ;;  %17803 = vmatprep.mubr.f32.mxu0 %v21274_v62 }
 0x2dc   : > { %17806 = vmatprep.subr.mxu0 %v21362_v5 }
 0x2dd   : > { %17629 = vmatmul.mubr.f32.vlgmr.msra.gmra.mrb[2].mxu1 %v21342_v10 }
 0x2de   : > { %17632 = vmatpush3.xpose.msra.mxu1 %v2910_v20  ;;  %17633 = vmatprep.mubr.f32.mxu1 %v21271_v58  ;;  %v4879_v20 = vsub.f32 %v4877_v61, %v4878_v36 }
 0x2df   : > { %17636 = vmatprep.subr.mxu1 %v21345_v51 }
 0x2e0   : > { %v4880_v57 = vand.u32 4294901760, %v4879_v20 }
 0x2e2   : > { %17804 = vmatmul.mubr.f32.vlgmr.msra.gmra.mrb[14].mxu0 %v21339_v28 }
 0x2e3   : > { %17807 = vmatpush3.xpose.msra.mxu0 %v21362_v5  ;;  %17808 = vmatprep.mubr.f32.mxu0 %v21277_v7 }
 0x2e4   : > { %17811 = vmatprep.subr.mxu0 %v5862_v43 }
 0x2e5   : > { %17634 = vmatmul.mubr.f32.vlgmr.msra.gmra.mrb[2].mxu1 %v21336_v35 }
 0x2e6   : > { %17637 = vmatpush3.xpose.msra.mxu1 %v21345_v51  ;;  %17638 = vmatprep.mubr.f32.mxu1 %v21271_v58  ;;  %v4386_v51 = vand.u32 4294901760, %v4385_v4 }
 0x2e7   : > { %17641 = vmatprep.subr.mxu1 %v21380_v37 }
 0x2e8   : > { %v4387_v2 = vsub.f32 %v4385_v4, %v4386_v51 }
 0x2ea   : > { %17809 = vmatmul.mubr.f32.vlgmr.msra.gmra.mrb[14].mxu0 %v21342_v10  ;;  %v4388_v53 = vand.u32 4294901760, %v4387_v2 }
 0x2eb   : > { %17812 = vmatpush3.xpose.msra.mxu0 %v5862_v43  ;;  %17813 = vmatprep.mubr.f32.mxu0 %v21271_v58  ;;  %v2786_v43 = vpop.permute.xlu1 %2785 }
 0x2ec   : > { %17816 = vmatprep.subr.mxu0 %v21362_v5  ;;  %v2808_v14 = vmul.f32 %v20036_v13, %v2786_v43  ;;  %v21576_v43 = vld [vmem:[%s20960_s19 + $0x8] sm:$0xff] }
 0x2ed   : > { %17639 = vmatmul.mubr.f32.vlgmr.msra.gmra.mrb[2].mxu1 %v21336_v35 }
 0x2ee   : > { %17642 = vmatpush3.xpose.msra.mxu1 %v21380_v37  ;;  %17643 = vmatprep.mubr.f32.mxu1 %v21284_v18  ;;  %v6263_v6 = vsel %vm2811_vm3, %v2808_v14, 0 }
 0x2ef   : > { %17646 = vmatprep.subr.mxu1 %v3404_v22 }
 0x2f1   : > { %17644 = vmatmul.mubr.f32.vlgmr.msra.gmra.mrb[4].mxu1 %v21354_v11 }
 0x2f2   : > { %17647 = vmatpush3.xpose.msra.mxu1 %v3404_v22  ;;  %17814 = vmatmul.mubr.f32.vlgmr.msra.gmra.mrb[14].mxu0 %v21336_v35 }
 0x2f3   : > { %17817 = vmatpush3.xpose.msra.mxu0 %v21362_v5  ;;  %17648 = vmatprep.mubr.f32.mxu1 %v21271_v58  ;;  %v5371_v5 = vsub.f32 %v5369_v59, %v5370_v25 }
 0x2f4   : > { %17651 = vmatprep.subr.mxu1 %v3401_v17  ;;  %17818 = vmatprep.mubr.f32.mxu0 %v21271_v58 }
 0x2f5   : > { %17851 = vmatprep.subr.mxu0 %v21395_v23  ;;  %v5372_v56 = vand.u32 4294901760, %v5371_v5 }
 0x2f9   : > { %17649 = vmatmul.mubr.f32.vlgmr.msra.gmra.mrb[4].mxu1 %v21336_v35 }
 0x2fa   : > { %17652 = vmatpush3.xpose.msra.mxu1 %v3401_v17  ;;  %17819 = vmatmul.mubr.f32.vlgmr.msra.gmra.mrb[14].mxu0 %v21336_v35  ;;  %v21508_v17 = vsub.s32 0, %v7749_v54 }
 0x2fb   : > { %17852 = vmatpush3.xpose.msra.mxu0 %v21395_v23  ;;  %17653 = vmatprep.mubr.f32.mxu1 %v21274_v62 }
 0x2fc   : > { %17656 = vmatprep.subr.mxu1 %v21380_v37  ;;  %17853 = vmatprep.mubr.f32.mxu0 %v21284_v18  ;;  %v7751_v16 = vrot.slane %v527_v34, %v21508_v17  ;;  %v7755_v2 = vrot.slane %v528_v12, %v21508_v17 }
 0x2fd   : > { %17856 = vmatprep.subr.mxu0 %v6848_v50 }
 0x2fe   : > { %17854 = vmatmul.mubr.f32.vlgmr.msra.gmra.mrb[16].mxu0 %v21354_v11 }
 0x2ff   : > { %17857 = vmatpush3.xpose.msra.mxu0 %v6848_v50  ;;  %17858 = vmatprep.mubr.f32.mxu0 %v21271_v58 }
 0x300   : > { %17861 = vmatprep.subr.mxu0 %v6845_v24 }
 0x301   : > { %17654 = vmatmul.mubr.f32.vlgmr.msra.gmra.mrb[4].mxu1 %v21339_v28 }
 0x302   : > { %17657 = vmatpush3.xpose.msra.mxu1 %v21380_v37  ;;  %17658 = vmatprep.mubr.f32.mxu1 %v21277_v7 }
 0x303   : > { %17661 = vmatprep.subr.mxu1 %v3402_v63 }
 0x306   : > { %17859 = vmatmul.mubr.f32.vlgmr.msra.gmra.mrb[16].mxu0 %v21336_v35 }
 0x307   : > { %17862 = vmatpush3.xpose.msra.mxu0 %v6845_v24  ;;  %17863 = vmatprep.mubr.f32.mxu0 %v21274_v62 }
 0x308   : > { %17866 = vmatprep.subr.mxu0 %v21395_v23 }
 0x309   : > { %17659 = vmatmul.mubr.f32.vlgmr.msra.gmra.mrb[4].mxu1 %v21342_v10 }
 0x30a   : > { %17662 = vmatpush3.xpose.msra.mxu1 %v3402_v63  ;;  %17663 = vmatprep.mubr.f32.mxu1 %v21271_v58  ;;  %v7851_v63 = vrot.slane %v7828_v49, %v21508_v17  ;;  %v7763_v49 = vrot.slane %v530_v9, %v21508_v17 }
 0x30b   : > { %17666 = vmatprep.subr.mxu1 %v21380_v37 }
 0x30e   : > { %17864 = vmatmul.mubr.f32.vlgmr.msra.gmra.mrb[16].mxu0 %v21339_v28 }
 0x30f   : > { %17867 = vmatpush3.xpose.msra.mxu0 %v21395_v23  ;;  %17868 = vmatprep.mubr.f32.mxu0 %v21277_v7 }
 0x310   : > { %17871 = vmatprep.subr.mxu0 %v6846_v32 }
 0x311   : > { %17664 = vmatmul.mubr.f32.vlgmr.msra.gmra.mrb[4].mxu1 %v21336_v35 }
 0x312   : > { %17667 = vmatpush3.xpose.msra.mxu1 %v21380_v37  ;;  %17668 = vmatprep.mubr.f32.mxu1 %v21271_v58  ;;  %v21505_v37 = vand.u32 4294901760, %v6263_v6 }
 0x313   : > { %17671 = vmatprep.subr.mxu1 %v3806_v47 }
 0x314   : > { %v6353_v48 = vsub.f32 %v6263_v6, %v21505_v37 }
 0x316   : > { %17869 = vmatmul.mubr.f32.vlgmr.msra.gmra.mrb[16].mxu0 %v21342_v10  ;;  %v6354_v22 = vand.u32 4294901760, %v6353_v48 }
 0x317   : > { %17872 = vmatpush3.xpose.msra.mxu0 %v6846_v32  ;;  %17873 = vmatprep.mubr.f32.mxu0 %v21271_v58 }
 0x318   : > { %17876 = vmatprep.subr.mxu0 %v21395_v23  ;;  %v6355_v45 = vsub.f32 %v6353_v48, %v6354_v22 }
 0x319   : > { %17669 = vmatmul.mubr.f32.vlgmr.msra.gmra.mrb[4].mxu1 %v21336_v35 }
 0x31a   : > { %17672 = vmatpush3.xpose.msra.mxu1 %v3806_v47  ;;  %17673 = vmatprep.mubr.f32.mxu1 %v21284_v18 }
 0x31b   : > { %17676 = vmatprep.subr.mxu1 %v3896_v55 }
 0x31d   : > { %17674 = vmatmul.mubr.f32.vlgmr.msra.gmra.mrb[6].mxu1 %v21354_v11 }
 0x31e   : > { %17677 = vmatpush3.xpose.msra.mxu1 %v3896_v55  ;;  %17874 = vmatmul.mubr.f32.vlgmr.msra.gmra.mrb[16].mxu0 %v21336_v35  ;;  %v2790_v55 = vpop.permute.xlu1 %2789 }
 0x31f   : > { %17877 = vmatpush3.xpose.msra.mxu0 %v21395_v23  ;;  %17678 = vmatprep.mubr.f32.mxu1 %v21271_v58  ;;  %v2810_v8 = vmul.f32 %v20038_v15, %v2790_v55 }
 0x320   : > { %17681 = vmatprep.subr.mxu1 %v3893_v41  ;;  %17878 = vmatprep.mubr.f32.mxu0 %v21271_v58 }
 0x321   : > { %17911 = vmatprep.subr.mxu0 %v21440_v29  ;;  %v7247_v30 = vsel %vm2811_vm3, %v2810_v8, 0 }
 0x325   : > { %17679 = vmatmul.mubr.f32.vlgmr.msra.gmra.mrb[6].mxu1 %v21336_v35 }
 0x326   : > { %17682 = vmatpush3.xpose.msra.mxu1 %v3893_v41  ;;  %17879 = vmatmul.mubr.f32.vlgmr.msra.gmra.mrb[16].mxu0 %v21336_v35  ;;  %v6356_v41 = vand.u32 4294901760, %v6355_v45 }
 0x327   : > { %17683 = vmatprep.mubr.f32.mxu1 %v21274_v62  ;;  %17686 = vmatprep.subr.mxu1 %v3806_v47 }
 0x328   : > { %17912 = vmatpush3.msra.mxu0 %v21440_v29 }
 0x32d   : > { %17684 = vmatmul.mubr.f32.vlgmr.msra.gmra.mrb[6].mxu1 %v21339_v28 }
 0x32e   : > { %17687 = vmatpush3.xpose.msra.mxu1 %v3806_v47  ;;  %17688 = vmatprep.mubr.f32.mxu1 %v21277_v7 }
 0x32f   : > { %17691 = vmatprep.subr.mxu1 %v3894_v19 }
 0x335   : > { %17689 = vmatmul.mubr.f32.vlgmr.msra.gmra.mrb[6].mxu1 %v21342_v10 }
 0x336   : > { %17692 = vmatpush3.xpose.msra.mxu1 %v3894_v19  ;;  %17693 = vmatprep.mubr.f32.mxu1 %v21271_v58 }
 0x337   : > { %17696 = vmatprep.subr.mxu1 %v3806_v47 }
 0x33d   : > { %17694 = vmatmul.mubr.f32.vlgmr.msra.gmra.mrb[6].mxu1 %v21336_v35 }
 0x33e   : > { %17697 = vmatpush3.xpose.msra.mxu1 %v3806_v47  ;;  %17698 = vmatprep.mubr.f32.mxu1 %v21271_v58 }
 0x33f   : > { %17701 = vmatprep.subr.mxu1 %v4298_v60 }
 0x345   : > { %17699 = vmatmul.mubr.f32.vlgmr.msra.gmra.mrb[6].mxu1 %v21336_v35 }
 0x346   : > { %17702 = vmatpush3.xpose.msra.mxu1 %v4298_v60  ;;  %17703 = vmatprep.mubr.f32.mxu1 %v21284_v18 }
 0x347   : > { %17706 = vmatprep.subr.mxu1 %v4388_v53 }
 0x349   : > { %17704 = vmatmul.mubr.f32.vlgmr.msra.gmra.mrb[8].mxu1 %v21354_v11 }
 0x34a   : > { %17707 = vmatpush3.xpose.msra.mxu1 %v4388_v53  ;;  %17708 = vmatprep.mubr.f32.mxu1 %v21271_v58 }
 0x34b   : > { %17711 = vmatprep.subr.mxu1 %v4385_v4 }
 0x351   : > { %17709 = vmatmul.mubr.f32.vlgmr.msra.gmra.mrb[8].mxu1 %v21336_v35 }
 0x352   : > { %17712 = vmatpush3.xpose.msra.mxu1 %v4385_v4  ;;  %17713 = vmatprep.mubr.f32.mxu1 %v21274_v62  ;;  %v7829_v4 = vmul.f32 10000.0, %v16212_v42  ;;  %v531_v42 = vld [vmem:[%s21500_s10 + $0x4] sm:$0x1] }
 0x353   : > { %17716 = vmatprep.subr.mxu1 %v4298_v60 }
 0x354   : > { %v7855_v0 = vrot.slane %v7829_v4, %v21508_v17 }
 0x359   : > { %17714 = vmatmul.mubr.f32.vlgmr.msra.gmra.mrb[8].mxu1 %v21339_v28 }
 0x35a   : > { %17717 = vmatpush3.xpose.msra.mxu1 %v4298_v60  ;;  %17718 = vmatprep.mubr.f32.mxu1 %v21277_v7 }
 0x35b   : > { %17721 = vmatprep.subr.mxu1 %v4386_v51 }
 0x361   : > { %17719 = vmatmul.mubr.f32.vlgmr.msra.gmra.mrb[8].mxu1 %v21342_v10 }
 0x362   : > { %17722 = vmatpush3.xpose.msra.mxu1 %v4386_v51  ;;  %17723 = vmatprep.mubr.f32.mxu1 %v21271_v58 }
 0x363   : > { %17726 = vmatprep.subr.mxu1 %v4298_v60 }
 0x369   : > { %17724 = vmatmul.mubr.f32.vlgmr.msra.gmra.mrb[8].mxu1 %v21336_v35 }
 0x36a   : > { %17727 = vmatpush3.xpose.msra.mxu1 %v4298_v60  ;;  %17728 = vmatprep.mubr.f32.mxu1 %v21271_v58  ;;  %v7250_v60 = vand.u32 4294901760, %v7247_v30 }
 0x36b   : > { %17731 = vmatprep.subr.mxu1 %v4790_v31 }
 0x36c   : > { %v7337_v51 = vsub.f32 %v7247_v30, %v7250_v60 }
 0x371   : > { %17729 = vmatmul.mubr.f32.vlgmr.msra.gmra.mrb[8].mxu1 %v21336_v35 }
 0x372   : > { %17732 = vmatpush3.xpose.msra.mxu1 %v4790_v31  ;;  %17733 = vmatprep.mubr.f32.mxu1 %v21284_v18 }
 0x373   : > { %17736 = vmatprep.subr.mxu1 %v4880_v57 }
 0x375   : > { %17734 = vmatmul.mubr.f32.vlgmr.msra.gmra.mrb[10].mxu1 %v21354_v11 }
 0x376   : > { %17737 = vmatpush3.xpose.msra.mxu1 %v4880_v57  ;;  %17738 = vmatprep.mubr.f32.mxu1 %v21271_v58 }
 0x377   : > { %17741 = vmatprep.subr.mxu1 %v4877_v61 }
 0x37d   : > { %17739 = vmatmul.mubr.f32.vlgmr.msra.gmra.mrb[10].mxu1 %v21336_v35 }
 0x37e   : > { %17742 = vmatpush3.xpose.msra.mxu1 %v4877_v61  ;;  %17743 = vmatprep.mubr.f32.mxu1 %v21274_v62  ;;  %v7338_v61 = vand.u32 4294901760, %v7337_v51 }
 0x37f   : > { %17746 = vmatprep.subr.mxu1 %v4790_v31 }
 0x380   : > { %v7339_v39 = vsub.f32 %v7337_v51, %v7338_v61 }
 0x382   : > { %v7340_v1 = vand.u32 4294901760, %v7339_v39 }
 0x385   : > { %17744 = vmatmul.mubr.f32.vlgmr.msra.gmra.mrb[10].mxu1 %v21339_v28 }
 0x386   : > { %17747 = vmatpush3.xpose.msra.mxu1 %v4790_v31  ;;  %17748 = vmatprep.mubr.f32.mxu1 %v21277_v7 }
 0x387   : > { %17751 = vmatprep.subr.mxu1 %v4878_v36 }
 0x38d   : > { %17749 = vmatmul.mubr.f32.vlgmr.msra.gmra.mrb[10].mxu1 %v21342_v10 }
 0x38e   : > { %17752 = vmatpush3.xpose.msra.mxu1 %v4878_v36  ;;  %17753 = vmatprep.mubr.f32.mxu1 %v21271_v58 }
 0x38f   : > { %17756 = vmatprep.subr.mxu1 %v4790_v31 }
 0x395   : > { %17754 = vmatmul.mubr.f32.vlgmr.msra.gmra.mrb[10].mxu1 %v21336_v35 }
 0x396   : > { %17757 = vmatpush3.xpose.msra.mxu1 %v4790_v31  ;;  %17758 = vmatprep.mubr.f32.mxu1 %v21271_v58 }
 0x397   : > { %17761 = vmatprep.subr.mxu1 %v5282_v46 }
 0x39d   : > { %17759 = vmatmul.mubr.f32.vlgmr.msra.gmra.mrb[10].mxu1 %v21336_v35 }
 0x39e   : > { %17762 = vmatpush3.xpose.msra.mxu1 %v5282_v46  ;;  %17763 = vmatprep.mubr.f32.mxu1 %v21284_v18 }
 0x39f   : > { %17766 = vmatprep.subr.mxu1 %v5372_v56 }
 0x3a1   : > { %17764 = vmatmul.mubr.f32.vlgmr.msra.gmra.mrb[12].mxu1 %v21354_v11 }
 0x3a2   : > { %17767 = vmatpush3.xpose.msra.mxu1 %v5372_v56  ;;  %17768 = vmatprep.mubr.f32.mxu1 %v21271_v58 }
 0x3a3   : > { %17771 = vmatprep.subr.mxu1 %v5369_v59 }
 0x3a9   : > { %17769 = vmatmul.mubr.f32.vlgmr.msra.gmra.mrb[12].mxu1 %v21336_v35 }
 0x3aa   : > { %17772 = vmatpush3.xpose.msra.mxu1 %v5369_v59  ;;  %17773 = vmatprep.mubr.f32.mxu1 %v21274_v62 }
 0x3ab   : > { %17776 = vmatprep.subr.mxu1 %v5282_v46 }
 0x3b1   : > { %17774 = vmatmul.mubr.f32.vlgmr.msra.gmra.mrb[12].mxu1 %v21339_v28 }
 0x3b2   : > { %17777 = vmatpush3.xpose.msra.mxu1 %v5282_v46  ;;  %17778 = vmatprep.mubr.f32.mxu1 %v21277_v7 }
 0x3b3   : > { %17781 = vmatprep.subr.mxu1 %v5370_v25 }
 0x3b9   : > { %17779 = vmatmul.mubr.f32.vlgmr.msra.gmra.mrb[12].mxu1 %v21342_v10 }
 0x3ba   : > { %17782 = vmatpush3.xpose.msra.mxu1 %v5370_v25  ;;  %17783 = vmatprep.mubr.f32.mxu1 %v21271_v58 }
 0x3bb   : > { %17786 = vmatprep.subr.mxu1 %v5282_v46 }
 0x3c0   : > { %v17640_v40 = vpop.f32.mrb[2].mxu1 }
 0x3c1   : > { %v7799_v26 = vmul.f32 %v17640_v40, %v7751_v16  ;;  %v3300_v23 = vpop.f32.mrb[3].mxu1  ;;  %17784 = vmatmul.mubr.f32.vlgmr.msra.gmra.mrb[12].mxu1 %v21336_v35 }
 0x3c2   : > { %v7798_v24 = vmul.f32 %v7751_v16, %v3300_v23  ;;  %17787 = vmatpush3.xpose.msra.mxu1 %v5282_v46  ;;  %17788 = vmatprep.mubr.f32.mxu1 %v21271_v58 }
 0x3c3   : > { %17821 = vmatprep.subr.mxu1 %v21505_v37  ;;  %v21517_v32 = vadd.f32 %v7851_v63, %v7799_v26 }
 0x3c4   : > { %v21519_v38 = vadd.f32 %v7851_v63, %v7798_v24 }
 0x3c5   : > { %v7922_v50 = vsel %vm7918_vm14, %v21517_v32, -inf }
 0x3c6   : > { %7923 = vmax.xlane.f32.xlu1 %v7922_v50  ;;  %v7919_v47 = vsel %vm7918_vm14, %v21519_v38, -inf }
 0x3c7   : > { %7920 = vmax.xlane.f32.xlu0 %v7919_v47 }
 0x3c9   : > { %17789 = vmatmul.mubr.f32.vlgmr.msra.gmra.mrb[12].mxu1 %v21336_v35 }
 0x3ca   : > { %17822 = vmatpush3.xpose.msra.mxu1 %v21505_v37  ;;  %17823 = vmatprep.mubr.f32.mxu1 %v21284_v18 }
 0x3cb   : > { %17826 = vmatprep.subr.mxu1 %v6356_v41 }
 0x3cd   : > { %v21528_v19 = vpop.f32.mrb[14].mxu0  ;;  %17824 = vmatmul.mubr.f32.vlgmr.msra.gmra.mrb[14].mxu1 %v21354_v11 }
 0x3ce   : > { %v21531_v21 = vpop.f32.mrb[15].mxu0  ;;  %17827 = vmatpush3.xpose.msra.mxu1 %v6356_v41  ;;  %17828 = vmatprep.mubr.f32.mxu1 %v21271_v58 }
 0x3cf   : > { %17831 = vmatprep.subr.mxu1 %v6353_v48 }
 0x3d5   : > { %17829 = vmatmul.mubr.f32.vlgmr.msra.gmra.mrb[14].mxu1 %v21336_v35 }
 0x3d6   : > { %17832 = vmatpush3.xpose.msra.mxu1 %v6353_v48  ;;  %17833 = vmatprep.mubr.f32.mxu1 %v21274_v62 }
 0x3d7   : > { %17836 = vmatprep.subr.mxu1 %v21505_v37 }
 0x3dd   : > { %17834 = vmatmul.mubr.f32.vlgmr.msra.gmra.mrb[14].mxu1 %v21339_v28 }
 0x3de   : > { %17837 = vmatpush3.xpose.msra.mxu1 %v21505_v37  ;;  %17838 = vmatprep.mubr.f32.mxu1 %v21277_v7 }
 0x3df   : > { %17841 = vmatprep.subr.mxu1 %v6354_v22 }
 0x3e5   : > { %17839 = vmatmul.mubr.f32.vlgmr.msra.gmra.mrb[14].mxu1 %v21342_v10 }
 0x3e6   : > { %17842 = vmatpush3.xpose.msra.mxu1 %v6354_v22  ;;  %17843 = vmatprep.mubr.f32.mxu1 %v21271_v58 }
 0x3e7   : > { %17846 = vmatprep.subr.mxu1 %v21505_v37 }
 0x3ec   : > { %v17670_v53 = vpop.f32.mrb[4].mxu1 }
 0x3ed   : > { %v3792_v31 = vpop.f32.mrb[5].mxu1  ;;  %17844 = vmatmul.mubr.f32.vlgmr.msra.gmra.mrb[14].mxu1 %v21336_v35  ;;  %v7801_v36 = vmul.f32 %v17670_v53, %v7755_v2 }
 0x3ee   : > { %v7800_v20 = vmul.f32 %v7755_v2, %v3792_v31  ;;  %17847 = vmatpush3.xpose.msra.mxu1 %v21505_v37  ;;  %17848 = vmatprep.mubr.f32.mxu1 %v21271_v58 }
 0x3ef   : > { %17881 = vmatprep.subr.mxu1 %v7250_v60  ;;  %v21555_v44 = vadd.f32 %v7855_v0, %v7801_v36 }
 0x3f0   : > { %v21551_v57 = vadd.f32 %v7855_v0, %v7800_v20 }
 0x3f1   : > { %v7928_v46 = vsel %vm7918_vm14, %v21555_v44, -inf }
 0x3f2   : > { %v7925_v52 = vsel %vm7918_vm14, %v21551_v57, -inf }
 0x3f3   : > { %7926 = vmax.xlane.f32.xlu0 %v7925_v52 }
 0x3f5   : > { %17849 = vmatmul.mubr.f32.vlgmr.msra.gmra.mrb[14].mxu1 %v21336_v35 }
 0x3f6   : > { %17882 = vmatpush3.xpose.msra.mxu1 %v7250_v60  ;;  %17883 = vmatprep.mubr.f32.mxu1 %v21284_v18  ;;  %v529_v18 = vld [vmem:[%s21500_s10 + $0x2] sm:$0x1] }
 0x3f7   : > { %17886 = vmatprep.subr.mxu1 %v7340_v1  ;;  %7929 = vmax.xlane.f32.xlu0 %v7928_v46  ;;  %v7759_v56 = vrot.slane %v529_v18, %v21508_v17 }
 0x3f9   : > { %v21561_v59 = vpop.f32.mrb[16].mxu0  ;;  %17884 = vmatmul.mubr.f32.vlgmr.msra.gmra.mrb[16].mxu1 %v21354_v11  ;;  %v16213_v11 = vadd.f32 -1.0, %v529_v18 }
 0x3fa   : > { %v21564_v25 = vpop.f32.mrb[17].mxu0  ;;  %17887 = vmatpush3.xpose.msra.mxu1 %v7340_v1  ;;  %17888 = vmatprep.mubr.f32.mxu1 %v21271_v58 }
 0x3fb   : > { %17891 = vmatprep.subr.mxu1 %v7337_v51  ;;  %v7830_v5 = vmul.f32 10000.0, %v16213_v11 }
 0x401   : > { %17889 = vmatmul.mubr.f32.vlgmr.msra.gmra.mrb[16].mxu1 %v21336_v35 }
 0x402   : > { %17892 = vmatpush3.xpose.msra.mxu1 %v7337_v51  ;;  %17893 = vmatprep.mubr.f32.mxu1 %v21274_v62  ;;  %v21579_v62 = vand.u32 4294901760, %v21576_v43 }
 0x403   : > { %17896 = vmatprep.subr.mxu1 %v7250_v60 }
 0x409   : > { %17894 = vmatmul.mubr.f32.vlgmr.msra.gmra.mrb[16].mxu1 %v21339_v28  ;;  %v7859_v28 = vrot.slane %v7830_v5, %v21508_v17 }
 0x40a   : > { %17897 = vmatpush3.xpose.msra.mxu1 %v7250_v60  ;;  %17898 = vmatprep.mubr.f32.mxu1 %v21277_v7 }
 0x40b   : > { %17901 = vmatprep.subr.mxu1 %v7338_v61 }
 0x411   : > { %17899 = vmatmul.mubr.f32.vlgmr.msra.gmra.mrb[16].mxu1 %v21342_v10 }
 0x412   : > { %17902 = vmatpush3.xpose.msra.mxu1 %v7338_v61  ;;  %17903 = vmatprep.mubr.f32.mxu1 %v21271_v58 }
 0x413   : > { %17906 = vmatprep.subr.mxu1 %v7250_v60 }
 0x418   : > { %v17700_v7 = vpop.f32.mrb[6].mxu1 }
 0x419   : > { %v7803_v13 = vmul.f32 %v17700_v7, %v7759_v56  ;;  %v4284_v27 = vpop.f32.mrb[7].mxu1  ;;  %17904 = vmatmul.mubr.f32.vlgmr.msra.gmra.mrb[16].mxu1 %v21336_v35  ;;  %v20120_v7 = vld [vmem:[%s20960_s19] sm:$0xff] }
 0x41a   : > { %v7802_v10 = vmul.f32 %v7759_v56, %v4284_v27  ;;  %17907 = vmatpush3.xpose.msra.mxu1 %v7250_v60  ;;  %17908 = vmatprep.mubr.f32.mxu1 %v21271_v58  ;;  %v16214_v58 = vadd.f32 -1.0, %v530_v9  ;;  %v532_v27 = vld [vmem:[%s21500_s10 + $0x5] sm:$0x1] }
 0x41b   : > { %v21584_v14 = vadd.f32 %v7859_v28, %v7803_v13  ;;  %17941 = vmatprep.subr.mxu1 %v21579_v62  ;;  %v21635_v13 = vsub.f32 %v20120_v7, %v21440_v29 }
 0x41c   : > { %v21587_v34 = vadd.f32 %v7859_v28, %v7802_v10  ;;  %v7831_v37 = vmul.f32 10000.0, %v16214_v58  ;;  %v533_v58 = vld [vmem:[%s21500_s10 + $0x6] sm:$0x1] }
 0x41d   : > { %v7934_v54 = vsel %vm7918_vm14, %v21584_v14, -inf }
 0x41e   : > { %7935 = vmax.xlane.f32.xlu0 %v7934_v54  ;;  %v7931_v6 = vsel %vm7918_vm14, %v21587_v34, -inf  ;;  %v7863_v48 = vrot.slane %v7831_v37, %v21508_v17  ;;  %v16216_v54 = vadd.f32 -1.0, %v532_v27 }
 0x41f   : > { %7932 = vmax.xlane.f32.xlu1 %v7931_v6 }
 0x420   : > { %v7833_v37 = vmul.f32 10000.0, %v16216_v54 }
 0x421   : > { %17909 = vmatmul.mubr.f32.vlgmr.msra.gmra.mrb[16].mxu1 %v21336_v35 }
 0x422   : > { %17942 = vmatpush3.msra.mxu1 %v21579_v62 }
 0x444   : > { %v17730_v16 = vpop.f32.mrb[8].mxu1 }
 0x445   : > { %v7805_v63 = vmul.f32 %v17730_v16, %v7763_v49  ;;  %v4776_v40 = vpop.f32.mrb[9].mxu1 }
 0x446   : > { %v7804_v26 = vmul.f32 %v7763_v49, %v4776_v40  ;;  %v16217_v49 = vadd.f32 -1.0, %v533_v58 }
 0x447   : > { %v21598_v23 = vadd.f32 %v7863_v48, %v7805_v63  ;;  %v7871_v63 = vrot.slane %v7833_v37, %v21508_v17 }
 0x448   : > { %v21600_v22 = vadd.f32 %v7863_v48, %v7804_v26  ;;  %v7771_v48 = vrot.slane %v532_v27, %v21508_v17  ;;  %v7775_v26 = vrot.slane %v533_v58, %v21508_v17 }
 0x449   : > { %v7940_v35 = vsel %vm7918_vm14, %v21598_v23, -inf }
 0x44a   : > { %7941 = vmax.xlane.f32.xlu0 %v7940_v35  ;;  %v7937_v24 = vsel %vm7918_vm14, %v21600_v22, -inf  ;;  %v7834_v35 = vmul.f32 10000.0, %v16217_v49 }
 0x44b   : > { %7938 = vmax.xlane.f32.xlu1 %v7937_v24 }
 0x453   : > { %v7924_v50 = vpop.xlane.xlu1 %7923 }
 0x454   : > { %v7980_v45 = vsub.f32 %v21517_v32, %v7924_v50  ;;  %v7921_v47 = vpop.xlane.xlu0 %7920  ;;  %v16215_v32 = vadd.f32 -1.0, %v531_v42 }
 0x455   : > { %v7979_v41 = vsub.f32 %v21519_v38, %v7921_v47  ;;  %v7767_v38 = vrot.slane %v531_v42, %v21508_v17  ;;  %v7810_v47 = vmul.f32 %v7775_v26, %v21531_v21 }
 0x456   : > { %v8001_v55 = vmul.f32 1.442695, %v7980_v45  ;;  %v7832_v4 = vmul.f32 10000.0, %v16215_v32 }
 0x457   : > { %v7999_v15 = vmul.f32 1.442695, %v7979_v41 }
 0x458   : > { %20039 = vpow2.f32 %v8001_v55  ;;  %v7867_v51 = vrot.slane %v7832_v4, %v21508_v17 }
 0x459   : > { %20041 = vpow2.f32 %v7999_v15  ;;  %v7875_v15 = vrot.slane %v7834_v35, %v21508_v17 }
 0x462   : > { %v21608_v8 = vpop.eup %20039 }
 0x463   : > { %v8042_v12 = vsel %vm7918_vm14, %v21608_v8, 0.0  ;;  %v21612_v30 = vpop.eup %20041 }
 0x464   : > { %8043 = vadd.xlane.f32.xlu0 %v8042_v12  ;;  %v8039_v60 = vsel %vm7918_vm14, %v21612_v30, 0.0  ;;  %v7811_v12 = vmul.f32 %v21528_v19, %v7775_v26 }
 0x466   : > { %v21669_v21 = vadd.f32 %v7875_v15, %v7811_v12 }
 0x468   : > { %8040 = vadd.xlane.f32.xlu0 %v8039_v60  ;;  %v21665_v60 = vadd.f32 %v7875_v15, %v7810_v47 }
 0x46a   : > { %v7955_v32 = vsel %vm7918_vm14, %v21665_v60, -inf }
 0x470   : > { %v17760_v2 = vpop.f32.mrb[10].mxu1 }
 0x471   : > { %v7807_v53 = vmul.f32 %v17760_v2, %v7767_v38  ;;  %v5268_v0 = vpop.f32.mrb[11].mxu1 }
 0x472   : > { %v7806_v31 = vmul.f32 %v7767_v38, %v5268_v0 }
 0x473   : > { %v21619_v61 = vadd.f32 %v7867_v51, %v7807_v53  ;;  %v7958_v53 = vsel %vm7918_vm14, %v21669_v21, -inf }
 0x474   : > { %v21623_v20 = vadd.f32 %v7867_v51, %v7806_v31 }
 0x475   : > { %v7946_v36 = vsel %vm7918_vm14, %v21619_v61, -inf }
 0x476   : > { %7947 = vmax.xlane.f32.xlu1 %v7946_v36  ;;  %v7943_v39 = vsel %vm7918_vm14, %v21623_v20, -inf }
 0x47a   : > { %7944 = vmax.xlane.f32.xlu1 %v7943_v39 }
 0x480   : > { %v7927_v52 = vpop.xlane.xlu0 %7926 }
 0x481   : > { %v7981_v1 = vsub.f32 %v21551_v57, %v7927_v52  ;;  %v21639_v57 = vand.u32 4294901760, %v21635_v13 }
 0x483   : > { %v8003_v46 = vmul.f32 1.442695, %v7981_v1  ;;  %v8235_v6 = vsub.f32 %v21635_v13, %v21639_v57 }
 0x484   : > { %v7930_v18 = vpop.xlane.xlu0 %7929 }
 0x485   : > { %20043 = vpow2.f32 %v8003_v46  ;;  %v7982_v11 = vsub.f32 %v21555_v44, %v7930_v18  ;;  %v21647_v9 = vand.u32 4294901760, %v8235_v6 }
 0x487   : > { %v8005_v5 = vmul.f32 1.442695, %v7982_v11  ;;  %17916 = vmatprep.subr.mxu0 %v21647_v9 }
 0x489   : > { %20045 = vpow2.f32 %v8005_v5  ;;  %v535_v5 = vld [vmem:[%s21500_s10 + $0x8] sm:$0x1] }
 0x48a   : > { %v7783_v6 = vrot.slane %v535_v5, %v21508_v17 }
 0x48c   : > { %v7815_v35 = vmul.f32 %v21561_v59, %v7783_v6 }
 0x48f   : > { %v21629_v56 = vpop.eup %20043 }
 0x490   : > { %v8045_v28 = vsel %vm7918_vm14, %v21629_v56, 0.0 }
 0x491   : > { %8046 = vadd.xlane.f32.xlu0 %v8045_v28 }
 0x493   : > { %v21641_v10 = vpop.eup %20045 }
 0x494   : > { %v8048_v44 = vsel %vm7918_vm14, %v21641_v10, 0.0 }
 0x495   : > { %8049 = vadd.xlane.f32.xlu0 %v8048_v44 }
 0x49c   : > { %v17790_v16 = vpop.f32.mrb[12].mxu1 }
 0x49d   : > { %v5760_v40 = vpop.f32.mrb[13].mxu1  ;;  %v7809_v24 = vmul.f32 %v17790_v16, %v7771_v48  ;;  %v7814_v16 = vmul.f32 %v7783_v6, %v21564_v25 }
 0x49e   : > { %v7808_v50 = vmul.f32 %v7771_v48, %v5760_v40 }
 0x49f   : > { %v21659_v55 = vadd.f32 %v7871_v63, %v7809_v24 }
 0x4a0   : > { %v21654_v45 = vadd.f32 %v7871_v63, %v7808_v50 }
 0x4a1   : > { %v7952_v42 = vsel %vm7918_vm14, %v21659_v55, -inf }
 0x4a2   : > { %v7949_v41 = vsel %vm7918_vm14, %v21654_v45, -inf }
 0x4a3   : > { %7950 = vmax.xlane.f32.xlu1 %v7949_v41 }
 0x4a7   : > { %7953 = vmax.xlane.f32.xlu1 %v7952_v42 }
 0x4ab   : > { %v7936_v4 = vpop.xlane.xlu0 %7935  ;;  %7956 = vmax.xlane.f32.xlu1 %v7955_v32 }
 0x4ac   : > { %v7984_v38 = vsub.f32 %v21584_v14, %v7936_v4  ;;  %v7933_v51 = vpop.xlane.xlu1 %7932  ;;  %v21683_v14 = vsub.f32 %v21576_v43, %v21579_v62  ;;  %v16219_v43 = vadd.f32 -1.0, %v535_v5 }
 0x4ad   : > { %v7983_v2 = vsub.f32 %v21587_v34, %v7933_v51  ;;  %v534_v34 = vld [vmem:[%s21500_s10 + $0x7] sm:$0x1] }
 0x4ae   : > { %v8009_v19 = vmul.f32 1.442695, %v7984_v38  ;;  %v21687_v52 = vand.u32 4294901760, %v21683_v14  ;;  %v16218_v46 = vadd.f32 -1.0, %v534_v34  ;;  %v7779_v7 = vrot.slane %v534_v34, %v21508_v17 }
 0x4af   : > { %v8007_v0 = vmul.f32 1.442695, %v7983_v2  ;;  %7959 = vmax.xlane.f32.xlu1 %v7958_v53  ;;  %v7836_v58 = vmul.f32 10000.0, %v16219_v43 }
 0x4b0   : > { %20047 = vpow2.f32 %v8009_v19  ;;  %v8730_v18 = vsub.f32 %v21683_v14, %v21687_v52  ;;  %v7835_v28 = vmul.f32 10000.0, %v16218_v46 }
 0x4b1   : > { %20049 = vpow2.f32 %v8007_v0  ;;  %v7883_v26 = vrot.slane %v7836_v58, %v21508_v17 }
 0x4b2   : > { %v21693_v11 = vand.u32 4294901760, %v8730_v18  ;;  %v7879_v44 = vrot.slane %v7835_v28, %v21508_v17 }
 0x4b3   : > { %v21711_v50 = vadd.f32 %v7883_v26, %v7814_v16  ;;  %v21715_v25 = vadd.f32 %v7883_v26, %v7815_v35 }
 0x4b4   : > { %17946 = vmatprep.subr.mxu1 %v21693_v11 }
 0x4b5   : > { %v7967_v47 = vsel %vm7918_vm14, %v21711_v50, -inf  ;;  %v7970_v59 = vsel %vm7918_vm14, %v21715_v25, -inf }
 0x4ba   : > { %v21675_v31 = vpop.eup %20047 }
 0x4bb   : > { %v8054_v36 = vsel %vm7918_vm14, %v21675_v31, 0.0  ;;  %v21679_v39 = vpop.eup %20049 }
 0x4bc   : > { %8055 = vadd.xlane.f32.xlu0 %v8054_v36  ;;  %v8051_v1 = vsel %vm7918_vm14, %v21679_v39, 0.0 }
 0x4c0   : > { %8052 = vadd.xlane.f32.xlu0 %v8051_v1 }
 0x4c8   : > { %v17850_v27 = vpop.f32.mrb[14].mxu1 }
 0x4c9   : > { %v6744_v54 = vpop.f32.mrb[15].mxu1  ;;  %v7813_v37 = vmul.f32 %v17850_v27, %v7779_v7 }
 0x4ca   : > { %v7812_v49 = vmul.f32 %v7779_v7, %v6744_v54 }
 0x4cb   : > { %v21705_v40 = vadd.f32 %v7879_v44, %v7813_v37 }
 0x4cc   : > { %v21700_v48 = vadd.f32 %v7879_v44, %v7812_v49 }
 0x4cd   : > { %v7964_v24 = vsel %vm7918_vm14, %v21705_v40, -inf }
 0x4ce   : > { %v7961_v63 = vsel %vm7918_vm14, %v21700_v48, -inf }
 0x4cf   : > { %7962 = vmax.xlane.f32.xlu1 %v7961_v63 }
 0x4d3   : > { %7965 = vmax.xlane.f32.xlu1 %v7964_v24 }
 0x4d7   : > { %v7942_v41 = vpop.xlane.xlu0 %7941  ;;  %7968 = vmax.xlane.f32.xlu1 %v7967_v47 }
 0x4d8   : > { %v7986_v15 = vsub.f32 %v21598_v23, %v7942_v41  ;;  %v7939_v12 = vpop.xlane.xlu1 %7938  ;;  %v536_v23 = vld [vmem:[%s21500_s10 + $0x9] sm:$0x1] }
 0x4d9   : > { %v7985_v42 = vsub.f32 %v21600_v22, %v7939_v12  ;;  %v16220_v19 = vadd.f32 -1.0, %v536_v23  ;;  %v7787_v36 = vrot.slane %v536_v23, %v21508_v17 }
 0x4da   : > { %v8013_v32 = vmul.f32 1.442695, %v7986_v15 }
 0x4db   : > { %v8011_v4 = vmul.f32 1.442695, %v7985_v42  ;;  %7971 = vmax.xlane.f32.xlu1 %v7970_v59  ;;  %v7837_v53 = vmul.f32 10000.0, %v16220_v19 }
 0x4dd   : > { %20051 = vpow2.f32 %v8011_v4  ;;  %v7887_v1 = vrot.slane %v7837_v53, %v21508_v17  ;;  %v20121_v53 = vld [vmem:[%s20960_s19 + $0x10] sm:$0xff] }
 0x4de   : > { %20053 = vpow2.f32 %v8013_v32 }
 0x4e7   : > { %v21721_v38 = vpop.eup %20051 }
 0x4e8   : > { %v8057_v51 = vsel %vm7918_vm14, %v21721_v38, 0.0  ;;  %v21725_v2 = vpop.eup %20053 }
 0x4e9   : > { %8058 = vadd.xlane.f32.xlu0 %v8057_v51  ;;  %v8060_v22 = vsel %vm7918_vm14, %v21725_v2, 0.0 }
 0x4ed   : > { %8061 = vadd.xlane.f32.xlu0 %v8060_v22 }
 0x4f1   : > { %v8044_v0 = vpop.xlane.xlu0 %8043 }
 0x4f2   : > { %20055 = vrcp.f32 %v8044_v0  ;;  %v21765_v0 = vand.u32 4294901760, %v20121_v53 }
 0x4f4   : > { %v17910_v34 = vpop.f32.mrb[16].mxu1 }
 0x4f5   : > { %v8041_v46 = vpop.xlane.xlu0 %8040  ;;  %v7728_v18 = vpop.f32.mrb[17].mxu1  ;;  %v7817_v5 = vmul.f32 %v17910_v34, %v7787_v36 }
 0x4f6   : > { %20057 = vrcp.f32 %v8041_v46  ;;  %v7816_v28 = vmul.f32 %v7787_v36, %v7728_v18 }
 0x4f7   : > { %v21736_v27 = vadd.f32 %v7887_v1, %v7817_v5 }
 0x4f8   : > { %v21732_v43 = vadd.f32 %v7887_v1, %v7816_v28 }
 0x4f9   : > { %v7976_v6 = vsel %vm7918_vm14, %v21736_v27, -inf }
 0x4fa   : > { %v7973_v7 = vsel %vm7918_vm14, %v21732_v43, -inf }
 0x4fb   : > { %7974 = vmax.xlane.f32.xlu1 %v7973_v7 }
 0x4fc   : > { %v20056_v44 = vpop.eup %20055 }
 0x4fd   : > { %v8120_v54 = vmul.f32 %v20056_v44, %v21608_v8 }
 0x4ff   : > { %7977 = vmax.xlane.f32.xlu1 %v7976_v6  ;;  %v8143_v17 = vsel %vm7918_vm14, %v8120_v54, 0 }
 0x500   : > { %v20058_v58 = vpop.eup %20057  ;;  %v21742_v37 = vand.u32 4294901760, %v8143_v17 }
 0x501   : > { %v8119_v49 = vmul.f32 %v20058_v58, %v21612_v30 }
 0x502   : > { %v8222_v16 = vsub.f32 %v8143_v17, %v21742_v37 }
 0x503   : > { %v7948_v63 = vpop.xlane.xlu1 %7947  ;;  %v8140_v26 = vsel %vm7918_vm14, %v8119_v49, 0 }
 0x504   : > { %v7988_v35 = vsub.f32 %v21619_v61, %v7948_v63  ;;  %v8211_v24 = vand.u32 4294901760, %v8140_v26  ;;  %v8223_v8 = vand.u32 4294901760, %v8222_v16 }
 0x506   : > { %v8017_v47 = vmul.f32 1.442695, %v7988_v35  ;;  %v8212_v41 = vsub.f32 %v8140_v26, %v8211_v24  ;;  %v8224_v59 = vsub.f32 %v8222_v16, %v8223_v8 }
 0x507   : > { %v7945_v15 = vpop.xlane.xlu1 %7944 }
 0x508   : > { %20059 = vpow2.f32 %v8017_v47  ;;  %v7987_v12 = vsub.f32 %v21623_v20, %v7945_v15  ;;  %v8213_v42 = vand.u32 4294901760, %v8212_v41  ;;  %v8225_v51 = vand.u32 4294901760, %v8224_v59 }
 0x50a   : > { %v8015_v32 = vmul.f32 1.442695, %v7987_v12  ;;  %v8214_v4 = vsub.f32 %v8212_v41, %v8213_v42 }
 0x50c   : > { %20061 = vpow2.f32 %v8015_v32  ;;  %v8215_v30 = vand.u32 4294901760, %v8214_v4 }
 0x50e   : > { %17913 = vmatprep.mubr.f32.mxu0 %v8215_v30 }
 0x50f   : > { %17914 = vmatmul.mubr.f32.vlgmr.msra.gmra.mrb[18].mxu0 %v8225_v51 }
 0x510   : > { %17918 = vmatprep.mubr.f32.mxu0 %v8211_v24  ;;  %17917 = vmatpush3.msra.mxu0 %v21647_v9 }
 0x511   : > { %17921 = vmatprep.subr.mxu0 %v21635_v13 }
 0x512   : > { %v21751_v61 = vpop.eup %20059 }
 0x513   : > { %v8066_v23 = vsel %vm7918_vm14, %v21751_v61, 0.0 }
 0x514   : > { %8067 = vadd.xlane.f32.xlu0 %v8066_v23  ;;  %v20122_v23 = vld [vmem:[%s20960_s19 + $0x18] sm:$0xff] }
 0x516   : > { %v21755_v20 = vpop.eup %20061 }
 0x517   : > { %17919 = vmatmul.mubr.f32.vlgmr.msra.gmra.mrb[18].mxu0 %v21742_v37  ;;  %v8063_v22 = vsel %vm7918_vm14, %v21755_v20, 0.0 }
 0x518   : > { %17923 = vmatprep.mubr.f32.mxu0 %v8212_v41  ;;  %8064 = vadd.xlane.f32.xlu0 %v8063_v22  ;;  %v21824_v22 = vand.u32 4294901760, %v20122_v23 }
 0x519   : > { %17922 = vmatpush3.msra.mxu0 %v21635_v13  ;;  %v21769_v13 = vsub.f32 %v20121_v53, %v21765_v0 }
 0x51a   : > { %17926 = vmatprep.subr.mxu0 %v21440_v29  ;;  %v21831_v53 = vsub.f32 %v20122_v23, %v21824_v22 }
 0x51b   : > { %v21775_v46 = vand.u32 4294901760, %v21769_v13 }
 0x51d   : > { %v9225_v44 = vsub.f32 %v21769_v13, %v21775_v46 }
 0x51e   : > { %v8047_v9 = vpop.xlane.xlu0 %8046 }
 0x51f   : > { %20063 = vrcp.f32 %v8047_v9  ;;  %17924 = vmatmul.mubr.f32.vlgmr.msra.gmra.mrb[18].mxu0 %v8222_v16  ;;  %v21791_v63 = vand.u32 4294901760, %v9225_v44 }
 0x520   : > { %17928 = vmatprep.mubr.f32.mxu0 %v8213_v42  ;;  %17927 = vmatpush3.msra.mxu0 %v21440_v29 }
 0x521   : > { %17931 = vmatprep.subr.mxu0 %v21639_v57 }
 0x522   : > { %v8050_v19 = vpop.xlane.xlu0 %8049 }
 0x523   : > { %20065 = vrcp.f32 %v8050_v19 }
 0x527   : > { %17929 = vmatmul.mubr.f32.vlgmr.msra.gmra.mrb[18].mxu0 %v8223_v8 }
 0x528   : > { %17933 = vmatprep.mubr.f32.mxu0 %v8211_v24  ;;  %17932 = vmatpush3.msra.mxu0 %v21639_v57 }
 0x529   : > { %v20064_v36 = vpop.eup %20063  ;;  %17936 = vmatprep.subr.mxu0 %v21440_v29 }
 0x52a   : > { %v8121_v34 = vmul.f32 %v20064_v36, %v21629_v56 }
 0x52c   : > { %v8635_v1 = vsel %vm7918_vm14, %v8121_v34, 0 }
 0x52d   : > { %v20066_v18 = vpop.eup %20065  ;;  %v21777_v5 = vand.u32 4294901760, %v8635_v1 }
 0x52e   : > { %v8122_v28 = vmul.f32 %v20066_v18, %v21641_v10 }
 0x52f   : > { %17934 = vmatmul.mubr.f32.vlgmr.msra.gmra.mrb[18].mxu0 %v21742_v37  ;;  %v8707_v57 = vsub.f32 %v8635_v1, %v21777_v5 }
 0x530   : > { %17938 = vmatprep.mubr.f32.mxu0 %v8211_v24  ;;  %v7951_v7 = vpop.xlane.xlu1 %7950  ;;  %17937 = vmatpush3.msra.mxu0 %v21440_v29  ;;  %v8638_v56 = vsel %vm7918_vm14, %v8122_v28, 0  ;;  %v21838_v28 = vand.u32 4294901760, %v21831_v53 }
 0x531   : > { %v7989_v54 = vsub.f32 %v21654_v45, %v7951_v7  ;;  %v8708_v6 = vand.u32 4294901760, %v8707_v57  ;;  %v21787_v17 = vand.u32 4294901760, %v8638_v56  ;;  %17971 = vmatprep.subr.mxu0 %v21765_v0 }
 0x532   : > { %v9720_v44 = vsub.f32 %v21831_v53, %v21838_v28 }
 0x533   : > { %v8019_v10 = vmul.f32 1.442695, %v7989_v54  ;;  %v8709_v58 = vsub.f32 %v8707_v57, %v8708_v6  ;;  %v8717_v49 = vsub.f32 %v8638_v56, %v21787_v17 }
 0x534   : > { %v7954_v16 = vpop.xlane.xlu1 %7953 }
 0x535   : > { %20067 = vpow2.f32 %v8019_v10  ;;  %v7990_v29 = vsub.f32 %v21659_v55, %v7954_v16  ;;  %v8710_v26 = vand.u32 4294901760, %v8709_v58  ;;  %v8718_v35 = vand.u32 4294901760, %v8717_v49 }
 0x537   : > { %v8021_v24 = vmul.f32 1.442695, %v7990_v29  ;;  %17939 = vmatmul.mubr.f32.vlgmr.msra.gmra.mrb[18].mxu0 %v21742_v37  ;;  %17943 = vmatprep.mubr.f32.mxu1 %v8710_v26  ;;  %v8719_v45 = vsub.f32 %v8717_v49, %v8718_v35 }
 0x538   : > { %v7957_v8 = vpop.xlane.xlu1 %7956  ;;  %17972 = vmatpush3.msra.mxu0 %v21765_v0 }
 0x539   : > { %20069 = vpow2.f32 %v8021_v24  ;;  %v7991_v47 = vsub.f32 %v21665_v60, %v7957_v8  ;;  %v8720_v41 = vand.u32 4294901760, %v8719_v45  ;;  %17976 = vmatprep.subr.mxu0 %v21791_v63 }
 0x53b   : > { %v8023_v15 = vmul.f32 1.442695, %v7991_v47  ;;  %17944 = vmatmul.mubr.f32.vlgmr.msra.gmra.mrb[18].mxu1 %v8720_v41 }
 0x53c   : > { %17948 = vmatprep.mubr.f32.mxu1 %v21777_v5  ;;  %v7960_v55 = vpop.xlane.xlu1 %7959  ;;  %17947 = vmatpush3.msra.mxu1 %v21693_v11 }
 0x53d   : > { %20071 = vpow2.f32 %v8023_v15  ;;  %v7992_v37 = vsub.f32 %v21669_v21, %v7960_v55  ;;  %17951 = vmatprep.subr.mxu1 %v21683_v14 }
 0x53f   : > { %v21802_v12 = vpop.eup %20067  ;;  %v8025_v42 = vmul.f32 1.442695, %v7992_v37 }
 0x540   : > { %v8069_v60 = vsel %vm7918_vm14, %v21802_v12, 0.0 }
 0x541   : > { %20073 = vpow2.f32 %v8025_v42  ;;  %8070 = vadd.xlane.f32.xlu0 %v8069_v60  ;;  %v20123_v60 = vld [vmem:[%s20960_s19 + $0x20] sm:$0xff] }
 0x543   : > { %v21806_v59 = vpop.eup %20069  ;;  %17949 = vmatmul.mubr.f32.vlgmr.msra.gmra.mrb[18].mxu1 %v21787_v17 }
 0x544   : > { %17953 = vmatprep.mubr.f32.mxu1 %v8707_v57  ;;  %v8072_v11 = vsel %vm7918_vm14, %v21806_v59, 0.0  ;;  %17952 = vmatpush3.msra.mxu1 %v21683_v14 }
 0x545   : > { %8073 = vadd.xlane.f32.xlu0 %v8072_v11  ;;  %17956 = vmatprep.subr.mxu1 %v21579_v62  ;;  %v21890_v11 = vand.u32 4294901760, %v20123_v60 }
 0x547   : > { %v21813_v21 = vpop.eup %20071 }
 0x548   : > { %v8075_v32 = vsel %vm7918_vm14, %v21813_v21, 0.0 }
 0x549   : > { %v8056_v4 = vpop.xlane.xlu0 %8055  ;;  %8076 = vadd.xlane.f32.xlu1 %v8075_v32  ;;  %v21895_v32 = vsub.f32 %v20123_v60, %v21890_v11 }
 0x54a   : > { %20075 = vrcp.f32 %v8056_v4 }
 0x54b   : > { %v21817_v30 = vpop.eup %20073  ;;  %17954 = vmatmul.mubr.f32.vlgmr.msra.gmra.mrb[18].mxu1 %v8717_v49  ;;  %v21857_v49 = vand.u32 4294901760, %v9720_v44  ;;  %v21901_v23 = vand.u32 4294901760, %v21895_v32 }
 0x54c   : > { %17958 = vmatprep.mubr.f32.mxu1 %v8708_v6  ;;  %v8078_v51 = vsel %vm7918_vm14, %v21817_v30, 0.0  ;;  %17957 = vmatpush3.msra.mxu1 %v21579_v62 }
 0x54d   : > { %v8053_v14 = vpop.xlane.xlu0 %8052  ;;  %8079 = vadd.xlane.f32.xlu0 %v8078_v51  ;;  %17961 = vmatprep.subr.mxu1 %v21687_v52 }
 0x54e   : > { %20077 = vrcp.f32 %v8053_v14 }
 0x553   : > { %17959 = vmatmul.mubr.f32.vlgmr.msra.gmra.mrb[18].mxu1 %v8718_v35 }
 0x554   : > { %v20076_v9 = vpop.eup %20075  ;;  %17963 = vmatprep.mubr.f32.mxu1 %v21777_v5  ;;  %17962 = vmatpush3.msra.mxu1 %v21687_v52 }
 0x555   : > { %v8124_v19 = vmul.f32 %v20076_v9, %v21675_v31  ;;  %17966 = vmatprep.subr.mxu1 %v21579_v62 }
 0x557   : > { %v9133_v36 = vsel %vm7918_vm14, %v8124_v19, 0 }
 0x558   : > { %v20078_v34 = vpop.eup %20077  ;;  %v21834_v1 = vand.u32 4294901760, %v9133_v36 }
 0x559   : > { %v8123_v18 = vmul.f32 %v20078_v34, %v21679_v39 }
 0x55a   : > { %v21841_v57 = vsub.f32 %v9133_v36, %v21834_v1 }
 0x55b   : > { %17964 = vmatmul.mubr.f32.vlgmr.msra.gmra.mrb[18].mxu1 %v21787_v17  ;;  %v9130_v31 = vsel %vm7918_vm14, %v8123_v18, 0  ;;  %v10215_v18 = vsub.f32 %v21895_v32, %v21901_v23 }
 0x55c   : > { %17968 = vmatprep.mubr.f32.mxu1 %v21777_v5  ;;  %v7963_v52 = vpop.xlane.xlu1 %7962  ;;  %17967 = vmatpush3.msra.mxu1 %v21579_v62  ;;  %v21847_v7 = vand.u32 4294901760, %v9130_v31  ;;  %v9213_v39 = vand.u32 4294901760, %v21841_v57 }
 0x55d   : > { %v7993_v56 = vsub.f32 %v21700_v48, %v7963_v52  ;;  %18001 = vmatprep.subr.mxu1 %v21824_v22  ;;  %v21918_v44 = vand.u32 4294901760, %v10215_v18 }
 0x55e   : > { %v9202_v54 = vsub.f32 %v9130_v31, %v21847_v7  ;;  %v9214_v62 = vsub.f32 %v21841_v57, %v9213_v39 }
 0x55f   : > { %v8027_v6 = vmul.f32 1.442695, %v7993_v56 }
 0x560   : > { %v7966_v10 = vpop.xlane.xlu1 %7965  ;;  %v9203_v58 = vand.u32 4294901760, %v9202_v54  ;;  %v9215_v24 = vand.u32 4294901760, %v9214_v62 }
 0x561   : > { %20079 = vpow2.f32 %v8027_v6  ;;  %v7994_v5 = vsub.f32 %v21705_v40, %v7966_v10 }
 0x562   : > { %v9204_v48 = vsub.f32 %v9202_v54, %v9203_v58 }
 0x563   : > { %v8029_v16 = vmul.f32 1.442695, %v7994_v5  ;;  %17969 = vmatmul.mubr.f32.vlgmr.msra.gmra.mrb[18].mxu1 %v21787_v17 }
 0x564   : > { %v7969_v29 = vpop.xlane.xlu1 %7968  ;;  %v9205_v26 = vand.u32 4294901760, %v9204_v48  ;;  %18002 = vmatpush3.msra.mxu1 %v21824_v22 }
 0x565   : > { %20081 = vpow2.f32 %v8029_v16  ;;  %v7995_v35 = vsub.f32 %v21711_v50, %v7969_v29  ;;  %18006 = vmatprep.subr.mxu1 %v21857_v49  ;;  %v20124_v16 = vld [vmem:[%s20960_s19 + $0x28] sm:$0xff] }
 0x566   : > { %17973 = vmatprep.mubr.f32.mxu0 %v9205_v26  ;;  %v21941_v29 = vand.u32 4294901760, %v20124_v16 }
 0x567   : > { %v8031_v40 = vmul.f32 1.442695, %v7995_v35  ;;  %17974 = vmatmul.mubr.f32.vlgmr.msra.gmra.mrb[20].mxu0 %v9215_v24 }
 0x568   : > { %17978 = vmatprep.mubr.f32.mxu0 %v21847_v7  ;;  %v7972_v45 = vpop.xlane.xlu1 %7971  ;;  %17977 = vmatpush3.msra.mxu0 %v21791_v63  ;;  %v21948_v35 = vsub.f32 %v20124_v16, %v21941_v29 }
 0x569   : > { %20083 = vpow2.f32 %v8031_v40  ;;  %v7996_v17 = vsub.f32 %v21715_v25, %v7972_v45  ;;  %17981 = vmatprep.subr.mxu0 %v21769_v13 }
 0x56b   : > { %v21867_v8 = vpop.eup %20079  ;;  %v8033_v47 = vmul.f32 1.442695, %v7996_v17 }
 0x56c   : > { %v8081_v50 = vsel %vm7918_vm14, %v21867_v8, 0.0 }
 0x56d   : > { %20085 = vpow2.f32 %v8033_v47  ;;  %8082 = vadd.xlane.f32.xlu1 %v8081_v50  ;;  %v21955_v47 = vand.u32 4294901760, %v21948_v35 }
 0x56f   : > { %v21871_v41 = vpop.eup %20081  ;;  %17979 = vmatmul.mubr.f32.vlgmr.msra.gmra.mrb[20].mxu0 %v21834_v1 }
 0x570   : > { %17983 = vmatprep.mubr.f32.mxu0 %v9202_v54  ;;  %v8084_v63 = vsel %vm7918_vm14, %v21871_v41, 0.0  ;;  %17982 = vmatpush3.msra.mxu0 %v21769_v13 }
 0x571   : > { %8085 = vadd.xlane.f32.xlu0 %v8084_v63  ;;  %17986 = vmatprep.subr.mxu0 %v21765_v0 }
 0x573   : > { %v21878_v25 = vpop.eup %20083 }
 0x574   : > { %v8087_v15 = vsel %vm7918_vm14, %v21878_v25, 0.0 }
 0x575   : > { %8088 = vadd.xlane.f32.xlu1 %v8087_v15 }
 0x576   : > { %v8059_v55 = vpop.xlane.xlu0 %8058 }
 0x577   : > { %v21882_v37 = vpop.eup %20085  ;;  %20087 = vrcp.f32 %v8059_v55  ;;  %17984 = vmatmul.mubr.f32.vlgmr.msra.gmra.mrb[20].mxu0 %v21841_v57 }
 0x578   : > { %17988 = vmatprep.mubr.f32.mxu0 %v9203_v58  ;;  %v8090_v13 = vsel %vm7918_vm14, %v21882_v37, 0.0  ;;  %17987 = vmatpush3.msra.mxu0 %v21765_v0 }
 0x579   : > { %8091 = vadd.xlane.f32.xlu0 %v8090_v13  ;;  %17991 = vmatprep.subr.mxu0 %v21775_v46 }
 0x57a   : > { %v8062_v42 = vpop.xlane.xlu0 %8061 }
 0x57b   : > { %20089 = vrcp.f32 %v8062_v42 }
 0x57f   : > { %17989 = vmatmul.mubr.f32.vlgmr.msra.gmra.mrb[20].mxu0 %v9213_v39 }
 0x580   : > { %17993 = vmatprep.mubr.f32.mxu0 %v21847_v7  ;;  %17992 = vmatpush3.msra.mxu0 %v21775_v46 }
 0x581   : > { %v20088_v4 = vpop.eup %20087  ;;  %17996 = vmatprep.subr.mxu0 %v21765_v0 }
 0x582   : > { %v8125_v51 = vmul.f32 %v20088_v4, %v21721_v38 }
 0x584   : > { %v9625_v14 = vsel %vm7918_vm14, %v8125_v51, 0 }
 0x585   : > { %v20090_v9 = vpop.eup %20089  ;;  %v21903_v19 = vand.u32 4294901760, %v9625_v14 }
 0x586   : > { %v8126_v36 = vmul.f32 %v20090_v9, %v21725_v2  ;;  %v20125_v9 = vld [vmem:[%s20960_s19 + $0x30] sm:$0xff] }
 0x587   : > { %17994 = vmatmul.mubr.f32.vlgmr.msra.gmra.mrb[20].mxu0 %v21834_v1  ;;  %v9697_v46 = vsub.f32 %v9625_v14, %v21903_v19 }
 0x588   : > { %17998 = vmatprep.mubr.f32.mxu0 %v21847_v7  ;;  %v7975_v34 = vpop.xlane.xlu1 %7974  ;;  %17997 = vmatpush3.msra.mxu0 %v21765_v0  ;;  %v9628_v38 = vsel %vm7918_vm14, %v8126_v36, 0 }
 0x589   : > { %v7997_v57 = vsub.f32 %v21732_v43, %v7975_v34  ;;  %v9698_v31 = vand.u32 4294901760, %v9697_v46  ;;  %v21914_v52 = vand.u32 4294901760, %v9628_v38  ;;  %18031 = vmatprep.subr.mxu0 %v21890_v11 }
 0x58b   : > { %v8035_v2 = vmul.f32 1.442695, %v7997_v57  ;;  %v9699_v56 = vsub.f32 %v9697_v46, %v9698_v31  ;;  %v9707_v39 = vsub.f32 %v9628_v38, %v21914_v52 }
 0x58c   : > { %v7978_v7 = vpop.xlane.xlu1 %7977 }
 0x58d   : > { %20091 = vpow2.f32 %v8035_v2  ;;  %v7998_v0 = vsub.f32 %v21736_v27, %v7978_v7  ;;  %v9700_v54 = vand.u32 4294901760, %v9699_v56  ;;  %v9708_v6 = vand.u32 4294901760, %v9707_v39 }
 0x58f   : > { %v8037_v10 = vmul.f32 1.442695, %v7998_v0  ;;  %17999 = vmatmul.mubr.f32.vlgmr.msra.gmra.mrb[20].mxu0 %v21834_v1  ;;  %18003 = vmatprep.mubr.f32.mxu1 %v9700_v54  ;;  %v9709_v43 = vsub.f32 %v9707_v39, %v9708_v6 }
 0x590   : > { %18032 = vmatpush3.msra.mxu0 %v21890_v11 }
 0x591   : > { %20093 = vpow2.f32 %v8037_v10  ;;  %v9710_v58 = vand.u32 4294901760, %v9709_v43  ;;  %18036 = vmatprep.subr.mxu0 %v21918_v44 }
 0x593   : > { %18004 = vmatmul.mubr.f32.vlgmr.msra.gmra.mrb[20].mxu1 %v9710_v58 }
 0x594   : > { %18008 = vmatprep.mubr.f32.mxu1 %v21903_v19  ;;  %18007 = vmatpush3.msra.mxu1 %v21857_v49 }
 0x595   : > { %18011 = vmatprep.subr.mxu1 %v21831_v53 }
 0x597   : > { %v21927_v27 = vpop.eup %20091 }
 0x598   : > { %v8093_v1 = vsel %vm7918_vm14, %v21927_v27, 0.0 }
 0x599   : > { %8094 = vadd.xlane.f32.xlu1 %v8093_v1 }
 0x59b   : > { %v21931_v5 = vpop.eup %20093  ;;  %18009 = vmatmul.mubr.f32.vlgmr.msra.gmra.mrb[20].mxu1 %v21914_v52 }
 0x59c   : > { %18013 = vmatprep.mubr.f32.mxu1 %v9697_v46  ;;  %v8096_v62 = vsel %vm7918_vm14, %v21931_v5, 0.0  ;;  %18012 = vmatpush3.msra.mxu1 %v21831_v53 }
 0x59d   : > { %8097 = vadd.xlane.f32.xlu0 %v8096_v62  ;;  %18016 = vmatprep.subr.mxu1 %v21824_v22 }
 0x5a1   : > { %v8068_v49 = vpop.xlane.xlu0 %8067 }
 0x5a2   : > { %20095 = vrcp.f32 %v8068_v49 }
 0x5a3   : > { %18014 = vmatmul.mubr.f32.vlgmr.msra.gmra.mrb[20].mxu1 %v9707_v39 }
 0x5a4   : > { %18018 = vmatprep.mubr.f32.mxu1 %v9698_v31  ;;  %18017 = vmatpush3.msra.mxu1 %v21824_v22 }
 0x5a5   : > { %v8065_v48 = vpop.xlane.xlu0 %8064  ;;  %18021 = vmatprep.subr.mxu1 %v21838_v28 }
 0x5a6   : > { %20097 = vrcp.f32 %v8065_v48 }
 0x5ab   : > { %18019 = vmatmul.mubr.f32.vlgmr.msra.gmra.mrb[20].mxu1 %v9708_v6 }
 0x5ac   : > { %v20096_v26 = vpop.eup %20095  ;;  %18023 = vmatprep.mubr.f32.mxu1 %v21903_v19  ;;  %18022 = vmatpush3.msra.mxu1 %v21838_v28 }
 0x5ad   : > { %v8128_v53 = vmul.f32 %v20096_v26, %v21751_v61  ;;  %18026 = vmatprep.subr.mxu1 %v21824_v22 }
 0x5af   : > { %v10123_v24 = vsel %vm7918_vm14, %v8128_v53, 0 }
 0x5b0   : > { %v20098_v40 = vpop.eup %20097  ;;  %v21951_v45 = vand.u32 4294901760, %v10123_v24 }
 0x5b1   : > { %v8127_v17 = vmul.f32 %v20098_v40, %v21755_v20  ;;  %v10710_v20 = vsub.f32 %v21948_v35, %v21955_v47 }
 0x5b2   : > { %v10202_v50 = vsub.f32 %v10123_v24, %v21951_v45 }
 0x5b3   : > { %18024 = vmatmul.mubr.f32.vlgmr.msra.gmra.mrb[20].mxu1 %v21914_v52  ;;  %v10120_v61 = vsel %vm7918_vm14, %v8127_v17, 0  ;;  %v21965_v42 = vand.u32 4294901760, %v10710_v20 }
 0x5b4   : > { %18028 = vmatprep.mubr.f32.mxu1 %v21903_v19  ;;  %18027 = vmatpush3.msra.mxu1 %v21824_v22  ;;  %v10191_v28 = vand.u32 4294901760, %v10120_v61  ;;  %v10203_v63 = vand.u32 4294901760, %v10202_v50  ;;  %v21978_v19 = vand.u32 4294901760, %v20125_v9 }
 0x5b5   : > { %18061 = vmatprep.subr.mxu1 %v21941_v29 }
 0x5b6   : > { %v10192_v15 = vsub.f32 %v10120_v61, %v10191_v28  ;;  %v10204_v13 = vsub.f32 %v10202_v50, %v10203_v63  ;;  %v21983_v46 = vsub.f32 %v20125_v9, %v21978_v19 }
 0x5b8   : > { %v10193_v55 = vand.u32 4294901760, %v10192_v15  ;;  %v10205_v51 = vand.u32 4294901760, %v10204_v13 }
 0x5ba   : > { %v10194_v60 = vsub.f32 %v10192_v15, %v10193_v55 }
 0x5bb   : > { %18029 = vmatmul.mubr.f32.vlgmr.msra.gmra.mrb[20].mxu1 %v21914_v52  ;;  %v21990_v52 = vand.u32 4294901760, %v21983_v46 }
 0x5bc   : > { %v10195_v4 = vand.u32 4294901760, %v10194_v60  ;;  %18062 = vmatpush3.msra.mxu1 %v21941_v29 }
 0x5bd   : > { %18066 = vmatprep.subr.mxu1 %v21965_v42 }
 0x5be   : > { %18033 = vmatprep.mubr.f32.mxu0 %v10195_v4 }
 0x5bf   : > { %18034 = vmatmul.mubr.f32.vlgmr.msra.gmra.mrb[22].mxu0 %v10205_v51  ;;  %v20127_v51 = vld [vmem:[%s20960_s19 + $0x40] sm:$0xff] }
 0x5c0   : > { %18038 = vmatprep.mubr.f32.mxu0 %v10191_v28  ;;  %18037 = vmatpush3.msra.mxu0 %v21918_v44  ;;  %v11205_v44 = vsub.f32 %v21983_v46, %v21990_v52 }
 0x5c1   : > { %18041 = vmatprep.subr.mxu0 %v21895_v32 }
 0x5c2   : > { %v11206_v1 = vand.u32 4294901760, %v11205_v44 }
 0x5c7   : > { %18039 = vmatmul.mubr.f32.vlgmr.msra.gmra.mrb[22].mxu0 %v21951_v45 }
 0x5c8   : > { %18043 = vmatprep.mubr.f32.mxu0 %v10192_v15  ;;  %18042 = vmatpush3.msra.mxu0 %v21895_v32 }
 0x5c9   : > { %18046 = vmatprep.subr.mxu0 %v21890_v11 }
 0x5ce   : > { %v8071_v22 = vpop.xlane.xlu0 %8070 }
 0x5cf   : > { %20099 = vrcp.f32 %v8071_v22  ;;  %18044 = vmatmul.mubr.f32.vlgmr.msra.gmra.mrb[22].mxu0 %v10202_v50  ;;  %v22042_v22 = vand.u32 4294901760, %v20127_v51 }
 0x5d0   : > { %18048 = vmatprep.mubr.f32.mxu0 %v10193_v55  ;;  %18047 = vmatpush3.msra.mxu0 %v21890_v11 }
 0x5d1   : > { %18051 = vmatprep.subr.mxu0 %v21901_v23 }
 0x5d2   : > { %v8074_v14 = vpop.xlane.xlu0 %8073 }
 0x5d3   : > { %20101 = vrcp.f32 %v8074_v14 }
 0x5d6   : > { %v8077_v36 = vpop.xlane.xlu1 %8076 }
 0x5d7   : > { %20103 = vrcp.f32 %v8077_v36  ;;  %18049 = vmatmul.mubr.f32.vlgmr.msra.gmra.mrb[22].mxu0 %v10203_v63 }
 0x5d8   : > { %18053 = vmatprep.mubr.f32.mxu0 %v10191_v28  ;;  %18052 = vmatpush3.msra.mxu0 %v21901_v23 }
 0x5d9   : > { %v20100_v32 = vpop.eup %20099  ;;  %18056 = vmatprep.subr.mxu0 %v21890_v11 }
 0x5da   : > { %v8129_v34 = vmul.f32 %v20100_v32, %v21802_v12  ;;  %v8080_v38 = vpop.xlane.xlu0 %8079 }
 0x5db   : > { %20105 = vrcp.f32 %v8080_v38 }
 0x5dc   : > { %v10615_v18 = vsel %vm7918_vm14, %v8129_v34, 0 }
 0x5dd   : > { %v20102_v57 = vpop.eup %20101  ;;  %v21987_v31 = vand.u32 4294901760, %v10615_v18 }
 0x5de   : > { %v8130_v23 = vmul.f32 %v20102_v57, %v21806_v59 }
 0x5df   : > { %18054 = vmatmul.mubr.f32.vlgmr.msra.gmra.mrb[22].mxu0 %v21951_v45  ;;  %v10687_v2 = vsub.f32 %v10615_v18, %v21987_v31  ;;  %v12193_v18 = vsub.f32 %v20127_v51, %v22042_v22 }
 0x5e0   : > { %18058 = vmatprep.mubr.f32.mxu0 %v10191_v28  ;;  %18057 = vmatpush3.msra.mxu0 %v21890_v11  ;;  %v10618_v12 = vsel %vm7918_vm14, %v8130_v23, 0 }
 0x5e1   : > { %v20104_v56 = vpop.eup %20103  ;;  %v10688_v39 = vand.u32 4294901760, %v10687_v2  ;;  %v21997_v7 = vand.u32 4294901760, %v10618_v12  ;;  %18091 = vmatprep.subr.mxu0 %v21978_v19  ;;  %v22077_v44 = vand.u32 4294901760, %v12193_v18 }
 0x5e2   : > { %v8131_v59 = vmul.f32 %v20104_v56, %v21813_v21 }
 0x5e3   : > { %v10689_v0 = vsub.f32 %v10687_v2, %v10688_v39  ;;  %v10697_v54 = vsub.f32 %v10618_v12, %v21997_v7 }
 0x5e4   : > { %v11110_v6 = vsel %vm7918_vm14, %v8131_v59, 0 }
 0x5e5   : > { %v20106_v10 = vpop.eup %20105  ;;  %v10690_v11 = vand.u32 4294901760, %v10689_v0  ;;  %v10698_v43 = vand.u32 4294901760, %v10697_v54  ;;  %v22005_v58 = vand.u32 4294901760, %v11110_v6 }
 0x5e6   : > { %v8132_v62 = vmul.f32 %v20106_v10, %v21817_v30 }
 0x5e7   : > { %18059 = vmatmul.mubr.f32.vlgmr.msra.gmra.mrb[22].mxu0 %v21951_v45  ;;  %18063 = vmatprep.mubr.f32.mxu1 %v10690_v11  ;;  %v10699_v49 = vsub.f32 %v10697_v54, %v10698_v43  ;;  %v11182_v48 = vsub.f32 %v11110_v6, %v22005_v58 }
 0x5e8   : > { %18092 = vmatpush3.msra.mxu0 %v21978_v19  ;;  %v11113_v21 = vsel %vm7918_vm14, %v8132_v62, 0 }
 0x5e9   : > { %v10700_v16 = vand.u32 4294901760, %v10699_v49  ;;  %v11183_v26 = vand.u32 4294901760, %v11182_v48  ;;  %v22012_v53 = vand.u32 4294901760, %v11113_v21  ;;  %18096 = vmatprep.subr.mxu0 %v11206_v1 }
 0x5eb   : > { %18064 = vmatmul.mubr.f32.vlgmr.msra.gmra.mrb[22].mxu1 %v10700_v16  ;;  %v11184_v24 = vsub.f32 %v11182_v48, %v11183_v26  ;;  %v11192_v40 = vsub.f32 %v11113_v21, %v22012_v53 }
 0x5ec   : > { %18068 = vmatprep.mubr.f32.mxu1 %v21987_v31  ;;  %18067 = vmatpush3.msra.mxu1 %v21965_v42 }
 0x5ed   : > { %v11185_v30 = vand.u32 4294901760, %v11184_v24  ;;  %v11193_v45 = vand.u32 4294901760, %v11192_v40  ;;  %18071 = vmatprep.subr.mxu1 %v21948_v35 }
 0x5ef   : > { %18093 = vmatprep.mubr.f32.mxu0 %v11185_v30  ;;  %v11194_v17 = vsub.f32 %v11192_v40, %v11193_v45 }
 0x5f1   : > { %v11195_v50 = vand.u32 4294901760, %v11194_v17 }
 0x5f3   : > { %18069 = vmatmul.mubr.f32.vlgmr.msra.gmra.mrb[22].mxu1 %v21997_v7  ;;  %18094 = vmatmul.mubr.f32.vlgmr.msra.gmra.mrb[24].mxu0 %v11195_v50 }
 0x5f4   : > { %18073 = vmatprep.mubr.f32.mxu1 %v10687_v2  ;;  %18098 = vmatprep.mubr.f32.mxu0 %v22005_v58 }
 0x5f5   : > { %18072 = vmatpush3.msra.mxu1 %v21948_v35  ;;  %18097 = vmatpush3.msra.mxu0 %v11206_v1  ;;  %v20126_v35 = vld [vmem:[%s20960_s19 + $0x38] sm:$0xff] }
 0x5f6   : > { %18076 = vmatprep.subr.mxu1 %v21941_v29  ;;  %18101 = vmatprep.subr.mxu0 %v21983_v46  ;;  %v22029_v63 = vand.u32 4294901760, %v20126_v35 }
 0x5f8   : > { %v22038_v42 = vsub.f32 %v20126_v35, %v22029_v63 }
 0x5fa   : > { %v8083_v61 = vpop.xlane.xlu1 %8082  ;;  %v22050_v9 = vand.u32 4294901760, %v22038_v42 }
 0x5fb   : > { %20107 = vrcp.f32 %v8083_v61  ;;  %18074 = vmatmul.mubr.f32.vlgmr.msra.gmra.mrb[22].mxu1 %v10697_v54  ;;  %18099 = vmatmul.mubr.f32.vlgmr.msra.gmra.mrb[24].mxu0 %v22012_v53 }
 0x5fc   : > { %18078 = vmatprep.mubr.f32.mxu1 %v10688_v39  ;;  %18103 = vmatprep.mubr.f32.mxu0 %v11182_v48 }
 0x5fd   : > { %18077 = vmatpush3.msra.mxu1 %v21941_v29  ;;  %18102 = vmatpush3.msra.mxu0 %v21983_v46 }
 0x5fe   : > { %v8086_v28 = vpop.xlane.xlu0 %8085  ;;  %18081 = vmatprep.subr.mxu1 %v21955_v47  ;;  %18106 = vmatprep.subr.mxu0 %v21978_v19 }
 0x5ff   : > { %20109 = vrcp.f32 %v8086_v28 }
 0x602   : > { %v8089_v20 = vpop.xlane.xlu1 %8088 }
 0x603   : > { %20111 = vrcp.f32 %v8089_v20  ;;  %18079 = vmatmul.mubr.f32.vlgmr.msra.gmra.mrb[22].mxu1 %v10698_v43  ;;  %18104 = vmatmul.mubr.f32.vlgmr.msra.gmra.mrb[24].mxu0 %v11192_v40 }
 0x604   : > { %18083 = vmatprep.mubr.f32.mxu1 %v21987_v31  ;;  %18108 = vmatprep.mubr.f32.mxu0 %v11183_v26  ;;  %v20128_v26 = vld [vmem:[%s20960_s19 + $0x48] sm:$0xff]  ;;  %s23737_s19 = sld [smem:[#allocation33_spill]] }
 0x605   : > { %v20108_v15 = vpop.eup %20107  ;;  %18082 = vmatpush3.msra.mxu1 %v21955_v47  ;;  %18107 = vmatpush3.msra.mxu0 %v21978_v19 }
 0x606   : > { %v8133_v55 = vmul.f32 %v20108_v15, %v21867_v8  ;;  %v8092_v13 = vpop.xlane.xlu0 %8091  ;;  %18086 = vmatprep.subr.mxu1 %v21941_v29  ;;  %18111 = vmatprep.subr.mxu0 %v21990_v52 }
 0x607   : > { %20113 = vrcp.f32 %v8092_v13  ;;  %v22132_v13 = vld [vmem:[#allocation7] sm:$0xff] }
 0x608   : > { %v11605_v60 = vsel %vm7918_vm14, %v8133_v55, 0 }
 0x609   : > { %v20110_v4 = vpop.eup %20109  ;;  %v22044_v47 = vand.u32 4294901760, %v11605_v60 }
 0x60a   : > { %v8134_v14 = vmul.f32 %v20110_v4, %v21871_v41  ;;  %v22047_v8 = vpop.f32.mrb[18].mxu0 }
 0x60b   : > { %v22052_v36 = vpop.f32.mrb[19].mxu0  ;;  %18084 = vmatmul.mubr.f32.vlgmr.msra.gmra.mrb[22].mxu1 %v21997_v7  ;;  %18109 = vmatmul.mubr.f32.vlgmr.msra.gmra.mrb[24].mxu0 %v11193_v45  ;;  %v22056_v32 = vsub.f32 %v11605_v60, %v22044_v47 }
 0x60c   : > { %18088 = vmatprep.mubr.f32.mxu1 %v21987_v31  ;;  %18113 = vmatprep.mubr.f32.mxu0 %v22005_v58  ;;  %v11608_v46 = vsel %vm7918_vm14, %v8134_v14, 0  ;;  %v11700_v31 = vsub.f32 %v22038_v42, %v22050_v9  ;;  %v13098_v45 = vsel %vm552_vm0, %v22052_v36, 0  ;;  %v13158_v14 = vand.u32 4294901760, %v22132_v13 }
 0x60d   : > { %v20112_v41 = vpop.eup %20111  ;;  %18087 = vmatpush3.msra.mxu1 %v21941_v29  ;;  %18112 = vmatpush3.msra.mxu0 %v21990_v52  ;;  %v11678_v34 = vand.u32 4294901760, %v22056_v32  ;;  %v22064_v38 = vand.u32 4294901760, %v11608_v46  ;;  %v22122_v28 = vand.u32 4294901760, %v13098_v45 }
 0x60e   : > { %v8135_v57 = vmul.f32 %v20112_v41, %v21878_v25  ;;  %18121 = vmatprep.subr.mxu1 %v22029_v63  ;;  %18116 = vmatprep.subr.mxu0 %v21978_v19  ;;  %v11701_v59 = vand.u32 4294901760, %v11700_v31  ;;  %v22169_v31 = vld [vmem:[#allocation7 + $0x18] sm:$0xff] }
 0x60f   : > { %v11679_v23 = vsub.f32 %v22056_v32, %v11678_v34  ;;  %v11687_v29 = vsub.f32 %v11608_v46, %v22064_v38  ;;  %v22145_v51 = vsub.f32 %v13098_v45, %v22122_v28 }
 0x610   : > { %v12100_v52 = vsel %vm7918_vm14, %v8135_v57, 0  ;;  %v22167_v57 = vld [vmem:[#allocation7 + $0x10] sm:$0xff] }
 0x611   : > { %v20114_v2 = vpop.eup %20113  ;;  %v11680_v12 = vand.u32 4294901760, %v11679_v23  ;;  %v11688_v56 = vand.u32 4294901760, %v11687_v29  ;;  %v22075_v39 = vand.u32 4294901760, %v12100_v52  ;;  %v23497_v41 = vand.u32 4294901760, %v22145_v51 }
 0x612   : > { %v8136_v25 = vmul.f32 %v20114_v2, %v21882_v37  ;;  %v13167_v2 = vand.u32 4294901760, %v22169_v31 }
 0x613   : > { %18089 = vmatmul.mubr.f32.vlgmr.msra.gmra.mrb[22].mxu1 %v21997_v7  ;;  %18114 = vmatmul.mubr.f32.vlgmr.msra.gmra.mrb[24].mxu0 %v22012_v53  ;;  %v11689_v0 = vsub.f32 %v11687_v29, %v11688_v56  ;;  %v12172_v54 = vsub.f32 %v12100_v52, %v22075_v39  ;;  %v12195_v7 = vsub.f32 %v12193_v18, %v22077_v44  ;;  %v13164_v52 = vand.u32 4294901760, %v22167_v57 }
 0x614   : > { %18118 = vmatprep.mubr.f32.mxu0 %v22005_v58  ;;  %18123 = vmatprep.mubr.f32.mxu1 %v11680_v12  ;;  %v12103_v6 = vsel %vm7918_vm14, %v8136_v25, 0  ;;  %v22181_v12 = vld [vmem:[#allocation7 + $0x20] sm:$0xff] }
 0x615   : > { %18122 = vmatpush3.msra.mxu1 %v22029_v63  ;;  %v11690_v10 = vand.u32 4294901760, %v11689_v0  ;;  %18117 = vmatpush3.msra.mxu0 %v21978_v19  ;;  %v12173_v11 = vand.u32 4294901760, %v12172_v54  ;;  %v22087_v37 = vand.u32 4294901760, %v12103_v6  ;;  %v12196_v19 = vand.u32 4294901760, %v12195_v7 }
 0x616   : > { %18126 = vmatprep.subr.mxu1 %v11701_v59  ;;  %18151 = vmatprep.subr.mxu0 %v22042_v22 }
 0x617   : > { %18124 = vmatmul.mubr.f32.vlgmr.msra.gmra.mrb[24].mxu1 %v11690_v10  ;;  %v12174_v43 = vsub.f32 %v12172_v54, %v12173_v11  ;;  %v12182_v58 = vsub.f32 %v12103_v6, %v22087_v37  ;;  %v22207_v10 = vld [vmem:[#allocation7 + $0x30] sm:$0xff] }
 0x618   : > { %18128 = vmatprep.mubr.f32.mxu1 %v22044_v47  ;;  %18127 = vmatpush3.msra.mxu1 %v11701_v59 }
 0x619   : > { %v12175_v1 = vand.u32 4294901760, %v12174_v43  ;;  %v12183_v62 = vand.u32 4294901760, %v12182_v58  ;;  %18131 = vmatprep.subr.mxu1 %v22038_v42 }
 0x61b   : > { %18119 = vmatmul.mubr.f32.vlgmr.msra.gmra.mrb[24].mxu0 %v22012_v53  ;;  %v12184_v49 = vsub.f32 %v12182_v58, %v12183_v62  ;;  %v22106_v53 = vand.u32 4294901760, %v20128_v26 }
 0x61c   : > { %18153 = vmatprep.mubr.f32.mxu0 %v12175_v1  ;;  %18152 = vmatpush3.msra.mxu0 %v22042_v22  ;;  %v13176_v1 = vand.u32 4294901760, %v22207_v10 }
 0x61d   : > { %v12185_v48 = vand.u32 4294901760, %v12184_v49  ;;  %18156 = vmatprep.subr.mxu0 %v12196_v19  ;;  %v22115_v30 = vsub.f32 %v20128_v26, %v22106_v53 }
 0x61f   : > { %18129 = vmatmul.mubr.f32.vlgmr.msra.gmra.mrb[24].mxu1 %v22064_v38  ;;  %18154 = vmatmul.mubr.f32.vlgmr.msra.gmra.mrb[26].mxu0 %v12185_v48  ;;  %v22126_v20 = vand.u32 4294901760, %v22115_v30 }
 0x620   : > { %18133 = vmatprep.mubr.f32.mxu1 %v22056_v32  ;;  %18158 = vmatprep.mubr.f32.mxu0 %v22075_v39 }
 0x621   : > { %18132 = vmatpush3.msra.mxu1 %v22038_v42  ;;  %18157 = vmatpush3.msra.mxu0 %v12196_v19  ;;  %v22134_v42 = vld [vmem:[#allocation7 + $0x8] sm:$0xff] }
 0x622   : > { %18136 = vmatprep.subr.mxu1 %v22029_v63  ;;  %18161 = vmatprep.subr.mxu0 %v12193_v18 }
 0x626   : > { %v8095_v21 = vpop.xlane.xlu1 %8094 }
 0x627   : > { %20115 = vrcp.f32 %v8095_v21  ;;  %18134 = vmatmul.mubr.f32.vlgmr.msra.gmra.mrb[24].mxu1 %v11687_v29  ;;  %18159 = vmatmul.mubr.f32.vlgmr.msra.gmra.mrb[26].mxu0 %v22087_v37 }
 0x628   : > { %18138 = vmatprep.mubr.f32.mxu1 %v11678_v34  ;;  %18163 = vmatprep.mubr.f32.mxu0 %v12172_v54 }
 0x629   : > { %18137 = vmatpush3.msra.mxu1 %v22029_v63  ;;  %18162 = vmatpush3.msra.mxu0 %v12193_v18 }
 0x62a   : > { %v8098_v16 = vpop.xlane.xlu0 %8097  ;;  %18141 = vmatprep.subr.mxu1 %v22050_v9  ;;  %18166 = vmatprep.subr.mxu0 %v22042_v22 }
 0x62b   : > { %20117 = vrcp.f32 %v8098_v16 }
 0x62f   : > { %18139 = vmatmul.mubr.f32.vlgmr.msra.gmra.mrb[24].mxu1 %v11688_v56  ;;  %18164 = vmatmul.mubr.f32.vlgmr.msra.gmra.mrb[26].mxu0 %v12182_v58  ;;  %v13101_v56 = vsel %vm552_vm0, %v22047_v8, 0  ;;  %v22201_v8 = vpack.c.bf16 %v13167_v2, %v13164_v52 }
 0x630   : > { %18143 = vmatprep.mubr.f32.mxu1 %v22044_v47  ;;  %18168 = vmatprep.mubr.f32.mxu0 %v12173_v11  ;;  %v22195_v59 = vand.u32 4294901760, %v13101_v56  ;;  %v22209_v11 = vld [vmem:[#allocation7 + $0x38] sm:$0xff] }
 0x631   : > { %v20116_v24 = vpop.eup %20115  ;;  %18142 = vmatpush3.msra.mxu1 %v22050_v9  ;;  %18167 = vmatpush3.msra.mxu0 %v22042_v22  ;;  %v12690_v9 = vsub.f32 %v22115_v30, %v22126_v20 }
 0x632   : > { %v8137_v40 = vmul.f32 %v20116_v24, %v21927_v27  ;;  %18146 = vmatprep.subr.mxu1 %v22029_v63  ;;  %18171 = vmatprep.subr.mxu0 %v22077_v44  ;;  %v22220_v43 = vsub.f32 %v13101_v56, %v22195_v59 }
 0x633   : > { %v12691_v18 = vand.u32 4294901760, %v12690_v9 }
 0x634   : > { %v12595_v17 = vsel %vm7918_vm14, %v8137_v40, 0  ;;  %v23493_v19 = vand.u32 4294901760, %v22220_v43 }
 0x635   : > { %v20118_v50 = vpop.eup %20117  ;;  %v22120_v61 = vand.u32 4294901760, %v12595_v17 }
 0x636   : > { %v8138_v35 = vmul.f32 %v20118_v50, %v21931_v5  ;;  %v17970_v27 = vpop.f32.mrb[18].mxu1  ;;  %v13243_v16 = vsub.f32 %v22220_v43, %v23493_v19 }
 0x637   : > { %v9119_v15 = vpop.f32.mrb[19].mxu1  ;;  %18144 = vmatmul.mubr.f32.vlgmr.msra.gmra.mrb[24].mxu1 %v22064_v38  ;;  %18169 = vmatmul.mubr.f32.vlgmr.msra.gmra.mrb[26].mxu0 %v12183_v62  ;;  %v22130_v55 = vsub.f32 %v12595_v17, %v22120_v61  ;;  %v13107_v0 = vsel %vm552_vm0, %v17970_v27, 0 }
 0x638   : > { %v12598_v60 = vsel %vm7918_vm14, %v8138_v35, 0  ;;  %18148 = vmatprep.mubr.f32.mxu1 %v22044_v47  ;;  %18173 = vmatprep.mubr.f32.mxu0 %v22075_v39  ;;  %v13161_v47 = vand.u32 4294901760, %v22134_v42  ;;  %v22222_v58 = vand.u32 4294901760, %v13107_v0  ;;  %v13244_v40 = vand.u32 4294901760, %v13243_v16 }
 0x639   : > { %v22139_v5 = vand.u32 4294901760, %v12598_v60  ;;  %18147 = vmatpush3.msra.mxu1 %v22029_v63  ;;  %18172 = vmatpush3.msra.mxu0 %v22077_v44  ;;  %v12668_v4 = vand.u32 4294901760, %v22130_v55  ;;  %v13170_v44 = vand.u32 4294901760, %v22181_v12 }
 0x63a   : > { %18181 = vmatprep.subr.mxu1 %v22106_v53  ;;  %18176 = vmatprep.subr.mxu0 %v22042_v22  ;;  %v22165_v34 = vpack.c.bf16 %v13161_v47, %v13158_v14  ;;  %v22235_v49 = vsub.f32 %v13107_v0, %v22222_v58 }
 0x63b   : > { %v12669_v63 = vsub.f32 %v22130_v55, %v12668_v4  ;;  %v22157_v36 = vsub.f32 %v12598_v60, %v22139_v5 }
 0x63c   : > { %v23488_v26 = vand.u32 4294901760, %v22235_v49 }
 0x63d   : > { %v12670_v32 = vand.u32 4294901760, %v12669_v63  ;;  %v12678_v46 = vand.u32 4294901760, %v22157_v36 }
 0x63f   : > { %18149 = vmatmul.mubr.f32.vlgmr.msra.gmra.mrb[24].mxu1 %v22064_v38  ;;  %18174 = vmatmul.mubr.f32.vlgmr.msra.gmra.mrb[26].mxu0 %v22087_v37  ;;  %v12679_v23 = vsub.f32 %v22157_v36, %v12678_v46  ;;  %v22183_v38 = vld [vmem:[#allocation7 + $0x28] sm:$0xff] }
 0x640   : > { %18178 = vmatprep.mubr.f32.mxu0 %v22075_v39  ;;  %18183 = vmatprep.mubr.f32.mxu1 %v12670_v32  ;;  %v13233_v39 = vsub.f32 %v22145_v51, %v23497_v41  ;;  %v13173_v25 = vand.u32 4294901760, %v22183_v38 }
 0x641   : > { %18182 = vmatpush3.msra.mxu1 %v22106_v53  ;;  %v12680_v29 = vand.u32 4294901760, %v12679_v23  ;;  %18177 = vmatpush3.msra.mxu0 %v22042_v22  ;;  %v13104_v22 = vsel %vm552_vm0, %v9119_v15, 0 }
 0x642   : > { %19148 = vmatprep.subr.bf16.mxu0 %v22165_v34  ;;  %18186 = vmatprep.subr.mxu1 %v12691_v18  ;;  %v22205_v54 = vand.u32 4294901760, %v13104_v22  ;;  %v13234_v6 = vand.u32 4294901760, %v13233_v39  ;;  %v22217_v7 = vpack.c.bf16 %v13173_v25, %v13170_v44 }
 0x643   : > { %18184 = vmatmul.mubr.f32.vlgmr.msra.gmra.mrb[26].mxu1 %v12680_v29 }
 0x644   : > { %18188 = vmatprep.mubr.f32.mxu1 %v22120_v61  ;;  %18187 = vmatpush3.msra.mxu1 %v12691_v18  ;;  %v22228_v62 = vsub.f32 %v13104_v22, %v22205_v54 }
 0x645   : > { %18191 = vmatprep.subr.mxu1 %v22115_v30 }
 0x646   : > { %v23491_v21 = vand.u32 4294901760, %v22228_v62 }
 0x647   : > { %18179 = vmatmul.mubr.f32.vlgmr.msra.gmra.mrb[26].mxu0 %v22087_v37  ;;  %v13179_v37 = vand.u32 4294901760, %v22209_v11 }
 0x648   : > { %19150 = vmatpush3.bf16.msra.mxu0 %v22165_v34  ;;  %18227 = vmatprep.mubr.f32.mxu0 %v13234_v6  ;;  %v13253_v24 = vsub.f32 %v22228_v62, %v23491_v21 }
 0x649   : > { %19152 = vmatprep.subr.bf16.mxu0 %v22201_v8  ;;  %v22243_v48 = vpack.c.bf16 %v13179_v37, %v13176_v1 }
 0x64a   : > { %v13254_v45 = vand.u32 4294901760, %v13253_v24 }
 0x64b   : > { %18189 = vmatmul.mubr.f32.vlgmr.msra.gmra.mrb[26].mxu1 %v22139_v5 }
 0x64c   : > { %19154 = vmatpush3.bf16.msra.mxu0 %v22201_v8  ;;  %18193 = vmatprep.mubr.f32.mxu1 %v22130_v55 }
 0x64d   : > { %19156 = vmatprep.subr.bf16.mxu0 %v22217_v7  ;;  %18192 = vmatpush3.msra.mxu1 %v22115_v30  ;;  %v13263_v30 = vsub.f32 %v22235_v49, %v23488_v26 }
 0x64e   : > { %18196 = vmatprep.subr.mxu1 %v22106_v53 }
 0x64f   : > { %v13264_v17 = vand.u32 4294901760, %v13263_v30 }
 0x650   : > { %19158 = vmatpush3.bf16.msra.mxu0 %v22217_v7 }
 0x651   : > { %19160 = vmatprep.subr.bf16.mxu0 %v22243_v48 }
 0x653   : > { %18194 = vmatmul.mubr.f32.vlgmr.msra.gmra.mrb[26].mxu1 %v22157_v36 }
 0x654   : > { %19162 = vmatpush3.bf16.msra.mxu0 %v22243_v48  ;;  %18198 = vmatprep.mubr.f32.mxu1 %v12668_v4 }
 0x655   : > { %18197 = vmatpush3.msra.mxu1 %v22106_v53 }
 0x656   : > { %18201 = vmatprep.subr.mxu1 %v22126_v20 }
 0x657   : > { %18228 = vmatmul.mubr.f32.vlgmr.msra.gmra.mrb[28].mxu0 %v13244_v40 }
 0x658   : > { %18230 = vmatprep.mubr.f32.mxu0 %v13254_v45  ;;  %v22317_v45 = vsub.f32 %v22132_v13, %v13158_v14 }
 0x65b   : > { %18231 = vmatmul.mubr.f32.gmra.mrb[30].mxu0 %v13264_v17  ;;  %18199 = vmatmul.mubr.f32.vlgmr.msra.gmra.mrb[26].mxu1 %v12678_v46  ;;  %v22322_v17 = vsub.f32 %v22134_v42, %v13161_v47 }
 0x65c   : > { %18203 = vmatprep.mubr.f32.mxu1 %v22120_v61  ;;  %18202 = vmatpush3.msra.mxu1 %v22126_v20 }
 0x65d   : > { %18206 = vmatprep.subr.mxu1 %v22106_v53  ;;  %v23498_v13 = vand.u32 4294901760, %v22322_v17 }
 0x65f   : > { %v13441_v47 = vsub.f32 %v22322_v17, %v23498_v13 }
 0x662   : > { %v18000_v50 = vpop.f32.mrb[20].mxu0 }
 0x663   : > { %v13113_v35 = vsel %vm552_vm0, %v18000_v50, 0  ;;  %v9614_v27 = vpop.f32.mrb[21].mxu0  ;;  %18204 = vmatmul.mubr.f32.vlgmr.msra.gmra.mrb[26].mxu1 %v22139_v5  ;;  %v22327_v50 = vsub.f32 %v22167_v57, %v13164_v52 }
 0x664   : > { %v22272_v15 = vand.u32 4294901760, %v13113_v35  ;;  %v13110_v55 = vsel %vm552_vm0, %v9614_v27, 0  ;;  %18208 = vmatprep.mubr.f32.mxu1 %v22120_v61  ;;  %18207 = vmatpush3.msra.mxu1 %v22106_v53  ;;  %v23501_v27 = vand.u32 4294901760, %v22317_v45 }
 0x665   : > { %v22277_v60 = vand.u32 4294901760, %v13110_v55  ;;  %v23496_v14 = vand.u32 4294901760, %v22327_v50 }
 0x666   : > { %v22280_v20 = vsub.f32 %v13113_v35, %v22272_v15  ;;  %v22332_v35 = vsub.f32 %v22169_v31, %v13167_v2  ;;  %v13434_v42 = vsub.f32 %v22317_v45, %v23501_v27  ;;  %v13442_v2 = vand.u32 4294901760, %v13441_v47 }
 0x667   : > { %v22283_v4 = vsub.f32 %v13110_v55, %v22277_v60  ;;  %v13448_v57 = vsub.f32 %v22327_v50, %v23496_v14 }
 0x668   : > { %v23482_v9 = vand.u32 4294901760, %v22280_v20  ;;  %v23495_v55 = vand.u32 4294901760, %v22332_v35  ;;  %v13435_v52 = vand.u32 4294901760, %v13434_v42 }
 0x669   : > { %v23486_v63 = vand.u32 4294901760, %v22283_v4 }
 0x66a   : > { %v13283_v36 = vsub.f32 %v22280_v20, %v23482_v9  ;;  %v13455_v31 = vsub.f32 %v22332_v35, %v23495_v55 }
 0x66b   : > { %18209 = vmatmul.mubr.f32.vlgmr.msra.gmra.mrb[26].mxu1 %v22139_v5  ;;  %v13273_v53 = vsub.f32 %v22283_v4, %v23486_v63 }
 0x66c   : > { %v13284_v32 = vand.u32 4294901760, %v13283_v36  ;;  %v13449_v36 = vand.u32 4294901760, %v13448_v57  ;;  %v22367_v57 = vsub.f32 %v22181_v12, %v13170_v44  ;;  %v22391_v44 = vsub.f32 %v22207_v10, %v13176_v1 }
 0x66d   : > { %v13274_v61 = vand.u32 4294901760, %v13273_v53  ;;  %v13456_v53 = vand.u32 4294901760, %v13455_v31  ;;  %v22372_v31 = vsub.f32 %v22183_v38, %v13173_v25 }
 0x66f   : > { %18233 = vmatprep.mubr.f32.mxu0 %v13274_v61  ;;  %v19163_v61 = vpack.c.bf16 %v13442_v2, %v13435_v52 }
 0x670   : > { %18234 = vmatmul.mubr.f32.gmra.mrb[32].mxu0 %v13284_v32  ;;  %v19167_v32 = vpack.c.bf16 %v13456_v53, %v13449_v36  ;;  %v23490_v36 = vand.u32 4294901760, %v22367_v57  ;;  %v23489_v53 = vand.u32 4294901760, %v22372_v31 }
 0x671   : > { %19164 = vmatprep.subr.bf16.mxu0 %v19163_v61 }
 0x672   : > { %19166 = vmatpush3.bf16.msra.mxu0 %v19163_v61  ;;  %v13462_v12 = vsub.f32 %v22367_v57, %v23490_v36  ;;  %v13469_v38 = vsub.f32 %v22372_v31, %v23489_v53 }
 0x673   : > { %19168 = vmatprep.subr.bf16.mxu0 %v19167_v32 }
 0x676   : > { %19170 = vmatpush3.bf16.msra.mxu0 %v19167_v32  ;;  %v22396_v32 = vsub.f32 %v22209_v11, %v13179_v37 }
 0x678   : > { %23616 = vst [vmem:[#allocation14_spill] sm:$0xff] %v22396_v32 }
 0x68e   : > { %v18030_v46 = vpop.f32.mrb[20].mxu1 }
 0x68f   : > { %v13119_v18 = vsel %vm552_vm0, %v18030_v46, 0  ;;  %v10109_v23 = vpop.f32.mrb[21].mxu1 }
 0x690   : > { %v22295_v29 = vand.u32 4294901760, %v13119_v18  ;;  %v13116_v56 = vsel %vm552_vm0, %v10109_v23, 0 }
 0x691   : > { %v22298_v39 = vand.u32 4294901760, %v13116_v56 }
 0x692   : > { %v22301_v5 = vsub.f32 %v13119_v18, %v22295_v29 }
 0x693   : > { %v22304_v22 = vsub.f32 %v13116_v56, %v22298_v39 }
 0x694   : > { %v23480_v0 = vand.u32 4294901760, %v22301_v5 }
 0x695   : > { %v23481_v6 = vand.u32 4294901760, %v22304_v22 }
 0x696   : > { %v13303_v16 = vsub.f32 %v22301_v5, %v23480_v0 }
 0x697   : > { %v13293_v24 = vsub.f32 %v22304_v22, %v23481_v6 }
 0x698   : > { %v13304_v30 = vand.u32 4294901760, %v13303_v16 }
 0x699   : > { %v13294_v40 = vand.u32 4294901760, %v13293_v24 }
 0x69b   : > { %18236 = vmatprep.mubr.f32.mxu0 %v13294_v40 }
 0x69c   : > { %18237 = vmatmul.mubr.f32.gmra.mrb[34].mxu0 %v13304_v30 }
 0x6ba   : > { %v18060_v46 = vpop.f32.mrb[22].mxu0 }
 0x6bb   : > { %v13125_v18 = vsel %vm552_vm0, %v18060_v46, 0  ;;  %v10604_v23 = vpop.f32.mrb[23].mxu0  ;;  %v13463_v46 = vand.u32 4294901760, %v13462_v12  ;;  %v22413_v12 = vpack.c.bf16 %v22332_v35, %v22327_v50 }
 0x6bc   : > { %v22351_v56 = vand.u32 4294901760, %v13125_v18  ;;  %v13122_v16 = vsel %vm552_vm0, %v10604_v23, 0  ;;  %v23484_v23 = vand.u32 4294901760, %v22391_v44 }
 0x6bd   : > { %v22354_v24 = vand.u32 4294901760, %v13122_v16 }
 0x6be   : > { %v22357_v40 = vsub.f32 %v13125_v18, %v22351_v56  ;;  %v13470_v18 = vand.u32 4294901760, %v13469_v38  ;;  %v13476_v10 = vsub.f32 %v22391_v44, %v23484_v23  ;;  %v22447_v23 = vpack.c.bf16 %v22396_v32, %v22391_v44 }
 0x6bf   : > { %v22360_v30 = vsub.f32 %v13122_v16, %v22354_v24  ;;  %v23483_v16 = vand.u32 4294901760, %v22396_v32 }
 0x6c0   : > { %v23478_v42 = vand.u32 4294901760, %v22357_v40  ;;  %v13477_v11 = vand.u32 4294901760, %v13476_v10  ;;  %v22421_v10 = vpack.c.bf16 %v22372_v31, %v22367_v57 }
 0x6c1   : > { %v23479_v47 = vand.u32 4294901760, %v22360_v30  ;;  %v13483_v1 = vsub.f32 %v22396_v32, %v23483_v16 }
 0x6c2   : > { %v13323_v52 = vsub.f32 %v22357_v40, %v23478_v42 }
 0x6c3   : > { %v13313_v2 = vsub.f32 %v22360_v30, %v23479_v47  ;;  %v13484_v37 = vand.u32 4294901760, %v13483_v1 }
 0x6c4   : > { %v13324_v25 = vand.u32 4294901760, %v13323_v52 }
 0x6c5   : > { %v13314_v61 = vand.u32 4294901760, %v13313_v2  ;;  %v19171_v2 = vpack.c.bf16 %v13470_v18, %v13463_v46  ;;  %v19175_v52 = vpack.c.bf16 %v13484_v37, %v13477_v11 }
 0x6c7   : > { %18239 = vmatprep.mubr.f32.mxu0 %v13314_v61  ;;  %19172 = vmatprep.subr.bf16.mxu0 %v19171_v2  ;;  %v22408_v61 = vpack.c.bf16 %v22322_v17, %v22317_v45 }
 0x6c8   : > { %18240 = vmatmul.mubr.f32.gmra.mrb[36].mxu0 %v13324_v25 }
 0x6c9   : > { %19174 = vmatpush3.bf16.msra.mxu0 %v19171_v2 }
 0x6ca   : > { %19176 = vmatprep.subr.bf16.mxu0 %v19175_v52 }
 0x6cd   : > { %19178 = vmatpush3.bf16.msra.mxu0 %v19175_v52 }
 0x6ce   : > { %19180 = vmatprep.subr.bf16.mxu0 %v22408_v61 }
 0x6e6   : > { %v18090_v38 = vpop.f32.mrb[22].mxu1 }
 0x6e7   : > { %v13131_v25 = vsel %vm552_vm0, %v18090_v38, 0  ;;  %v11099_v46 = vpop.f32.mrb[23].mxu1 }
 0x6e8   : > { %v22416_v18 = vand.u32 4294901760, %v13131_v25  ;;  %v13128_v2 = vsel %vm552_vm0, %v11099_v46, 0 }
 0x6e9   : > { %v22423_v1 = vand.u32 4294901760, %v13128_v2 }
 0x6ea   : > { %v22426_v11 = vsub.f32 %v13131_v25, %v22416_v18 }
 0x6eb   : > { %v22429_v37 = vsub.f32 %v13128_v2, %v22423_v1 }
 0x6ec   : > { %v23485_v52 = vand.u32 4294901760, %v22426_v11 }
 0x6ed   : > { %v23487_v38 = vand.u32 4294901760, %v22429_v37 }
 0x6ee   : > { %v18120_v42 = vpop.f32.mrb[24].mxu0  ;;  %v13343_v46 = vsub.f32 %v22426_v11, %v23485_v52 }
 0x6ef   : > { %v13137_v47 = vsel %vm552_vm0, %v18120_v42, 0  ;;  %v11594_v0 = vpop.f32.mrb[25].mxu0  ;;  %v13333_v25 = vsub.f32 %v22429_v37, %v23487_v38 }
 0x6f0   : > { %v22440_v6 = vand.u32 4294901760, %v13137_v47  ;;  %v13134_v2 = vsel %vm552_vm0, %v11594_v0, 0  ;;  %v13344_v42 = vand.u32 4294901760, %v13343_v46 }
 0x6f1   : > { %v22443_v9 = vand.u32 4294901760, %v13134_v2  ;;  %v13334_v16 = vand.u32 4294901760, %v13333_v25 }
 0x6f2   : > { %v22450_v52 = vsub.f32 %v13137_v47, %v22440_v6 }
 0x6f3   : > { %v22453_v63 = vsub.f32 %v13134_v2, %v22443_v9  ;;  %18242 = vmatprep.mubr.f32.mxu0 %v13334_v16 }
 0x6f4   : > { %v23492_v38 = vand.u32 4294901760, %v22450_v52  ;;  %18243 = vmatmul.mubr.f32.gmra.mrb[38].mxu0 %v13344_v42 }
 0x6f5   : > { %v23494_v0 = vand.u32 4294901760, %v22453_v63 }
 0x6f6   : > { %v13363_v25 = vsub.f32 %v22450_v52, %v23492_v38 }
 0x6f7   : > { %v13353_v26 = vsub.f32 %v22453_v63, %v23494_v0 }
 0x6f8   : > { %v13364_v53 = vand.u32 4294901760, %v13363_v25 }
 0x6f9   : > { %v13354_v47 = vand.u32 4294901760, %v13353_v26 }
 0x6fb   : > { %18245 = vmatprep.mubr.f32.mxu0 %v13354_v47 }
 0x6fc   : > { %18246 = vmatmul.mubr.f32.gmra.mrb[40].mxu0 %v13364_v53 }
 0x712   : > { %v18150_v46 = vpop.f32.mrb[24].mxu1 }
 0x713   : > { %v13143_v16 = vsel %vm552_vm0, %v18150_v46, 0  ;;  %v12089_v2 = vpop.f32.mrb[25].mxu1 }
 0x714   : > { %v22464_v36 = vand.u32 4294901760, %v13143_v16  ;;  %v13140_v42 = vsel %vm552_vm0, %v12089_v2, 0 }
 0x715   : > { %v22467_v21 = vand.u32 4294901760, %v13140_v42 }
 0x716   : > { %v22470_v38 = vsub.f32 %v13143_v16, %v22464_v36 }
 0x717   : > { %v22473_v19 = vsub.f32 %v13140_v42, %v22467_v21 }
 0x718   : > { %v23499_v26 = vand.u32 4294901760, %v22470_v38 }
 0x719   : > { %v23500_v53 = vand.u32 4294901760, %v22473_v19 }
 0x71a   : > { %v18180_v25 = vpop.f32.mrb[26].mxu0  ;;  %v13383_v47 = vsub.f32 %v22470_v38, %v23499_v26 }
 0x71b   : > { %v13149_v46 = vsel %vm552_vm0, %v18180_v25, 0  ;;  %v12584_v2 = vpop.f32.mrb[27].mxu0  ;;  %v13373_v16 = vsub.f32 %v22473_v19, %v23500_v53 }
 0x71c   : > { %v22484_v0 = vand.u32 4294901760, %v13149_v46  ;;  %v13146_v42 = vsel %vm552_vm0, %v12584_v2, 0  ;;  %v13384_v13 = vand.u32 4294901760, %v13383_v47 }
 0x71d   : > { %v22487_v55 = vand.u32 4294901760, %v13146_v42  ;;  %v13374_v14 = vand.u32 4294901760, %v13373_v16 }
 0x71e   : > { %v22490_v41 = vsub.f32 %v13149_v46, %v22484_v0 }
 0x71f   : > { %v22493_v26 = vsub.f32 %v13146_v42, %v22487_v55  ;;  %18248 = vmatprep.mubr.f32.mxu0 %v13374_v14 }
 0x720   : > { %v23504_v25 = vand.u32 4294901760, %v22490_v41  ;;  %18249 = vmatmul.mubr.f32.gmra.mrb[42].mxu0 %v13384_v13 }
 0x721   : > { %v23508_v53 = vand.u32 4294901760, %v22493_v26 }
 0x722   : > { %v13403_v2 = vsub.f32 %v22490_v41, %v23504_v25 }
 0x723   : > { %v13393_v16 = vsub.f32 %v22493_v26, %v23508_v53 }
 0x724   : > { %v13404_v27 = vand.u32 4294901760, %v13403_v2 }
 0x725   : > { %v13394_v46 = vand.u32 4294901760, %v13393_v16 }
 0x727   : > { %18251 = vmatprep.mubr.f32.mxu0 %v13394_v46 }
 0x728   : > { %18252 = vmatmul.mubr.f32.gmra.mrb[44].mxu0 %v13404_v27 }
 0x73e   : > { %v18210_v47 = vpop.f32.mrb[26].mxu1 }
 0x73f   : > { %v13155_v14 = vsel %vm552_vm0, %v18210_v47, 0  ;;  %v13079_v42 = vpop.f32.mrb[27].mxu1 }
 0x740   : > { %v22504_v33 = vand.u32 4294901760, %v13155_v14  ;;  %v13152_v13 = vsel %vm552_vm0, %v13079_v42, 0 }
 0x741   : > { %v22507_v3 = vand.u32 4294901760, %v13152_v13 }
 0x742   : > { %v22510_v25 = vsub.f32 %v13155_v14, %v22504_v33 }
 0x743   : > { %v22513_v32 = vsub.f32 %v13152_v13, %v22507_v3 }
 0x744   : > { %v23506_v2 = vand.u32 4294901760, %v22510_v25 }
 0x745   : > { %v23507_v27 = vand.u32 4294901760, %v22513_v32 }
 0x746   : > { %v13423_v16 = vsub.f32 %v22510_v25, %v23506_v2 }
 0x747   : > { %v13413_v46 = vsub.f32 %v22513_v32, %v23507_v27 }
 0x748   : > { %v13424_v42 = vand.u32 4294901760, %v13423_v16  ;;  %v22599_v16 = vld [vmem:[%s23619_s27 + $0x18] sm:$0xff] }
 0x749   : > { %v13414_v47 = vand.u32 4294901760, %v13413_v46  ;;  %23623 = vst [vmem:[#allocation18_spill] sm:$0xff] %v22599_v16 }
 0x74b   : > { %18254 = vmatprep.mubr.f32.mxu0 %v13414_v47  ;;  %v22605_v47 = vld [vmem:[%s23619_s27 + $0x20] sm:$0xff] }
 0x74c   : > { %18255 = vmatmul.mubr.f32.gmra.mrb[46].mxu0 %v13424_v42  ;;  %v22610_v42 = vld [vmem:[%s23619_s27 + $0x28] sm:$0xff]  ;;  %v23524_v2 = vand.u32 4294901760, %v22605_v47 }
 0x74d   : > { %18273 = vmatprep.mubr.f32.mxu0 %v22122_v28  ;;  %v23523_v27 = vand.u32 4294901760, %v22610_v42 }
 0x750   : > { %18274 = vmatmul.mubr.f32.vlgmr.msra.gmra.mrb[28].mxu0 %v22195_v59 }
 0x751   : > { %18276 = vmatprep.mubr.f32.mxu0 %v22205_v54  ;;  %19182 = vmatpush3.bf16.msra.mxu0 %v22408_v61  ;;  %v23618_v61 = vand.u32 4294901760, %v22322_v17  ;;  %v22586_v17 = vld [vmem:[%s23619_s27 + $0x8] sm:$0xff] }
 0x752   : > { %19184 = vmatprep.subr.bf16.mxu0 %v22413_v12  ;;  %23621 = vst [vmem:[#allocation16_spill] sm:$0xff] %v22586_v17  ;;  %v23511_v13 = vand.u32 4294901760, %v22586_v17 }
 0x754   : > { %18277 = vmatmul.mubr.f32.gmra.mrb[30].mxu0 %v22222_v58 }
 0x755   : > { %18279 = vmatprep.mubr.f32.mxu0 %v22277_v60  ;;  %19186 = vmatpush3.bf16.msra.mxu0 %v22413_v12 }
 0x756   : > { %19188 = vmatprep.subr.bf16.mxu0 %v22421_v10 }
 0x758   : > { %18280 = vmatmul.mubr.f32.gmra.mrb[32].mxu0 %v22272_v15 }
 0x759   : > { %18282 = vmatprep.mubr.f32.mxu0 %v22298_v39  ;;  %19190 = vmatpush3.bf16.msra.mxu0 %v22421_v10  ;;  %v22591_v10 = vld [vmem:[%s23619_s27 + $0x10] sm:$0xff] }
 0x75a   : > { %19192 = vmatprep.subr.bf16.mxu0 %v22447_v23  ;;  %23622 = vst [vmem:[#allocation17_spill] sm:$0xff] %v22591_v10  ;;  %v23513_v46 = vand.u32 4294901760, %v22591_v10  ;;  %v23626_v10 = vand.u32 4294901760, %v22327_v50  ;;  %v23630_v50 = vand.u32 4294901760, %v22367_v57 }
 0x75c   : > { %18283 = vmatmul.mubr.f32.gmra.mrb[34].mxu0 %v22295_v29 }
 0x75d   : > { %18285 = vmatprep.mubr.f32.mxu0 %v22354_v24  ;;  %19194 = vmatpush3.bf16.msra.mxu0 %v22447_v23  ;;  %v23617_v23 = vand.u32 4294901760, %v22317_v45  ;;  %v22581_v45 = vld [vmem:[%s23619_s27] sm:$0xff] }
 0x75e   : > { %19196 = vmatprep.subr.bf16.mxu0 %v22165_v34  ;;  %23620 = vst [vmem:[#allocation15_spill] sm:$0xff] %v22581_v45  ;;  %v23514_v14 = vand.u32 4294901760, %v22581_v45  ;;  %v22631_v45 = vld [vmem:[%s23619_s27 + $0x30] sm:$0xff] }
 0x75f   : > { %v19211_v12 = vpack.c.bf16 %v23618_v61, %v23617_v23  ;;  %v23512_v23 = vand.u32 4294901760, %v22599_v16  ;;  %v23625_v16 = vand.u32 4294901760, %v22145_v51 }
 0x760   : > { %18286 = vmatmul.mubr.f32.gmra.mrb[36].mxu0 %v22351_v56  ;;  %v22617_v61 = vpack.c.bf16 %v23511_v13, %v23514_v14  ;;  %v22636_v13 = vld [vmem:[%s23619_s27 + $0x38] sm:$0xff] }
 0x761   : > { %18288 = vmatprep.mubr.f32.mxu0 %v22423_v1  ;;  %v22626_v53 = vpack.c.bf16 %v23512_v23, %v23513_v46  ;;  %v22646_v23 = vpack.c.bf16 %v23523_v27, %v23524_v2  ;;  %v14593_v46 = vand.u32 4294901760, %v22631_v45  ;;  %v14596_v14 = vand.u32 4294901760, %v22636_v13 }
 0x762   : > { %23624 = vst [vmem:[#allocation19_spill] sm:$0xff] %v22617_v61  ;;  %19244 = vmatprep.subr.bf16.mxu1 %v22617_v61  ;;  %v23628_v2 = vand.u32 4294901760, %v22220_v43 }
 0x763   : > { %19246 = vmatpush3.bf16.msra.mxu1 %v22617_v61  ;;  %v23627_v61 = vand.u32 4294901760, %v22332_v35  ;;  %v22663_v27 = vpack.c.bf16 %v14596_v14, %v14593_v46  ;;  %v23631_v35 = vand.u32 4294901760, %v22372_v31  ;;  %v23637_v31 = vand.u32 4294901760, %v22280_v20 }
 0x764   : > { %18289 = vmatmul.mubr.f32.gmra.mrb[38].mxu0 %v22416_v18  ;;  %19248 = vmatprep.subr.bf16.mxu1 %v22626_v53 }
 0x765   : > { %18291 = vmatprep.mubr.f32.mxu0 %v22443_v9  ;;  %v19215_v17 = vpack.c.bf16 %v23627_v61, %v23626_v10  ;;  %v19219_v10 = vpack.c.bf16 %v23631_v35, %v23630_v50  ;;  %v23638_v61 = vand.u32 4294901760, %v22304_v22 }
 0x767   : > { %19250 = vmatpush3.bf16.msra.mxu1 %v22626_v53 }
 0x768   : > { %18292 = vmatmul.mubr.f32.gmra.mrb[40].mxu0 %v22440_v6  ;;  %19252 = vmatprep.subr.bf16.mxu1 %v22646_v23 }
 0x769   : > { %18294 = vmatprep.mubr.f32.mxu0 %v22467_v21 }
 0x76b   : > { %19254 = vmatpush3.bf16.msra.mxu1 %v22646_v23 }
 0x76c   : > { %18295 = vmatmul.mubr.f32.gmra.mrb[42].mxu0 %v22464_v36  ;;  %19256 = vmatprep.subr.bf16.mxu1 %v22663_v27 }
 0x76d   : > { %18297 = vmatprep.mubr.f32.mxu0 %v22487_v55 }
 0x76f   : > { %19258 = vmatpush3.bf16.msra.mxu1 %v22663_v27 }
 0x770   : > { %18298 = vmatmul.mubr.f32.gmra.mrb[44].mxu0 %v22484_v0 }
 0x771   : > { %18300 = vmatprep.mubr.f32.mxu0 %v22507_v3 }
 0x774   : > { %18301 = vmatmul.mubr.f32.gmra.mrb[46].mxu0 %v22504_v33 }
 0x775   : > { %18319 = vmatprep.mubr.f32.mxu0 %v22145_v51  ;;  %v23629_v51 = vand.u32 4294901760, %v22228_v62 }
 0x778   : > { %18320 = vmatmul.mubr.f32.vlgmr.msra.gmra.mrb[28].mxu0 %v22220_v43  ;;  %v23633_v43 = vand.u32 4294901760, %v22283_v4 }
 0x779   : > { %18322 = vmatprep.mubr.f32.mxu0 %v22228_v62  ;;  %19198 = vmatpush3.bf16.msra.mxu0 %v22165_v34  ;;  %v23634_v62 = vand.u32 4294901760, %v22391_v44  ;;  %v23641_v44 = vand.u32 4294901760, %v22357_v40 }
 0x77a   : > { %19200 = vmatprep.subr.bf16.mxu0 %v22201_v8 }
 0x77c   : > { %18323 = vmatmul.mubr.f32.gmra.mrb[30].mxu0 %v22235_v49 }
 0x77d   : > { %18325 = vmatprep.mubr.f32.mxu0 %v22283_v4  ;;  %19202 = vmatpush3.bf16.msra.mxu0 %v22201_v8  ;;  %v23640_v4 = vand.u32 4294901760, %v22360_v30 }
 0x77e   : > { %19204 = vmatprep.subr.bf16.mxu0 %v22217_v7 }
 0x780   : > { %18326 = vmatmul.mubr.f32.gmra.mrb[32].mxu0 %v22280_v20  ;;  %v23642_v20 = vand.u32 4294901760, %v22429_v37 }
 0x781   : > { %18328 = vmatprep.mubr.f32.mxu0 %v22304_v22  ;;  %19206 = vmatpush3.bf16.msra.mxu0 %v22217_v7  ;;  %v23643_v22 = vand.u32 4294901760, %v22426_v11 }
 0x782   : > { %19208 = vmatprep.subr.bf16.mxu0 %v22243_v48 }
 0x784   : > { %18329 = vmatmul.mubr.f32.gmra.mrb[34].mxu0 %v22301_v5 }
 0x785   : > { %18331 = vmatprep.mubr.f32.mxu0 %v22360_v30  ;;  %19210 = vmatpush3.bf16.msra.mxu0 %v22243_v48  ;;  %v23646_v30 = vand.u32 4294901760, %v22473_v19 }
 0x786   : > { %19212 = vmatprep.subr.bf16.mxu0 %v19211_v12 }
 0x788   : > { %18332 = vmatmul.mubr.f32.gmra.mrb[36].mxu0 %v22357_v40  ;;  %v23648_v40 = vand.u32 4294901760, %v22493_v26 }
 0x789   : > { %18334 = vmatprep.mubr.f32.mxu0 %v22429_v37  ;;  %v23649_v37 = vand.u32 4294901760, %v22490_v41 }
 0x78c   : > { %18335 = vmatmul.mubr.f32.gmra.mrb[38].mxu0 %v22426_v11  ;;  %v23650_v11 = vand.u32 4294901760, %v22513_v32 }
 0x78d   : > { %18337 = vmatprep.mubr.f32.mxu0 %v22453_v63 }
 0x790   : > { %18338 = vmatmul.mubr.f32.gmra.mrb[40].mxu0 %v22450_v52 }
 0x791   : > { %18340 = vmatprep.mubr.f32.mxu0 %v22473_v19  ;;  %v14563_v19 = vld [vmem:[%s23619_s27 + $0x60] sm:$0xff] }
 0x794   : > { %18341 = vmatmul.mubr.f32.gmra.mrb[42].mxu0 %v22470_v38 }
 0x795   : > { %18343 = vmatprep.mubr.f32.mxu0 %v22493_v26 }
 0x798   : > { %18344 = vmatmul.mubr.f32.gmra.mrb[44].mxu0 %v22490_v41  ;;  %v14560_v41 = vld [vmem:[%s23619_s27 + $0x48] sm:$0xff] }
 0x799   : > { %18346 = vmatprep.mubr.f32.mxu0 %v22513_v32  ;;  %v23658_v32 = vld [vmem:[#allocation16_spill] sm:$0xff] }
 0x79c   : > { %18347 = vmatmul.mubr.f32.gmra.mrb[46].mxu0 %v22510_v25 }
 0x79d   : > { %18365 = vmatprep.mubr.f32.mxu0 %v23625_v16  ;;  %v23632_v16 = vand.u32 4294901760, %v22235_v49  ;;  %v23639_v49 = vand.u32 4294901760, %v22301_v5  ;;  %v23645_v5 = vand.u32 4294901760, %v22450_v52 }
 0x7a0   : > { %18366 = vmatmul.mubr.f32.vlgmr.msra.gmra.mrb[28].mxu0 %v23628_v2  ;;  %v23635_v2 = vld [vmem:[#allocation14_spill] sm:$0xff] }
 0x7a1   : > { %18368 = vmatprep.mubr.f32.mxu0 %v23629_v51  ;;  %19214 = vmatpush3.bf16.msra.mxu0 %v19211_v12  ;;  %v23636_v12 = vand.u32 4294901760, %v23635_v2  ;;  %v23647_v51 = vand.u32 4294901760, %v22470_v38 }
 0x7a2   : > { %19216 = vmatprep.subr.bf16.mxu0 %v19215_v17 }
 0x7a3   : > { %v19223_v57 = vpack.c.bf16 %v23636_v12, %v23634_v62 }
 0x7a4   : > { %18369 = vmatmul.mubr.f32.gmra.mrb[30].mxu0 %v23632_v16 }
 0x7a5   : > { %18371 = vmatprep.mubr.f32.mxu0 %v23633_v43  ;;  %19218 = vmatpush3.bf16.msra.mxu0 %v19215_v17  ;;  %v23644_v17 = vand.u32 4294901760, %v22453_v63  ;;  %v23651_v63 = vand.u32 4294901760, %v22510_v25 }
 0x7a6   : > { %19220 = vmatprep.subr.bf16.mxu0 %v19219_v10 }
 0x7a8   : > { %18372 = vmatmul.mubr.f32.gmra.mrb[32].mxu0 %v23637_v31 }
 0x7a9   : > { %18374 = vmatprep.mubr.f32.mxu0 %v23638_v61  ;;  %19222 = vmatpush3.bf16.msra.mxu0 %v19219_v10 }
 0x7aa   : > { %19224 = vmatprep.subr.bf16.mxu0 %v19223_v57 }
 0x7ac   : > { %18375 = vmatmul.mubr.f32.gmra.mrb[34].mxu0 %v23639_v49 }
 0x7ad   : > { %18377 = vmatprep.mubr.f32.mxu0 %v23640_v4  ;;  %19226 = vmatpush3.bf16.msra.mxu0 %v19223_v57 }
 0x7ae   : > { %19228 = vmatprep.subr.bf16.mxu0 %v22165_v34 }
 0x7b0   : > { %18378 = vmatmul.mubr.f32.gmra.mrb[36].mxu0 %v23641_v44 }
 0x7b1   : > { %18380 = vmatprep.mubr.f32.mxu0 %v23642_v20 }
 0x7b4   : > { %18381 = vmatmul.mubr.f32.gmra.mrb[38].mxu0 %v23643_v22 }
 0x7b5   : > { %18383 = vmatprep.mubr.f32.mxu0 %v23644_v17 }
 0x7b8   : > { %18384 = vmatmul.mubr.f32.gmra.mrb[40].mxu0 %v23645_v5 }
 0x7b9   : > { %18386 = vmatprep.mubr.f32.mxu0 %v23646_v30 }
 0x7bc   : > { %18387 = vmatmul.mubr.f32.gmra.mrb[42].mxu0 %v23647_v51 }
 0x7bd   : > { %18389 = vmatprep.mubr.f32.mxu0 %v23648_v40 }
 0x7c0   : > { %18390 = vmatmul.mubr.f32.gmra.mrb[44].mxu0 %v23649_v37 }
 0x7c1   : > { %18392 = vmatprep.mubr.f32.mxu0 %v23650_v11 }
 0x7c4   : > { %18393 = vmatmul.mubr.f32.gmra.mrb[46].mxu0 %v23651_v63 }
 0x7c5   : > { %18411 = vmatprep.mubr.f32.mxu0 %v22122_v28 }
 0x7c8   : > { %18412 = vmatmul.mubr.f32.vlgmr.msra.gmra.mrb[28].mxu0 %v22195_v59 }
 0x7c9   : > { %18414 = vmatprep.mubr.f32.mxu0 %v22205_v54  ;;  %19230 = vmatpush3.bf16.msra.mxu0 %v22165_v34 }
 0x7ca   : > { %19232 = vmatprep.subr.bf16.mxu0 %v22201_v8 }
 0x7cc   : > { %18415 = vmatmul.mubr.f32.gmra.mrb[30].mxu0 %v22222_v58 }
 0x7cd   : > { %18417 = vmatprep.mubr.f32.mxu0 %v22277_v60  ;;  %19234 = vmatpush3.bf16.msra.mxu0 %v22201_v8 }
 0x7ce   : > { %19236 = vmatprep.subr.bf16.mxu0 %v22217_v7 }
 0x7d0   : > { %18418 = vmatmul.mubr.f32.gmra.mrb[32].mxu0 %v22272_v15 }
 0x7d1   : > { %18420 = vmatprep.mubr.f32.mxu0 %v22298_v39  ;;  %19238 = vmatpush3.bf16.msra.mxu0 %v22217_v7 }
 0x7d2   : > { %19240 = vmatprep.subr.bf16.mxu0 %v22243_v48 }
 0x7d4   : > { %18421 = vmatmul.mubr.f32.gmra.mrb[34].mxu0 %v22295_v29 }
 0x7d5   : > { %18423 = vmatprep.mubr.f32.mxu0 %v22354_v24  ;;  %19242 = vmatpush3.bf16.msra.mxu0 %v22243_v48  ;;  %v14564_v48 = vld [vmem:[%s23619_s27 + $0x68] sm:$0xff] }
 0x7d8   : > { %18424 = vmatmul.mubr.f32.gmra.mrb[36].mxu0 %v22351_v56 }
 0x7d9   : > { %18426 = vmatprep.mubr.f32.mxu0 %v22423_v1 }
 0x7dc   : > { %18427 = vmatmul.mubr.f32.gmra.mrb[38].mxu0 %v22416_v18 }
 0x7dd   : > { %18429 = vmatprep.mubr.f32.mxu0 %v22443_v9 }
 0x7e0   : > { %18430 = vmatmul.mubr.f32.gmra.mrb[40].mxu0 %v22440_v6 }
 0x7e1   : > { %18432 = vmatprep.mubr.f32.mxu0 %v22467_v21 }
 0x7e4   : > { %18433 = vmatmul.mubr.f32.gmra.mrb[42].mxu0 %v22464_v36 }
 0x7e5   : > { %18435 = vmatprep.mubr.f32.mxu0 %v22487_v55 }
 0x7e8   : > { %18436 = vmatmul.mubr.f32.gmra.mrb[44].mxu0 %v22484_v0 }
 0x7e9   : > { %18438 = vmatprep.mubr.f32.mxu0 %v22507_v3 }
 0x7ec   : > { %18439 = vmatmul.mubr.f32.gmra.mrb[46].mxu0 %v22504_v33 }
 0x7ed   : > { %18457 = vmatprep.mubr.f32.mxu0 %v22122_v28  ;;  %v14559_v28 = vld [vmem:[%s23619_s27 + $0x40] sm:$0xff] }
 0x7ee   : > { %v14599_v34 = vand.u32 4294901760, %v14559_v28 }
 0x7f0   : > { %18458 = vmatmul.mubr.f32.vlgmr.msra.gmra.mrb[28].mxu0 %v22195_v59  ;;  %v14602_v59 = vand.u32 4294901760, %v14560_v41  ;;  %v22823_v10 = vsub.f32 %v14559_v28, %v14599_v34 }
 0x7f1   : > { %18460 = vmatprep.mubr.f32.mxu0 %v22205_v54  ;;  %v14561_v54 = vld [vmem:[%s23619_s27 + $0x50] sm:$0xff] }
 0x7f2   : > { %v22768_v8 = vpack.c.bf16 %v14602_v59, %v14599_v34  ;;  %23661 = vst [vmem:[#allocation22_spill] sm:$0xff] %v22823_v10  ;;  %v22825_v16 = vsub.f32 %v14560_v41, %v14602_v59  ;;  %v23532_v43 = vand.u32 4294901760, %v22823_v10 }
 0x7f4   : > { %18461 = vmatmul.mubr.f32.gmra.mrb[30].mxu0 %v22222_v58  ;;  %19260 = vmatprep.subr.bf16.mxu1 %v22768_v8  ;;  %23662 = vst [vmem:[#allocation23_spill] sm:$0xff] %v22825_v16  ;;  %v23531_v62 = vand.u32 4294901760, %v22825_v16  ;;  %v14915_v2 = vsub.f32 %v22823_v10, %v23532_v43 }
 0x7f5   : > { %18463 = vmatprep.mubr.f32.mxu0 %v22277_v60  ;;  %19262 = vmatpush3.bf16.msra.mxu1 %v22768_v8 }
 0x7f6   : > { %v14922_v12 = vsub.f32 %v22825_v16, %v23531_v62  ;;  %v14916_v61 = vand.u32 4294901760, %v14915_v2 }
 0x7f8   : > { %18464 = vmatmul.mubr.f32.gmra.mrb[32].mxu0 %v22272_v15  ;;  %v14614_v15 = vand.u32 4294901760, %v14564_v48  ;;  %v14923_v49 = vand.u32 4294901760, %v14922_v12  ;;  %v23673_v12 = vand.u32 4294901760, %v22605_v47 }
 0x7f9   : > { %18466 = vmatprep.mubr.f32.mxu0 %v22298_v39 }
 0x7fa   : > { %v22841_v20 = vpack.c.bf16 %v14923_v49, %v14916_v61  ;;  %v22848_v5 = vsub.f32 %v14564_v48, %v14614_v15  ;;  %v22912_v61 = vsub.f32 %v22605_v47, %v23673_v12  ;;  %v23674_v49 = vand.u32 4294901760, %v22610_v42 }
 0x7fb   : > { %v22942_v12 = vsub.f32 %v22636_v13, %v14596_v14 }
 0x7fc   : > { %18467 = vmatmul.mubr.f32.gmra.mrb[34].mxu0 %v22295_v29  ;;  %v14566_v29 = vld [vmem:[%s23619_s27 + $0x78] sm:$0xff]  ;;  %23666 = vst [vmem:[#allocation27_spill] sm:$0xff] %v22848_v5  ;;  %v23527_v37 = vand.u32 4294901760, %v22848_v5 }
 0x7fd   : > { %18469 = vmatprep.mubr.f32.mxu0 %v22354_v24 }
 0x7fe   : > { %v14950_v28 = vsub.f32 %v22848_v5, %v23527_v37 }
 0x800   : > { %18470 = vmatmul.mubr.f32.gmra.mrb[36].mxu0 %v22351_v56  ;;  %v23655_v56 = vld [vmem:[#allocation15_spill] sm:$0xff] }
 0x801   : > { %18472 = vmatprep.mubr.f32.mxu0 %v22423_v1  ;;  %v23656_v24 = vand.u32 4294901760, %v23655_v56 }
 0x804   : > { %18473 = vmatmul.mubr.f32.gmra.mrb[38].mxu0 %v22416_v18  ;;  %v23659_v18 = vand.u32 4294901760, %v23658_v32 }
 0x805   : > { %18475 = vmatprep.mubr.f32.mxu0 %v22443_v9  ;;  %v14565_v9 = vld [vmem:[%s23619_s27 + $0x70] sm:$0xff] }
 0x806   : > { %v14617_v39 = vand.u32 4294901760, %v14565_v9  ;;  %v22810_v1 = vsub.f32 %v23658_v32, %v23659_v18  ;;  %v23669_v18 = vld [vmem:[#allocation17_spill] sm:$0xff] }
 0x808   : > { %18476 = vmatmul.mubr.f32.gmra.mrb[40].mxu0 %v22440_v6  ;;  %v14620_v6 = vand.u32 4294901760, %v14566_v29  ;;  %23660 = vst [vmem:[#allocation16_spill] sm:$0xff] %v22810_v1  ;;  %v23539_v38 = vand.u32 4294901760, %v22810_v1  ;;  %v22861_v41 = vsub.f32 %v14565_v9, %v14617_v39 }
 0x809   : > { %18478 = vmatprep.mubr.f32.mxu0 %v22467_v21  ;;  %v14611_v21 = vand.u32 4294901760, %v14563_v19 }
 0x80a   : > { %v14866_v26 = vsub.f32 %v22810_v1, %v23539_v38  ;;  %23667 = vst [vmem:[#allocation28_spill] sm:$0xff] %v22861_v41  ;;  %v22863_v34 = vsub.f32 %v14566_v29, %v14620_v6 }
 0x80b   : > { %v22788_v60 = vpack.c.bf16 %v14614_v15, %v14611_v21  ;;  %v22846_v17 = vsub.f32 %v14563_v19, %v14611_v21 }
 0x80c   : > { %18479 = vmatmul.mubr.f32.gmra.mrb[42].mxu0 %v22464_v36  ;;  %v22805_v36 = vsub.f32 %v23655_v56, %v23656_v24  ;;  %v14867_v50 = vand.u32 4294901760, %v14866_v26  ;;  %23668 = vst [vmem:[#allocation29_spill] sm:$0xff] %v22863_v34  ;;  %v22897_v32 = vpack.c.bf16 %v22863_v34, %v22861_v41 }
 0x80d   : > { %18481 = vmatprep.mubr.f32.mxu0 %v22487_v55  ;;  %23653 = vst [vmem:[#allocation20_spill] sm:$0xff] %v22788_v60  ;;  %v22798_v55 = vpack.c.bf16 %v14620_v6, %v14617_v39  ;;  %23665 = vst [vmem:[#allocation26_spill] sm:$0xff] %v22846_v17  ;;  %v23528_v40 = vand.u32 4294901760, %v22846_v17  ;;  %v22885_v6 = vpack.c.bf16 %v22825_v16, %v22823_v10 }
 0x80e   : > { %23657 = vst [vmem:[#allocation15_spill] sm:$0xff] %v22805_v36  ;;  %v23541_v52 = vand.u32 4294901760, %v22805_v36  ;;  %v22881_v39 = vpack.c.bf16 %v22810_v1, %v22805_v36  ;;  %v22893_v24 = vpack.c.bf16 %v22848_v5, %v22846_v17 }
 0x80f   : > { %23654 = vst [vmem:[#allocation21_spill] sm:$0xff] %v22798_v55  ;;  %v14943_v63 = vsub.f32 %v22846_v17, %v23528_v40 }
 0x810   : > { %18482 = vmatmul.mubr.f32.gmra.mrb[44].mxu0 %v22484_v0  ;;  %v14859_v0 = vsub.f32 %v22805_v36, %v23541_v52 }
 0x811   : > { %18484 = vmatprep.mubr.f32.mxu0 %v22507_v3  ;;  %v14562_v3 = vld [vmem:[%s23619_s27 + $0x58] sm:$0xff] }
 0x812   : > { %v14608_v7 = vand.u32 4294901760, %v14562_v3  ;;  %v14860_v25 = vand.u32 4294901760, %v14859_v0  ;;  %v23670_v0 = vand.u32 4294901760, %v23669_v18 }
 0x814   : > { %18485 = vmatmul.mubr.f32.gmra.mrb[46].mxu0 %v22504_v33  ;;  %v14605_v33 = vand.u32 4294901760, %v14561_v54  ;;  %v22820_v35 = vpack.c.bf16 %v14867_v50, %v14860_v25  ;;  %v22837_v31 = vsub.f32 %v14562_v3, %v14608_v7  ;;  %v14951_v3 = vand.u32 4294901760, %v14950_v28  ;;  %v23671_v25 = vld [vmem:[#allocation18_spill] sm:$0xff]  ;;  %v23675_v28 = vld [vmem:[#allocation12_spill] sm:$0xff] }
 0x815   : > { %v22902_v26 = vsub.f32 %v23669_v18, %v23670_v0  ;;  %v23672_v50 = vand.u32 4294901760, %v23671_v25  ;;  %v22934_v18 = vsub.f32 %v22631_v45, %v14593_v46 }
 0x816   : > { %v22778_v58 = vpack.c.bf16 %v14608_v7, %v14605_v33  ;;  %v22835_v57 = vsub.f32 %v14561_v54, %v14605_v33  ;;  %23664 = vst [vmem:[#allocation25_spill] sm:$0xff] %v22837_v31  ;;  %v23529_v44 = vand.u32 4294901760, %v22837_v31  ;;  %v14944_v54 = vand.u32 4294901760, %v14943_v63 }
 0x817   : > { %v23526_v33 = vand.u32 4294901760, %v22861_v41  ;;  %v23525_v7 = vand.u32 4294901760, %v22863_v34  ;;  %v22907_v2 = vsub.f32 %v23671_v25, %v23672_v50  ;;  %v23534_v63 = vand.u32 4294901760, %v22912_v61 }
 0x818   : > { %23652 = vst [vmem:[#allocation14_spill] sm:$0xff] %v22778_v58  ;;  %19264 = vmatprep.subr.bf16.mxu1 %v22778_v58  ;;  %23663 = vst [vmem:[#allocation24_spill] sm:$0xff] %v22835_v57  ;;  %v23530_v4 = vand.u32 4294901760, %v22835_v57  ;;  %v14936_v30 = vsub.f32 %v22837_v31, %v23529_v44  ;;  %v22869_v19 = vpack.c.bf16 %v14951_v3, %v14944_v54  ;;  %v23537_v13 = vand.u32 4294901760, %v22934_v18 }
 0x819   : > { %19266 = vmatpush3.bf16.msra.mxu1 %v22778_v58  ;;  %v14957_v48 = vsub.f32 %v22861_v41, %v23526_v33  ;;  %v14964_v21 = vsub.f32 %v22863_v34, %v23525_v7  ;;  %v22889_v56 = vpack.c.bf16 %v22837_v31, %v22835_v57  ;;  %v14887_v50 = vsub.f32 %v22912_v61, %v23534_v63 }
 0x81a   : > { %19268 = vmatprep.subr.bf16.mxu1 %v22788_v60  ;;  %v14929_v22 = vsub.f32 %v22835_v57, %v23530_v4  ;;  %v14937_v11 = vand.u32 4294901760, %v14936_v30  ;;  %v23538_v30 = vand.u32 4294901760, %v22902_v26  ;;  %v23542_v4 = vand.u32 4294901760, %v22942_v12 }
 0x81b   : > { %v14958_v15 = vand.u32 4294901760, %v14957_v48  ;;  %v14965_v9 = vand.u32 4294901760, %v14964_v21  ;;  %v23676_v21 = vld [vmem:[#allocation13_spill] sm:$0xff]  ;;  %v14888_v44 = vand.u32 4294901760, %v14887_v50 }
 0x81c   : > { %v14930_v51 = vand.u32 4294901760, %v14929_v22  ;;  %v22917_v22 = vsub.f32 %v22610_v42, %v23674_v49 }
 0x81d   : > { %19270 = vmatpush3.bf16.msra.mxu1 %v22788_v60  ;;  %v22877_v29 = vpack.c.bf16 %v14965_v9, %v14958_v15  ;;  %v14873_v15 = vsub.f32 %v22902_v26, %v23538_v30 }
 0x81e   : > { %19272 = vmatprep.subr.bf16.mxu1 %v22798_v55  ;;  %v22865_v59 = vpack.c.bf16 %v14937_v11, %v14930_v51  ;;  %v23535_v51 = vand.u32 4294901760, %v22907_v2  ;;  %v23533_v48 = vand.u32 4294901760, %v22917_v22 }
 0x820   : > { %v14880_v42 = vsub.f32 %v22907_v2, %v23535_v51  ;;  %v14894_v45 = vsub.f32 %v22917_v22, %v23533_v48 }
 0x821   : > { %19274 = vmatpush3.bf16.msra.mxu1 %v22798_v55 }
 0x822   : > { %19276 = vmatprep.subr.bf16.mxu1 %v22820_v35  ;;  %v14881_v7 = vand.u32 4294901760, %v14880_v42 }
 0x8c3   : > { %v18459_v11 = vpop.f32.mrb[28].mxu0 }
 0x8c4   : > { %v14512_v54 = vadd.f32 %v23675_v28, %v18459_v11  ;;  %v14393_v3 = vpop.f32.mrb[29].mxu0 }
 0x8c5   : > { %v14511_v47 = vadd.f32 %v23676_v21, %v14393_v3 }
 0x8c6   : > { %v14532_v9 = vmax.f32 %v14512_v54, 0.0 }
 0x8c7   : > { %v14531_v0 = vmax.f32 %v14511_v47, 0.0  ;;  %v18462_v25 = vpop.f32.mrb[30].mxu0  ;;  %v14874_v47 = vand.u32 4294901760, %v14873_v15 }
 0x8c8   : > { %v22944_v49 = vand.u32 4294901760, %v14532_v9  ;;  %v14514_v11 = vadd.f32 %v23675_v28, %v18462_v25  ;;  %v14405_v54 = vpop.f32.mrb[31].mxu0 }
 0x8c9   : > { %v22950_v46 = vand.u32 4294901760, %v14531_v0  ;;  %v14513_v3 = vadd.f32 %v23676_v21, %v14405_v54  ;;  %v19279_v48 = vpack.c.bf16 %v14881_v7, %v14874_v47  ;;  %v14908_v47 = vsub.f32 %v22942_v12, %v23542_v4 }
 0x8ca   : > { %v22954_v33 = vsub.f32 %v14532_v9, %v22944_v49  ;;  %v14534_v14 = vmax.f32 %v14514_v11, 0.0  ;;  %v14895_v9 = vand.u32 4294901760, %v14894_v45 }
 0x8cb   : > { %v22958_v37 = vsub.f32 %v14531_v0, %v22950_v46  ;;  %v14533_v25 = vmax.f32 %v14513_v3, 0.0  ;;  %v18465_v40 = vpop.f32.mrb[32].mxu0 }
 0x8cc   : > { %v23536_v62 = vand.u32 4294901760, %v22954_v33  ;;  %v22962_v43 = vand.u32 4294901760, %v14534_v14  ;;  %v14516_v15 = vadd.f32 %v23675_v28, %v18465_v40  ;;  %v14417_v42 = vpop.f32.mrb[33].mxu0  ;;  %v14901_v40 = vsub.f32 %v22934_v18, %v23537_v13 }
 0x8cd   : > { %v22965_v54 = vand.u32 4294901760, %v14533_v25  ;;  %v14515_v11 = vadd.f32 %v23676_v21, %v14417_v42  ;;  %v23540_v0 = vand.u32 4294901760, %v22958_v37  ;;  %v22991_v30 = vpack.c.bf16 %v14895_v9, %v14888_v44 }
 0x8ce   : > { %v14668_v50 = vsub.f32 %v22954_v33, %v23536_v62  ;;  %v22973_v3 = vsub.f32 %v14534_v14, %v22962_v43  ;;  %v14536_v63 = vmax.f32 %v14516_v15, 0.0 }
 0x8cf   : > { %v22979_v45 = vsub.f32 %v14533_v25, %v22965_v54  ;;  %v14535_v51 = vmax.f32 %v14515_v11, 0.0  ;;  %v18468_v42 = vpop.f32.mrb[34].mxu0  ;;  %v14658_v7 = vsub.f32 %v22958_v37, %v23540_v0 }
 0x8d0   : > { %v22987_v14 = vand.u32 4294901760, %v14536_v63  ;;  %v14518_v15 = vadd.f32 %v23675_v28, %v18468_v42  ;;  %v14429_v62 = vpop.f32.mrb[35].mxu0  ;;  %v23546_v13 = vand.u32 4294901760, %v22973_v3  ;;  %v14669_v34 = vand.u32 4294901760, %v14668_v50 }
 0x8d1   : > { %v22993_v25 = vand.u32 4294901760, %v14535_v51  ;;  %v14517_v11 = vadd.f32 %v23676_v21, %v14429_v62  ;;  %v14659_v38 = vand.u32 4294901760, %v14658_v7  ;;  %v23548_v0 = vand.u32 4294901760, %v22979_v45 }
 0x8d2   : > { %v22998_v52 = vsub.f32 %v14536_v63, %v22987_v14  ;;  %v14538_v4 = vmax.f32 %v14518_v15, 0.0  ;;  %v14688_v42 = vsub.f32 %v22973_v3, %v23546_v13  ;;  %v14902_v7 = vand.u32 4294901760, %v14901_v40 }
 0x8d3   : > { %v23004_v41 = vsub.f32 %v14535_v51, %v22993_v25  ;;  %v14537_v44 = vmax.f32 %v14517_v11, 0.0  ;;  %v18471_v9 = vpop.f32.mrb[36].mxu0  ;;  %18519 = vmatprep.mubr.f32.mxu1 %v14659_v38  ;;  %v14678_v62 = vsub.f32 %v22979_v45, %v23548_v0  ;;  %v14909_v13 = vand.u32 4294901760, %v14908_v47 }
 0x8d4   : > { %v23009_v5 = vand.u32 4294901760, %v14538_v4  ;;  %v14520_v63 = vadd.f32 %v23675_v28, %v18471_v9  ;;  %v14441_v50 = vpop.f32.mrb[37].mxu0  ;;  %18520 = vmatmul.mubr.f32.vlgmr.msra.gmra.mrb[28].mxu1 %v14669_v34  ;;  %v23550_v15 = vand.u32 4294901760, %v22998_v52  ;;  %v14689_v31 = vand.u32 4294901760, %v14688_v42 }
 0x8d5   : > { %v23013_v17 = vand.u32 4294901760, %v14537_v44  ;;  %v14519_v51 = vadd.f32 %v23676_v21, %v14441_v50  ;;  %v14679_v11 = vand.u32 4294901760, %v14678_v62  ;;  %19278 = vmatpush3.bf16.msra.mxu1 %v22820_v35  ;;  %v23553_v38 = vand.u32 4294901760, %v23004_v41 }
 0x8d6   : > { %v23019_v40 = vsub.f32 %v14538_v4, %v23009_v5  ;;  %v14540_v0 = vmax.f32 %v14520_v63, 0.0  ;;  %v14708_v34 = vsub.f32 %v22998_v52, %v23550_v15  ;;  %19280 = vmatprep.subr.bf16.mxu1 %v19279_v48  ;;  %v19287_v15 = vpack.c.bf16 %v14909_v13, %v14902_v7 }
 0x8d7   : > { %v23025_v47 = vsub.f32 %v14537_v44, %v23013_v17  ;;  %v14539_v9 = vmax.f32 %v14519_v51, 0.0  ;;  %v18474_v50 = vpop.f32.mrb[38].mxu0  ;;  %18522 = vmatprep.mubr.f32.mxu1 %v14679_v11  ;;  %v14698_v35 = vsub.f32 %v23004_v41, %v23553_v38 }
 0x8d8   : > { %v23030_v62 = vand.u32 4294901760, %v14540_v0  ;;  %v14522_v4 = vadd.f32 %v23675_v28, %v18474_v50  ;;  %v14453_v42 = vpop.f32.mrb[39].mxu0  ;;  %18523 = vmatmul.mubr.f32.gmra.mrb[30].mxu1 %v14689_v31  ;;  %v23555_v63 = vand.u32 4294901760, %v23019_v40  ;;  %v14709_v10 = vand.u32 4294901760, %v14708_v34 }
 0x8d9   : > { %v23034_v57 = vand.u32 4294901760, %v14539_v9  ;;  %v14521_v44 = vadd.f32 %v23676_v21, %v14453_v42  ;;  %v14699_v51 = vand.u32 4294901760, %v14698_v35  ;;  %19282 = vmatpush3.bf16.msra.mxu1 %v19279_v48  ;;  %v23556_v11 = vand.u32 4294901760, %v23025_v47 }
 0x8da   : > { %v23039_v16 = vsub.f32 %v14540_v0, %v23030_v62  ;;  %v14542_v38 = vmax.f32 %v14522_v4, 0.0  ;;  %v14728_v31 = vsub.f32 %v23019_v40, %v23555_v63  ;;  %19284 = vmatprep.subr.bf16.mxu1 %v22991_v30 }
 0x8db   : > { %v23046_v13 = vsub.f32 %v14539_v9, %v23034_v57  ;;  %v14541_v7 = vmax.f32 %v14521_v44, 0.0  ;;  %v18477_v50 = vpop.f32.mrb[40].mxu0  ;;  %18525 = vmatprep.mubr.f32.mxu1 %v14699_v51  ;;  %v14718_v48 = vsub.f32 %v23025_v47, %v23556_v11 }
 0x8dc   : > { %23677 = vst [vmem:[#allocation17_spill] sm:$0xff] %v23039_v16  ;;  %v23051_v0 = vand.u32 4294901760, %v14542_v38  ;;  %v14524_v34 = vadd.f32 %v23675_v28, %v18477_v50  ;;  %v14465_v35 = vpop.f32.mrb[41].mxu0  ;;  %18526 = vmatmul.mubr.f32.gmra.mrb[32].mxu1 %v14709_v10  ;;  %v23559_v4 = vand.u32 4294901760, %v23039_v16  ;;  %v14729_v1 = vand.u32 4294901760, %v14728_v31 }
 0x8dd   : > { %v23055_v42 = vand.u32 4294901760, %v14541_v7  ;;  %v14523_v9 = vadd.f32 %v23676_v21, %v14465_v35  ;;  %v14719_v63 = vand.u32 4294901760, %v14718_v48  ;;  %v23562_v44 = vand.u32 4294901760, %v23046_v13  ;;  %19286 = vmatpush3.bf16.msra.mxu1 %v22991_v30 }
 0x8de   : > { %v23061_v51 = vsub.f32 %v14542_v38, %v23051_v0  ;;  %v14544_v11 = vmax.f32 %v14524_v34, 0.0  ;;  %v14748_v10 = vsub.f32 %v23039_v16, %v23559_v4  ;;  %19288 = vmatprep.subr.bf16.mxu1 %v19287_v15 }
 0x8df   : > { %v23067_v50 = vsub.f32 %v14541_v7, %v23055_v42  ;;  %v14543_v36 = vmax.f32 %v14523_v9, 0.0  ;;  %v18480_v35 = vpop.f32.mrb[42].mxu0  ;;  %18528 = vmatprep.mubr.f32.mxu1 %v14719_v63  ;;  %v14738_v30 = vsub.f32 %v23046_v13, %v23562_v44 }
 0x8e0   : > { %23678 = vst [vmem:[#allocation18_spill] sm:$0xff] %v23061_v51  ;;  %v23072_v48 = vand.u32 4294901760, %v14544_v11  ;;  %v14526_v38 = vadd.f32 %v23675_v28, %v18480_v35  ;;  %v14477_v31 = vpop.f32.mrb[43].mxu0  ;;  %18529 = vmatmul.mubr.f32.gmra.mrb[34].mxu1 %v14729_v1  ;;  %v23567_v34 = vand.u32 4294901760, %v23061_v51  ;;  %v14749_v60 = vand.u32 4294901760, %v14748_v10 }
 0x8e1   : > { %23679 = vst [vmem:[#allocation12_spill] sm:$0xff] %v23067_v50  ;;  %v23076_v4 = vand.u32 4294901760, %v14543_v36  ;;  %v14525_v7 = vadd.f32 %v23676_v21, %v14477_v31  ;;  %v14739_v55 = vand.u32 4294901760, %v14738_v30  ;;  %v23570_v9 = vand.u32 4294901760, %v23067_v50  ;;  %19290 = vmatpush3.bf16.msra.mxu1 %v19287_v15 }
 0x8e2   : > { %v23081_v63 = vsub.f32 %v14544_v11, %v23072_v48  ;;  %v14546_v44 = vmax.f32 %v14526_v38, 0.0  ;;  %v14768_v35 = vsub.f32 %v23061_v51, %v23567_v34  ;;  %19292 = vmatprep.subr.bf16.mxu1 %v22841_v20 }
 0x8e3   : > { %v23088_v1 = vsub.f32 %v14543_v36, %v23076_v4  ;;  %v14545_v58 = vmax.f32 %v14525_v7, 0.0  ;;  %v18483_v31 = vpop.f32.mrb[44].mxu0  ;;  %18531 = vmatprep.mubr.f32.mxu1 %v14739_v55  ;;  %v14758_v15 = vsub.f32 %v23067_v50, %v23570_v9 }
 0x8e4   : > { %23680 = vst [vmem:[#allocation13_spill] sm:$0xff] %v23081_v63  ;;  %v23093_v11 = vand.u32 4294901760, %v14546_v44  ;;  %v14528_v10 = vadd.f32 %v23675_v28, %v18483_v31  ;;  %v14489_v30 = vpop.f32.mrb[45].mxu0  ;;  %18532 = vmatmul.mubr.f32.gmra.mrb[36].mxu1 %v14749_v60  ;;  %v23573_v38 = vand.u32 4294901760, %v23081_v63  ;;  %v14769_v50 = vand.u32 4294901760, %v14768_v35 }
 0x8e5   : > { %23681 = vst [vmem:[#allocation30_spill] sm:$0xff] %v23088_v1  ;;  %v23097_v34 = vand.u32 4294901760, %v14545_v58  ;;  %v14527_v36 = vadd.f32 %v23676_v21, %v14489_v30  ;;  %v14759_v51 = vand.u32 4294901760, %v14758_v15  ;;  %v23578_v7 = vand.u32 4294901760, %v23088_v1  ;;  %19294 = vmatpush3.bf16.msra.mxu1 %v22841_v20 }
 0x8e6   : > { %v23103_v55 = vsub.f32 %v14546_v44, %v23093_v11  ;;  %v14548_v9 = vmax.f32 %v14528_v10, 0.0  ;;  %v14788_v60 = vsub.f32 %v23081_v63, %v23573_v38  ;;  %19296 = vmatprep.subr.bf16.mxu1 %v22865_v59 }
 0x8e7   : > { %v23110_v31 = vsub.f32 %v14545_v58, %v23097_v34  ;;  %v14547_v30 = vmax.f32 %v14527_v36, 0.0  ;;  %v18486_v15 = vpop.f32.mrb[46].mxu0  ;;  %18534 = vmatprep.mubr.f32.mxu1 %v14759_v51  ;;  %v14778_v20 = vsub.f32 %v23088_v1, %v23578_v7 }
 0x8e8   : > { %v23115_v44 = vand.u32 4294901760, %v14548_v9  ;;  %v14530_v35 = vadd.f32 %v23675_v28, %v18486_v15  ;;  %v14501_v10 = vpop.f32.mrb[47].mxu0  ;;  %18535 = vmatmul.mubr.f32.gmra.mrb[38].mxu1 %v14769_v50  ;;  %v23585_v38 = vand.u32 4294901760, %v23103_v55  ;;  %v14789_v1 = vand.u32 4294901760, %v14788_v60 }
 0x8e9   : > { %v23119_v63 = vand.u32 4294901760, %v14547_v30  ;;  %v14529_v58 = vadd.f32 %v23676_v21, %v14501_v10  ;;  %v14779_v16 = vand.u32 4294901760, %v14778_v20  ;;  %v23586_v36 = vand.u32 4294901760, %v23110_v31  ;;  %19298 = vmatpush3.bf16.msra.mxu1 %v22865_v59 }
 0x8ea   : > { %v23125_v51 = vsub.f32 %v14548_v9, %v23115_v44  ;;  %v14550_v7 = vmax.f32 %v14530_v35, 0.0  ;;  %v14808_v28 = vsub.f32 %v23103_v55, %v23585_v38  ;;  %19300 = vmatprep.subr.bf16.mxu1 %v22869_v19  ;;  %v23701_v38 = vand.u32 4294901760, %v22917_v22 }
 0x8eb   : > { %v23132_v50 = vsub.f32 %v14547_v30, %v23119_v63  ;;  %v14549_v21 = vmax.f32 %v14529_v58, 0.0  ;;  %18537 = vmatprep.mubr.f32.mxu1 %v14779_v16  ;;  %v14798_v59 = vsub.f32 %v23110_v31, %v23586_v36 }
 0x8ec   : > { %v23137_v15 = vand.u32 4294901760, %v14550_v7  ;;  %18538 = vmatmul.mubr.f32.gmra.mrb[40].mxu1 %v14789_v1  ;;  %v23581_v9 = vand.u32 4294901760, %v23125_v51  ;;  %v14809_v16 = vand.u32 4294901760, %v14808_v28 }
 0x8ed   : > { %v23140_v60 = vand.u32 4294901760, %v14549_v21  ;;  %v14799_v20 = vand.u32 4294901760, %v14798_v59  ;;  %v23584_v35 = vand.u32 4294901760, %v23132_v50  ;;  %19302 = vmatpush3.bf16.msra.mxu1 %v22869_v19 }
 0x8ee   : > { %v23145_v30 = vsub.f32 %v14550_v7, %v23137_v15  ;;  %v14828_v10 = vsub.f32 %v23125_v51, %v23581_v9  ;;  %19304 = vmatprep.subr.bf16.mxu1 %v22877_v29 }
 0x8ef   : > { %v23152_v1 = vsub.f32 %v14549_v21, %v23140_v60  ;;  %18540 = vmatprep.mubr.f32.mxu1 %v14799_v20  ;;  %v14818_v58 = vsub.f32 %v23132_v50, %v23584_v35  ;;  %v23700_v35 = vand.u32 4294901760, %v22912_v61 }
 0x8f0   : > { %18541 = vmatmul.mubr.f32.gmra.mrb[42].mxu1 %v14809_v16  ;;  %v23582_v19 = vand.u32 4294901760, %v23145_v30  ;;  %v14829_v59 = vand.u32 4294901760, %v14828_v10  ;;  %v19315_v10 = vpack.c.bf16 %v22917_v22, %v22912_v61  ;;  %v23707_v61 = vand.u32 4294901760, %v23025_v47  ;;  %v23708_v22 = vld [vmem:[#allocation22_spill] sm:$0xff] }
 0x8f1   : > { %v14819_v7 = vand.u32 4294901760, %v14818_v58  ;;  %v23583_v28 = vand.u32 4294901760, %v23152_v1  ;;  %19306 = vmatpush3.bf16.msra.mxu1 %v22877_v29  ;;  %v19311_v29 = vpack.c.bf16 %v22907_v2, %v22902_v26  ;;  %v23687_v58 = vld [vmem:[#allocation30_spill] sm:$0xff]  ;;  %v19379_v36 = vpack.c.bf16 %v23701_v38, %v23700_v35  ;;  %v23710_v38 = vld [vmem:[#allocation23_spill] sm:$0xff] }
 0x8f2   : > { %v14848_v9 = vsub.f32 %v23145_v30, %v23582_v19  ;;  %19308 = vmatprep.subr.bf16.mxu1 %v22881_v39  ;;  %v23695_v19 = vand.u32 4294901760, %v22958_v37 }
 0x8f3   : > { %18543 = vmatprep.mubr.f32.mxu1 %v14819_v7  ;;  %v14838_v21 = vsub.f32 %v23152_v1, %v23583_v28  ;;  %v23688_v7 = vld [vmem:[#allocation20_spill] sm:$0xff]  ;;  %v23699_v28 = vand.u32 4294901760, %v22979_v45 }
 0x8f4   : > { %18544 = vmatmul.mubr.f32.gmra.mrb[44].mxu1 %v14829_v59  ;;  %v14849_v16 = vand.u32 4294901760, %v14848_v9  ;;  %v19319_v9 = vpack.c.bf16 %v22942_v12, %v22934_v18  ;;  %v23689_v59 = vld [vmem:[#allocation13_spill] sm:$0xff] }
 0x8f5   : > { %v14839_v20 = vand.u32 4294901760, %v14838_v21  ;;  %v23690_v21 = vld [vmem:[#allocation21_spill] sm:$0xff] }
 0x8f7   : > { %18546 = vmatprep.mubr.f32.mxu1 %v14839_v20  ;;  %v23691_v20 = vld [vmem:[#allocation15_spill] sm:$0xff] }
 0x8f8   : > { %18547 = vmatmul.mubr.f32.gmra.mrb[46].mxu1 %v14849_v16  ;;  %v23692_v16 = vand.u32 4294901760, %v23691_v20  ;;  %v23696_v20 = vand.u32 4294901760, %v22902_v26  ;;  %v23703_v26 = vand.u32 4294901760, %v23004_v41 }
 0x8f9   : > { %18581 = vmatprep.mubr.f32.mxu1 %v22950_v46 }
 0x8fc   : > { %18582 = vmatmul.mubr.f32.vlgmr.msra.gmra.mrb[28].mxu1 %v22944_v49 }
 0x8fd   : > { %18584 = vmatprep.mubr.f32.mxu1 %v22965_v54  ;;  %19310 = vmatpush3.bf16.msra.mxu1 %v22881_v39  ;;  %v23682_v39 = vld [vmem:[#allocation19_spill] sm:$0xff] }
 0x8fe   : > { %19312 = vmatprep.subr.bf16.mxu1 %v19311_v29 }
 0x900   : > { %18585 = vmatmul.mubr.f32.gmra.mrb[30].mxu1 %v22962_v43 }
 0x901   : > { %18587 = vmatprep.mubr.f32.mxu1 %v22993_v25  ;;  %19314 = vmatpush3.bf16.msra.mxu1 %v19311_v29  ;;  %v23693_v29 = vld [vmem:[#allocation16_spill] sm:$0xff] }
 0x902   : > { %19316 = vmatprep.subr.bf16.mxu1 %v19315_v10 }
 0x904   : > { %18588 = vmatmul.mubr.f32.gmra.mrb[32].mxu1 %v22987_v14 }
 0x905   : > { %18590 = vmatprep.mubr.f32.mxu1 %v23013_v17  ;;  %19318 = vmatpush3.bf16.msra.mxu1 %v19315_v10  ;;  %v23694_v10 = vand.u32 4294901760, %v23693_v29 }
 0x906   : > { %19320 = vmatprep.subr.bf16.mxu1 %v19319_v9 }
 0x908   : > { %18591 = vmatmul.mubr.f32.gmra.mrb[34].mxu1 %v23009_v5 }
 0x909   : > { %18593 = vmatprep.mubr.f32.mxu1 %v23034_v57  ;;  %19322 = vmatpush3.bf16.msra.mxu1 %v19319_v9  ;;  %v19371_v9 = vpack.c.bf16 %v23694_v10, %v23692_v16  ;;  %v23697_v16 = vand.u32 4294901760, %v22907_v2  ;;  %v23698_v10 = vand.u32 4294901760, %v22954_v33  ;;  %v23705_v2 = vand.u32 4294901760, %v22942_v12 }
 0x90a   : > { %19324 = vmatprep.subr.bf16.mxu1 %v22885_v6 }
 0x90b   : > { %v19375_v29 = vpack.c.bf16 %v23697_v16, %v23696_v20 }
 0x90c   : > { %18594 = vmatmul.mubr.f32.gmra.mrb[36].mxu1 %v23030_v62 }
 0x90d   : > { %18596 = vmatprep.mubr.f32.mxu1 %v23055_v42  ;;  %19326 = vmatpush3.bf16.msra.mxu1 %v22885_v6  ;;  %v23683_v6 = vld [vmem:[#allocation17_spill] sm:$0xff] }
 0x90e   : > { %19328 = vmatprep.subr.bf16.mxu1 %v22889_v56 }
 0x910   : > { %18597 = vmatmul.mubr.f32.gmra.mrb[38].mxu1 %v23051_v0 }
 0x911   : > { %18599 = vmatprep.mubr.f32.mxu1 %v23076_v4  ;;  %19330 = vmatpush3.bf16.msra.mxu1 %v22889_v56  ;;  %v23684_v56 = vld [vmem:[#allocation12_spill] sm:$0xff] }
 0x912   : > { %19332 = vmatprep.subr.bf16.mxu1 %v22893_v24  ;;  %v23719_v16 = vand.u32 4294901760, %v23684_v56 }
 0x914   : > { %18600 = vmatmul.mubr.f32.gmra.mrb[40].mxu1 %v23072_v48 }
 0x915   : > { %18602 = vmatprep.mubr.f32.mxu1 %v23097_v34  ;;  %19334 = vmatpush3.bf16.msra.mxu1 %v22893_v24  ;;  %v23685_v24 = vld [vmem:[#allocation14_spill] sm:$0xff] }
 0x916   : > { %19336 = vmatprep.subr.bf16.mxu1 %v22897_v32 }
 0x918   : > { %18603 = vmatmul.mubr.f32.gmra.mrb[42].mxu1 %v23093_v11 }
 0x919   : > { %18605 = vmatprep.mubr.f32.mxu1 %v23119_v63  ;;  %19338 = vmatpush3.bf16.msra.mxu1 %v22897_v32  ;;  %v23686_v32 = vld [vmem:[#allocation18_spill] sm:$0xff] }
 0x91a   : > { %19340 = vmatprep.subr.bf16.mxu1 %v23682_v39 }
 0x91c   : > { %18606 = vmatmul.mubr.f32.gmra.mrb[44].mxu1 %v23115_v44 }
 0x91d   : > { %18608 = vmatprep.mubr.f32.mxu1 %v23140_v60 }
 0x920   : > { %18609 = vmatmul.mubr.f32.gmra.mrb[46].mxu1 %v23137_v15 }
 0x921   : > { %18643 = vmatprep.mubr.f32.mxu1 %v22958_v37  ;;  %v23702_v37 = vand.u32 4294901760, %v22973_v3 }
 0x924   : > { %18644 = vmatmul.mubr.f32.vlgmr.msra.gmra.mrb[28].mxu1 %v22954_v33  ;;  %v23704_v33 = vand.u32 4294901760, %v22934_v18  ;;  %v23713_v18 = vand.u32 4294901760, %v23046_v13 }
 0x925   : > { %18646 = vmatprep.mubr.f32.mxu1 %v22979_v45  ;;  %19342 = vmatpush3.bf16.msra.mxu1 %v23682_v39 }
 0x926   : > { %19344 = vmatprep.subr.bf16.mxu1 %v22626_v53  ;;  %v19383_v45 = vpack.c.bf16 %v23705_v2, %v23704_v33  ;;  %v23725_v33 = vand.u32 4294901760, %v23687_v58 }
 0x928   : > { %18647 = vmatmul.mubr.f32.gmra.mrb[30].mxu1 %v22973_v3  ;;  %v23709_v3 = vand.u32 4294901760, %v23708_v22  ;;  %v23731_v22 = vand.u32 4294901760, %v23110_v31 }
 0x929   : > { %18649 = vmatprep.mubr.f32.mxu1 %v23004_v41  ;;  %19346 = vmatpush3.bf16.msra.mxu1 %v22626_v53  ;;  %v23711_v41 = vand.u32 4294901760, %v23710_v38 }
 0x92a   : > { %19348 = vmatprep.subr.bf16.mxu1 %v22646_v23 }
 0x92b   : > { %v19387_v35 = vpack.c.bf16 %v23711_v41, %v23709_v3  ;;  %v23734_v3 = vand.u32 4294901760, %v23125_v51 }
 0x92c   : > { %18650 = vmatmul.mubr.f32.gmra.mrb[32].mxu1 %v22998_v52 }
 0x92d   : > { %18652 = vmatprep.mubr.f32.mxu1 %v23025_v47  ;;  %19350 = vmatpush3.bf16.msra.mxu1 %v22646_v23 }
 0x92e   : > { %19352 = vmatprep.subr.bf16.mxu1 %v22663_v27 }
 0x930   : > { %18653 = vmatmul.mubr.f32.gmra.mrb[34].mxu1 %v23019_v40 }
 0x931   : > { %18655 = vmatprep.mubr.f32.mxu1 %v23046_v13  ;;  %19354 = vmatpush3.bf16.msra.mxu1 %v22663_v27 }
 0x932   : > { %19356 = vmatprep.subr.bf16.mxu1 %v22768_v8 }
 0x934   : > { %18656 = vmatmul.mubr.f32.gmra.mrb[36].mxu1 %v23683_v6 }
 0x935   : > { %18658 = vmatprep.mubr.f32.mxu1 %v23684_v56  ;;  %19358 = vmatpush3.bf16.msra.mxu1 %v22768_v8 }
 0x936   : > { %19360 = vmatprep.subr.bf16.mxu1 %v23685_v24 }
 0x938   : > { %18659 = vmatmul.mubr.f32.gmra.mrb[38].mxu1 %v23686_v32 }
 0x939   : > { %18661 = vmatprep.mubr.f32.mxu1 %v23687_v58  ;;  %19362 = vmatpush3.bf16.msra.mxu1 %v23685_v24  ;;  %v23733_v58 = vand.u32 4294901760, %v23132_v50 }
 0x93a   : > { %19364 = vmatprep.subr.bf16.mxu1 %v23688_v7 }
 0x93c   : > { %18662 = vmatmul.mubr.f32.gmra.mrb[40].mxu1 %v23689_v59 }
 0x93d   : > { %18664 = vmatprep.mubr.f32.mxu1 %v23110_v31  ;;  %19366 = vmatpush3.bf16.msra.mxu1 %v23688_v7  ;;  %v23736_v31 = vand.u32 4294901760, %v23145_v30 }
 0x93e   : > { %19368 = vmatprep.subr.bf16.mxu1 %v23690_v21 }
 0x940   : > { %18665 = vmatmul.mubr.f32.gmra.mrb[42].mxu1 %v23103_v55 }
 0x941   : > { %18667 = vmatprep.mubr.f32.mxu1 %v23132_v50  ;;  %19370 = vmatpush3.bf16.msra.mxu1 %v23690_v21 }
 0x942   : > { %19372 = vmatprep.subr.bf16.mxu1 %v19371_v9 }
 0x944   : > { %18668 = vmatmul.mubr.f32.gmra.mrb[44].mxu1 %v23125_v51 }
 0x945   : > { %18670 = vmatprep.mubr.f32.mxu1 %v23152_v1 }
 0x948   : > { %18671 = vmatmul.mubr.f32.gmra.mrb[46].mxu1 %v23145_v30 }
 0x949   : > { %18705 = vmatprep.mubr.f32.mxu1 %v23695_v19  ;;  %v23706_v19 = vand.u32 4294901760, %v22998_v52  ;;  %v23714_v52 = vld [vmem:[#allocation24_spill] sm:$0xff] }
 0x94a   : > { %v23715_v12 = vand.u32 4294901760, %v23714_v52 }
 0x94c   : > { %18706 = vmatmul.mubr.f32.vlgmr.msra.gmra.mrb[28].mxu1 %v23698_v10  ;;  %v23722_v10 = vld [vmem:[#allocation27_spill] sm:$0xff] }
 0x94d   : > { %18708 = vmatprep.mubr.f32.mxu1 %v23699_v28  ;;  %19374 = vmatpush3.bf16.msra.mxu1 %v19371_v9  ;;  %v23712_v28 = vand.u32 4294901760, %v23019_v40  ;;  %v23716_v9 = vld [vmem:[#allocation25_spill] sm:$0xff]  ;;  %v23720_v40 = vld [vmem:[#allocation26_spill] sm:$0xff]  ;;  %v23723_v13 = vand.u32 4294901760, %v23722_v10 }
 0x94e   : > { %19376 = vmatprep.subr.bf16.mxu1 %v19375_v29  ;;  %v23717_v47 = vand.u32 4294901760, %v23716_v9 }
 0x950   : > { %18709 = vmatmul.mubr.f32.gmra.mrb[30].mxu1 %v23702_v37  ;;  %v19391_v20 = vpack.c.bf16 %v23717_v47, %v23715_v12 }
 0x951   : > { %18711 = vmatprep.mubr.f32.mxu1 %v23703_v26  ;;  %19378 = vmatpush3.bf16.msra.mxu1 %v19375_v29  ;;  %v23721_v29 = vand.u32 4294901760, %v23720_v40  ;;  %v23724_v26 = vand.u32 4294901760, %v23686_v32  ;;  %v23732_v32 = vand.u32 4294901760, %v23103_v55 }
 0x952   : > { %19380 = vmatprep.subr.bf16.mxu1 %v19379_v36 }
 0x953   : > { %v19395_v37 = vpack.c.bf16 %v23723_v13, %v23721_v29 }
 0x954   : > { %18712 = vmatmul.mubr.f32.gmra.mrb[32].mxu1 %v23706_v19 }
 0x955   : > { %18714 = vmatprep.mubr.f32.mxu1 %v23707_v61  ;;  %19382 = vmatpush3.bf16.msra.mxu1 %v19379_v36  ;;  %v23718_v36 = vand.u32 4294901760, %v23683_v6  ;;  %v23726_v6 = vld [vmem:[#allocation28_spill] sm:$0xff]  ;;  %v23730_v61 = vand.u32 4294901760, %v23689_v59  ;;  %v23735_v59 = vand.u32 4294901760, %v23152_v1 }
 0x956   : > { %19384 = vmatprep.subr.bf16.mxu1 %v19383_v45  ;;  %v23727_v2 = vand.u32 4294901760, %v23726_v6 }
 0x958   : > { %18715 = vmatmul.mubr.f32.gmra.mrb[34].mxu1 %v23712_v28 }
 0x959   : > { %18717 = vmatprep.mubr.f32.mxu1 %v23713_v18  ;;  %19386 = vmatpush3.bf16.msra.mxu1 %v19383_v45  ;;  %v23728_v45 = vld [vmem:[#allocation29_spill] sm:$0xff] }
 0x95a   : > { %19388 = vmatprep.subr.bf16.mxu1 %v19387_v35  ;;  %v23729_v56 = vand.u32 4294901760, %v23728_v45 }
 0x95c   : > { %18718 = vmatmul.mubr.f32.gmra.mrb[36].mxu1 %v23718_v36  ;;  %v19399_v19 = vpack.c.bf16 %v23729_v56, %v23727_v2 }
 0x95d   : > { %18720 = vmatprep.mubr.f32.mxu1 %v23719_v16  ;;  %19390 = vmatpush3.bf16.msra.mxu1 %v19387_v35 }
 0x95e   : > { %19392 = vmatprep.subr.bf16.mxu1 %v19391_v20 }
 0x960   : > { %18721 = vmatmul.mubr.f32.gmra.mrb[38].mxu1 %v23724_v26 }
 0x961   : > { %18723 = vmatprep.mubr.f32.mxu1 %v23725_v33  ;;  %19394 = vmatpush3.bf16.msra.mxu1 %v19391_v20 }
 0x962   : > { %19396 = vmatprep.subr.bf16.mxu1 %v19395_v37 }
 0x964   : > { %18724 = vmatmul.mubr.f32.gmra.mrb[40].mxu1 %v23730_v61 }
 0x965   : > { %18726 = vmatprep.mubr.f32.mxu1 %v23731_v22  ;;  %19398 = vmatpush3.bf16.msra.mxu1 %v19395_v37 }
 0x966   : > { %19400 = vmatprep.subr.bf16.mxu1 %v19399_v19 }
 0x968   : > { %18727 = vmatmul.mubr.f32.gmra.mrb[42].mxu1 %v23732_v32 }
 0x969   : > { %18729 = vmatprep.mubr.f32.mxu1 %v23733_v58  ;;  %19402 = vmatpush3.bf16.msra.mxu1 %v19399_v19 }
 0x96a   : > { %19404 = vmatprep.subr.bf16.mxu1 %v23682_v39 }
 0x96c   : > { %18730 = vmatmul.mubr.f32.gmra.mrb[44].mxu1 %v23734_v3 }
 0x96d   : > { %18732 = vmatprep.mubr.f32.mxu1 %v23735_v59 }
 0x970   : > { %18733 = vmatmul.mubr.f32.gmra.mrb[46].mxu1 %v23736_v31 }
 0x971   : > { %18767 = vmatprep.mubr.f32.mxu1 %v22950_v46 }
 0x974   : > { %18768 = vmatmul.mubr.f32.vlgmr.msra.gmra.mrb[28].mxu1 %v22944_v49 }
 0x975   : > { %18770 = vmatprep.mubr.f32.mxu1 %v22965_v54  ;;  %19406 = vmatpush3.bf16.msra.mxu1 %v23682_v39 }
 0x976   : > { %19408 = vmatprep.subr.bf16.mxu1 %v22626_v53 }
 0x978   : > { %18771 = vmatmul.mubr.f32.gmra.mrb[30].mxu1 %v22962_v43 }
 0x979   : > { %18773 = vmatprep.mubr.f32.mxu1 %v22993_v25  ;;  %19410 = vmatpush3.bf16.msra.mxu1 %v22626_v53  ;;  %v23370_v53 = vld [vmem:[%s23737_s19] ss:$0 sm:$0xff] }
 0x97a   : > { %19412 = vmatprep.subr.bf16.mxu1 %v22646_v23 }
 0x97c   : > { %18774 = vmatmul.mubr.f32.gmra.mrb[32].mxu1 %v22987_v14 }
 0x97d   : > { %18776 = vmatprep.mubr.f32.mxu1 %v23013_v17  ;;  %19414 = vmatpush3.bf16.msra.mxu1 %v22646_v23 }
 0x97e   : > { %19416 = vmatprep.subr.bf16.mxu1 %v22663_v27 }
 0x980   : > { %18777 = vmatmul.mubr.f32.gmra.mrb[34].mxu1 %v23009_v5 }
 0x981   : > { %18779 = vmatprep.mubr.f32.mxu1 %v23034_v57  ;;  %19418 = vmatpush3.bf16.msra.mxu1 %v22663_v27 }
 0x982   : > { %19420 = vmatprep.subr.bf16.mxu1 %v22768_v8 }
 0x984   : > { %18780 = vmatmul.mubr.f32.gmra.mrb[36].mxu1 %v23030_v62 }
 0x985   : > { %18782 = vmatprep.mubr.f32.mxu1 %v23055_v42  ;;  %19422 = vmatpush3.bf16.msra.mxu1 %v22768_v8 }
 0x986   : > { %19424 = vmatprep.subr.bf16.mxu1 %v23685_v24 }
 0x988   : > { %18783 = vmatmul.mubr.f32.gmra.mrb[38].mxu1 %v23051_v0 }
 0x989   : > { %18785 = vmatprep.mubr.f32.mxu1 %v23076_v4  ;;  %19426 = vmatpush3.bf16.msra.mxu1 %v23685_v24 }
 0x98a   : > { %19428 = vmatprep.subr.bf16.mxu1 %v23688_v7 }
 0x98c   : > { %18786 = vmatmul.mubr.f32.gmra.mrb[40].mxu1 %v23072_v48 }
 0x98d   : > { %18788 = vmatprep.mubr.f32.mxu1 %v23097_v34  ;;  %19430 = vmatpush3.bf16.msra.mxu1 %v23688_v7 }
 0x98e   : > { %19432 = vmatprep.subr.bf16.mxu1 %v23690_v21 }
 0x990   : > { %18789 = vmatmul.mubr.f32.gmra.mrb[42].mxu1 %v23093_v11 }
 0x991   : > { %18791 = vmatprep.mubr.f32.mxu1 %v23119_v63  ;;  %19434 = vmatpush3.bf16.msra.mxu1 %v23690_v21 }
 0x994   : > { %18792 = vmatmul.mubr.f32.gmra.mrb[44].mxu1 %v23115_v44 }
 0x995   : > { %18794 = vmatprep.mubr.f32.mxu1 %v23140_v60 }
 0x998   : > { %18795 = vmatmul.mubr.f32.gmra.mrb[46].mxu1 %v23137_v15 }
 0x999   : > { %18829 = vmatprep.mubr.f32.mxu1 %v22950_v46 }
 0x99c   : > { %18830 = vmatmul.mubr.f32.vlgmr.msra.gmra.mrb[28].mxu1 %v22944_v49 }
 0x99d   : > { %18832 = vmatprep.mubr.f32.mxu1 %v22965_v54 }
 0x9a0   : > { %18833 = vmatmul.mubr.f32.gmra.mrb[30].mxu1 %v22962_v43 }
 0x9a1   : > { %18835 = vmatprep.mubr.f32.mxu1 %v22993_v25 }
 0x9a4   : > { %18836 = vmatmul.mubr.f32.gmra.mrb[32].mxu1 %v22987_v14 }
 0x9a5   : > { %18838 = vmatprep.mubr.f32.mxu1 %v23013_v17 }
 0x9a8   : > { %18839 = vmatmul.mubr.f32.gmra.mrb[34].mxu1 %v23009_v5 }
 0x9a9   : > { %18841 = vmatprep.mubr.f32.mxu1 %v23034_v57 }
 0x9ac   : > { %18842 = vmatmul.mubr.f32.gmra.mrb[36].mxu1 %v23030_v62 }
 0x9ad   : > { %18844 = vmatprep.mubr.f32.mxu1 %v23055_v42 }
 0x9b0   : > { %18845 = vmatmul.mubr.f32.gmra.mrb[38].mxu1 %v23051_v0 }
 0x9b1   : > { %18847 = vmatprep.mubr.f32.mxu1 %v23076_v4 }
 0x9b4   : > { %18848 = vmatmul.mubr.f32.gmra.mrb[40].mxu1 %v23072_v48 }
 0x9b5   : > { %18850 = vmatprep.mubr.f32.mxu1 %v23097_v34 }
 0x9b8   : > { %18851 = vmatmul.mubr.f32.gmra.mrb[42].mxu1 %v23093_v11 }
 0x9b9   : > { %18853 = vmatprep.mubr.f32.mxu1 %v23119_v63 }
 0x9bc   : > { %18854 = vmatmul.mubr.f32.gmra.mrb[44].mxu1 %v23115_v44 }
 0x9bd   : > { %18856 = vmatprep.mubr.f32.mxu1 %v23140_v60 }
 0x9c0   : > { %18857 = vmatmul.mubr.f32.gmra.mrb[46].mxu1 %v23137_v15 }
 0xa6f   : > { %v18831_v27 = vpop.f32.mrb[28].mxu1 }
 0xa70   : > { %v19451_v23 = vadd.f32 %v18831_v27, %v23370_v53  ;;  %v15914_v8 = vpop.f32.mrb[29].mxu1 }
 0xa71   : > { %v19452_v43 = vadd.f32 %v23370_v53, %v15914_v8 }
 0xa72   : > { %v16033_v57 = vmax.f32 %v19451_v23, 0.0 }
 0xa73   : > { %v16032_v17 = vmax.f32 %v19452_v43, 0.0  ;;  %v18834_v5 = vpop.f32.mrb[30].mxu1 }
 0xa74   : > { %16053 = vst.msk [vmem:[%s23376_s14 + $0x8] sm:$0xff] %vm552_vm0, %v16033_v57  ;;  %v19453_v49 = vadd.f32 %v18834_v5, %v23370_v53  ;;  %v15926_v46 = vpop.f32.mrb[31].mxu1 }
 0xa75   : > { %16052 = vst.msk [vmem:[%s23376_s14] sm:$0xff] %vm552_vm0, %v16032_v17  ;;  %v19454_v54 = vadd.f32 %v23370_v53, %v15926_v46 }
 0xa76   : > { %v16035_v14 = vmax.f32 %v19453_v49, 0.0 }
 0xa77   : > { %v16034_v25 = vmax.f32 %v19454_v54, 0.0  ;;  %v18837_v62 = vpop.f32.mrb[32].mxu1 }
 0xa78   : > { %16055 = vst.msk [vmem:[%s23376_s14 + $0x18] sm:$0xff] %vm552_vm0, %v16035_v14  ;;  %v19455_v0 = vadd.f32 %v18837_v62, %v23370_v53  ;;  %v15938_v4 = vpop.f32.mrb[33].mxu1 }
 0xa79   : > { %16054 = vst.msk [vmem:[%s23376_s14 + $0x10] sm:$0xff] %vm552_vm0, %v16034_v25  ;;  %v19456_v42 = vadd.f32 %v23370_v53, %v15938_v4 }
 0xa7a   : > { %v16037_v48 = vmax.f32 %v19455_v0, 0.0 }
 0xa7b   : > { %v16036_v34 = vmax.f32 %v19456_v42, 0.0  ;;  %v18840_v63 = vpop.f32.mrb[34].mxu1 }
 0xa7c   : > { %16057 = vst.msk [vmem:[%s23376_s14 + $0x28] sm:$0xff] %vm552_vm0, %v16037_v48  ;;  %v19457_v11 = vadd.f32 %v18840_v63, %v23370_v53  ;;  %v15950_v55 = vpop.f32.mrb[35].mxu1 }
 0xa7d   : > { %16056 = vst.msk [vmem:[%s23376_s14 + $0x20] sm:$0xff] %vm552_vm0, %v16036_v34  ;;  %v19458_v44 = vadd.f32 %v23370_v53, %v15950_v55 }
 0xa7e   : > { %v16039_v51 = vmax.f32 %v19457_v11, 0.0 }
 0xa7f   : > { %v16038_v50 = vmax.f32 %v19458_v44, 0.0  ;;  %v18843_v15 = vpop.f32.mrb[36].mxu1 }
 0xa80   : > { %16059 = vst.msk [vmem:[%s23376_s14 + $0x38] sm:$0xff] %vm552_vm0, %v16039_v51  ;;  %v19459_v60 = vadd.f32 %v18843_v15, %v23370_v53  ;;  %v15962_v30 = vpop.f32.mrb[37].mxu1 }
 0xa81   : > { %16058 = vst.msk [vmem:[%s23376_s14 + $0x30] sm:$0xff] %vm552_vm0, %v16038_v50  ;;  %v19460_v1 = vadd.f32 %v23370_v53, %v15962_v30 }
 0xa82   : > { %v16041_v39 = vmax.f32 %v19459_v60, 0.0 }
 0xa83   : > { %v16040_v24 = vmax.f32 %v19460_v1, 0.0  ;;  %v18846_v7 = vpop.f32.mrb[38].mxu1 }
 0xa84   : > { %16061 = vst.msk [vmem:[%s23376_s14 + $0x48] sm:$0xff] %vm552_vm0, %v16041_v39  ;;  %v19461_v21 = vadd.f32 %v18846_v7, %v23370_v53  ;;  %v15974_v38 = vpop.f32.mrb[39].mxu1 }
 0xa85   : > { %16060 = vst.msk [vmem:[%s23376_s14 + $0x40] sm:$0xff] %vm552_vm0, %v16040_v24  ;;  %v19462_v41 = vadd.f32 %v23370_v53, %v15974_v38 }
 0xa86   : > { %v16043_v35 = vmax.f32 %v19461_v21, 0.0 }
 0xa87   : > { %v16042_v28 = vmax.f32 %v19462_v41, 0.0  ;;  %v18849_v18 = vpop.f32.mrb[40].mxu1 }
 0xa88   : > { %16063 = vst.msk [vmem:[%s23376_s14 + $0x58] sm:$0xff] %vm552_vm0, %v16043_v35  ;;  %v19463_v52 = vadd.f32 %v18849_v18, %v23370_v53  ;;  %v15986_v12 = vpop.f32.mrb[41].mxu1 }
 0xa89   : > { %16062 = vst.msk [vmem:[%s23376_s14 + $0x50] sm:$0xff] %vm552_vm0, %v16042_v28  ;;  %v19464_v9 = vadd.f32 %v23370_v53, %v15986_v12 }
 0xa8a   : > { %v16045_v47 = vmax.f32 %v19463_v52, 0.0 }
 0xa8b   : > { %v16044_v20 = vmax.f32 %v19464_v9, 0.0  ;;  %v18852_v36 = vpop.f32.mrb[42].mxu1 }
 0xa8c   : > { %16065 = vst.msk [vmem:[%s23376_s14 + $0x68] sm:$0xff] %vm552_vm0, %v16045_v47  ;;  %v19465_v16 = vadd.f32 %v18852_v36, %v23370_v53  ;;  %v15998_v40 = vpop.f32.mrb[43].mxu1 }
 0xa8d   : > { %16064 = vst.msk [vmem:[%s23376_s14 + $0x60] sm:$0xff] %vm552_vm0, %v16044_v20  ;;  %v19466_v29 = vadd.f32 %v23370_v53, %v15998_v40 }
 0xa8e   : > { %v16047_v10 = vmax.f32 %v19465_v16, 0.0 }
 0xa8f   : > { %v16046_v13 = vmax.f32 %v19466_v29, 0.0  ;;  %v18855_v37 = vpop.f32.mrb[44].mxu1 }
 0xa90   : > { %16067 = vst.msk [vmem:[%s23376_s14 + $0x78] sm:$0xff] %vm552_vm0, %v16047_v10  ;;  %v19467_v26 = vadd.f32 %v18855_v37, %v23370_v53  ;;  %v16010_v33 = vpop.f32.mrb[45].mxu1 }
 0xa91   : > { %16066 = vst.msk [vmem:[%s23376_s14 + $0x70] sm:$0xff] %vm552_vm0, %v16046_v13  ;;  %v19468_v6 = vadd.f32 %v23370_v53, %v16010_v33 }
 0xa92   : > { %v16049_v2 = vmax.f32 %v19467_v26, 0.0 }
 0xa93   : > { %v16048_v45 = vmax.f32 %v19468_v6, 0.0  ;;  %v18858_v56 = vpop.f32.mrb[46].mxu1 }
 0xa94   : > { %16069 = vst.msk [vmem:[%s23376_s14 + $0x88] sm:$0xff] %vm552_vm0, %v16049_v2  ;;  %v19469_v19 = vadd.f32 %v18858_v56, %v23370_v53  ;;  %v16022_v61 = vpop.f32.mrb[47].mxu1 }
 0xa95   : > { %16068 = vst.msk [vmem:[%s23376_s14 + $0x80] sm:$0xff] %vm552_vm0, %v16048_v45  ;;  %v19470_v22 = vadd.f32 %v23370_v53, %v16022_v61 }
 0xa96   : > { %v16051_v32 = vmax.f32 %v19469_v19, 0.0 }
 0xa97   : > { %v16050_v58 = vmax.f32 %v19470_v22, 0.0 }
 0xa98   : > { %16071 = vst.msk [vmem:[%s23376_s14 + $0x98] sm:$0xff] %vm552_vm0, %v16051_v32 }
 0xa99   : > { %16070 = vst.msk [vmem:[%s23376_s14 + $0x90] sm:$0xff] %vm552_vm0, %v16050_v58 }
 0xa9a PF: > { %p24_p9 = scmp.ge.s32.totalorder %s20489_s28, 4   ;;  %s23739_s21 = smov %s20277_s22 }
 0xa9b   : > { %s23740_s22 = smov %s20281_s23  ;;  %s23741_s23 = smov %s20499_s11 }
 0xa9c   : > { %s23742_s24 = smov %s20489_s28  ;;  %26 = sbr.rel (!%p24_p9) target bundleno = 10 (0xa), region = 126 }
 0xaa3   :  { %16093 = vsyncpa [#allocation3], 1 }
 0xaa4   :  { %16095 = vsyncpa [#allocation3 + $0x1], 1 }
 0xaa5   :  { %16096 = vsyncpa [#allocation5], 1 }
 0xaa6   :  { %16097 = vsyncpa [#allocation8], 1 }

</bundles_post_ra>
